<compile_context>
chip_gen: v5e
topology: v5e:2x2
jax: 0.10.0
libtpu: 0.0.40
codegen_flags: <defaults>
</compile_context>

<pallas_src>
import functools
import math

import jax
import jax.numpy as jnp
from jax.experimental import pallas as pl
from jax.experimental.pallas import tpu as pltpu

LN_EPS = 1e-5          # PyTorch nn.LayerNorm default
NEG_INF = -1e30        # finite mask sentinel (no NaN rows on fully-masked queries)
_ROW_ALIGN = 16        # bf16 sublane packing: keep every matrix 16-row aligned in the blob


def _round_up(x, m):
    return (x + m - 1) // m * m


def _layer_norm(x, gamma, beta):
    mean = jnp.mean(x, axis=-1, keepdims=True)
    var = jnp.mean((x - mean) ** 2, axis=-1, keepdims=True)
    return (x - mean) * jax.lax.rsqrt(var + LN_EPS) * gamma + beta


# ==========================================================================
# Kernel: one grid step == one (batch element, decoder layer)
# ==========================================================================
def _tri_layer_kernel(c_ref, a_ref, v_ref, avt_ref, cmask_ref, vec_ref, *rest,
                      widths, w_layout, v_layout, H):
    wrefs = dict(zip(widths, rest))     # width -> (1, R, width) bf16 weight blob ref
    out_ref = rest[-1]

    def wt(name):                       # bf16 weight tile, read at point of use
        wd, off, r = w_layout[name]
        return wrefs[wd][0, off:off + r, :]

    def vec(name):                      # (1, d) f32 bias / LayerNorm vector
        row, d = v_layout[name]
        return vec_ref[0, row:row + 1, :d]

    def softmax(s):
        m = jnp.max(s, axis=-1, keepdims=True)
        e = jnp.exp(s - m)
        return e * pl.reciprocal(jnp.sum(e, axis=-1, keepdims=True), approx=True)

    def mha(xq_bf, kv_bf, bias, p):
        # Wq / bq already carry the 1/sqrt(dk) factor (folded at pack time).
        q = jnp.dot(xq_bf, wt(p + 'wq'), preferred_element_type=jnp.float32) + vec(p + 'bq')
        k = jnp.dot(kv_bf, wt(p + 'wk'), preferred_element_type=jnp.float32) + vec(p + 'bk')
        v = jnp.dot(kv_bf, wt(p + 'wv'), preferred_element_type=jnp.float32) + vec(p + 'bv')
        dm = q.shape[-1]
        dk = dm // H
        # single f32->bf16 cast per tensor, hoisted out of the head loop
        qb = q.astype(jnp.bfloat16)
        kb = k.astype(jnp.bfloat16)
        vb = v.astype(jnp.bfloat16)
        out = vec(p + 'bo')             # (1, Dq), broadcasts over rows
        for h in range(H):              # static unroll; per-head scores / softmax / ctx
            sl = slice(h * dk, (h + 1) * dk)
            s = jax.lax.dot_general(qb[:, sl], kb[:, sl], (((1,), (1,)), ((), ())),
                                    preferred_element_type=jnp.float32)
            if bias is not None:
                s = s + bias
            a = softmax(s)
            ctx = jnp.dot(a.astype(jnp.bfloat16), vb[:, sl],
                          preferred_element_type=jnp.float32)
            # concat(heads) @ Wo == sum_h ctx_h @ Wo_rows_h  (Wo pre-split per head)
            out = out + jnp.dot(ctx.astype(jnp.bfloat16), wt(p + 'wo%d' % h),
                                preferred_element_type=jnp.float32)
        return out

    n = pl.program_id(1)

    @pl.when(n == 0)
    def _():                            # seed the carried caption state at layer 0
        out_ref[0] = c_ref[0]

    C = out_ref[0]                      # (Sc, Dc) f32, VMEM-resident across all N layers
    a_mem = a_ref[0]                    # memories arrive pre-cast to bf16
    v_mem = v_ref[0]
    avt_mem = avt_ref[0]
    # additive mask bias computed once per layer (hoisted out of the head loop)
    mbias = jnp.where(cmask_ref[0] == 0.0, NEG_INF, 0.0)

    # 1) masked self-attention residual (K/V source = LN(C) itself)
    xn = _layer_norm(C, vec('self_ln_g'), vec('self_ln_b')).astype(jnp.bfloat16)
    C = C + mha(xn, xn, mbias, 'self_')

    # 2-4) cross-attention residuals (no mask), all from the same post-self-att C
    def cross(mem_bf, p):
        xq = _layer_norm(C, vec(p + 'ln_g'), vec(p + 'ln_b')).astype(jnp.bfloat16)
        return C + mha(xq, mem_bf, None, p)

    Cavt = cross(avt_mem, 'avt_')
    Ca = cross(a_mem, 'a_')
    Cv = cross(v_mem, 'v_')

    # 5) bridge: ReLU(Linear(LayerNorm(concat([Cv, Cavt, Ca])))) without the concat:
    #    joint centered LN stats over the three parts, weight pre-split in 3 row blocks.
    parts = (Cv, Cavt, Ca)
    d3 = sum(t.shape[-1] for t in parts)
    mu = sum(jnp.sum(t, axis=-1, keepdims=True) for t in parts) / d3
    var = sum(jnp.sum((t - mu) ** 2, axis=-1, keepdims=True) for t in parts) / d3
    inv = jax.lax.rsqrt(var + LN_EPS)
    Cb = vec('bridge_b')
    for i, t in enumerate(parts):
        tn = (t - mu) * inv * vec('bridge_g%d' % i) + vec('bridge_beta%d' % i)
        Cb = Cb + jnp.dot(tn.astype(jnp.bfloat16), wt('bridge_w%d' % i),
                          preferred_element_type=jnp.float32)
    Cb = jnp.maximum(Cb, 0.0)

    # 6) position-wise FFN residual
    xn = _layer_norm(Cb, vec('ffn_ln_g'), vec('ffn_ln_b')).astype(jnp.bfloat16)
    hid = jnp.maximum(jnp.dot(xn, wt('ffn_w1'), preferred_element_type=jnp.float32)
                      + vec('ffn_b1'), 0.0)
    C = Cb + jnp.dot(hid.astype(jnp.bfloat16), wt('ffn_w2'),
                     preferred_element_type=jnp.float32) + vec('ffn_b2')

    out_ref[0] = C                      # flushed to HBM only when the batch index changes


# ==========================================================================
# Wrapper
# ==========================================================================
def tri_model_decoder(x, masks, packed, *, H):
    """x = (C, (A, V, AVT)); returns C after the N-layer decoder stack."""
    C, (A, V, AVT) = x
    cmask = masks['C_mask']
    B, Sc, Dc = C.shape
    Sa, Da = A.shape[1:]
    Sv, Dv = V.shape[1:]
    Savt, Davt = AVT.shape[1:]

    vec_blob = packed['vec']            # (N, n_vec, Vpad) f32
    w_blobs = packed['w']               # width -> (N, R, width) bf16
    widths = tuple(sorted(w_blobs))
    N = vec_blob.shape[0]
    Dm = packed['v_layout']['self_bq'][1]
    Dff = packed['v_layout']['ffn_b1'][1]

    # memories only ever feed bf16 MXU operands -> cast once here (halves their DMA,
    # zero precision change vs. casting inside the kernel).
    A_bf = A.astype(jnp.bfloat16)
    V_bf = V.astype(jnp.bfloat16)
    AVT_bf = AVT.astype(jnp.bfloat16)

    def act_spec(arr):                  # per-batch blocks, resident across the N axis
        _, s1, s2 = arr.shape
        return pl.BlockSpec((1, s1, s2), lambda b, n: (b, 0, 0))

    def layer_spec(arr):                # per-layer blocks, streamed along the N axis
        _, s1, s2 = arr.shape
        return pl.BlockSpec((1, s1, s2), lambda b, n: (n, 0, 0))

    kernel = functools.partial(_tri_layer_kernel, widths=widths,
                               w_layout=packed['w_layout'],
                               v_layout=packed['v_layout'], H=H)

    # ---- advisory cost estimate (matmul flops, softmax exps, HBM traffic) ----
    def mha_flops(Sk, Dkv):
        return 2 * (Sc * Dc * Dm + 2 * Sk * Dkv * Dm + 2 * Sc * Sk * Dm + Sc * Dm * Dc)
    per_layer = (mha_flops(Sc, Dc) + mha_flops(Savt, Davt) + mha_flops(Sa, Da)
                 + mha_flops(Sv, Dv) + 2 * Sc * 3 * Dc * Dc + 4 * Sc * Dc * Dff)
    def nbytes(a):
        return int(a.size) * a.dtype.itemsize
    bytes_accessed = (nbytes(C) + nbytes(A_bf) + nbytes(V_bf) + nbytes(AVT_bf)
                      + nbytes(cmask) + B * Sc * Dc * 4
                      + B * (nbytes(vec_blob) + sum(nbytes(w_blobs[w]) for w in widths)))
    cost = pl.CostEstimate(flops=int(B * N * per_layer),
                           transcendentals=int(B * N * H * Sc * (Sc + Sa + Sv + Savt)),
                           bytes_accessed=int(bytes_accessed))

    return pl.pallas_call(
        kernel,
        out_shape=jax.ShapeDtypeStruct((B, Sc, Dc), jnp.float32),
        grid=(B, N),
        in_specs=[act_spec(C), act_spec(A_bf), act_spec(V_bf), act_spec(AVT_bf),
                  act_spec(cmask), layer_spec(vec_blob)]
                 + [layer_spec(w_blobs[w]) for w in widths],
        out_specs=pl.BlockSpec((1, Sc, Dc), lambda b, n: (b, 0, 0)),
        compiler_params=pltpu.CompilerParams(
            dimension_semantics=("parallel", "arbitrary"),   # batch || , layer carry
            vmem_limit_bytes=48 * 1024 * 1024),              # headroom under v7x's 64 MiB
        cost_estimate=cost,
    )(C, A_bf, V_bf, AVT_bf, cmask, vec_blob, *[w_blobs[w] for w in widths])


# ==========================================================================
# Parameter init (PyTorch-Linear-style uniform) and packing
# ==========================================================================
def _init_linear(key, din, dout):
    kw, kb = jax.random.split(key)
    bound = 1.0 / math.sqrt(din)
    w = jax.random.uniform(kw, (din, dout), jnp.float32, -bound, bound)
    b = jax.random.uniform(kb, (1, dout), jnp.float32, -bound, bound)
    return w, b


def init_mha(key, d_q, d_kv, d_model):
    ks = jax.random.split(key, 4)
    wq, bq = _init_linear(ks[0], d_q, d_model)
    wk, bk = _init_linear(ks[1], d_kv, d_model)
    wv, bv = _init_linear(ks[2], d_kv, d_model)
    wo, bo = _init_linear(ks[3], d_model, d_q)
    return dict(ln_g=jnp.ones((1, d_q), jnp.float32), ln_b=jnp.zeros((1, d_q), jnp.float32),
                wq=wq, bq=bq, wk=wk, bk=bk, wv=wv, bv=bv, wo=wo, bo=bo)


def init_layer(key, d_avt, d_a, d_v, d_c, d_model, H, d_ff):
    ks = jax.random.split(key, 7)
    wb, bb = _init_linear(ks[4], 3 * d_c, d_c)
    w1, b1 = _init_linear(ks[5], d_c, d_ff)
    w2, b2 = _init_linear(ks[6], d_ff, d_c)
    return dict(
        self_att=init_mha(ks[0], d_c, d_c, d_model),
        enc_avt=init_mha(ks[1], d_c, d_avt, d_model),
        enc_a=init_mha(ks[2], d_c, d_a, d_model),
        enc_v=init_mha(ks[3], d_c, d_v, d_model),
        bridge=dict(w=wb, b=bb,
                    g=jnp.ones((1, 3 * d_c), jnp.float32),
                    beta=jnp.zeros((1, 3 * d_c), jnp.float32)),
        ffn=dict(ln_g=jnp.ones((1, d_c), jnp.float32),
                 ln_b=jnp.zeros((1, d_c), jnp.float32),
                 w1=w1, b1=b1, w2=w2, b2=b2),
    )


_MHA_PREFIX = (('self_att', 'self_'), ('enc_avt', 'avt_'), ('enc_a', 'a_'), ('enc_v', 'v_'))


def _layer_entries(lp, H, d_model, d_c):
    """Flatten one layer into ordered (name, array) weight / vector lists, folding
    1/sqrt(dk) into Wq/bq and pre-splitting Wo per head and bridge W/gamma/beta per part."""
    dk = d_model // H
    scale = 1.0 / math.sqrt(dk)
    weights, vectors = [], []
    for mod, p in _MHA_PREFIX:
        m = lp[mod]
        vectors += [(p + 'ln_g', m['ln_g']), (p + 'ln_b', m['ln_b']),
                    (p + 'bq', m['bq'] * scale), (p + 'bk', m['bk']),
                    (p + 'bv', m['bv']), (p + 'bo', m['bo'])]
        weights += [(p + 'wq', m['wq'] * scale), (p + 'wk', m['wk']), (p + 'wv', m['wv'])]
        weights += [(p + 'wo%d' % h, m['wo'][h * dk:(h + 1) * dk, :]) for h in range(H)]
    br = lp['bridge']
    for i in range(3):
        weights.append(('bridge_w%d' % i, br['w'][i * d_c:(i + 1) * d_c, :]))
        vectors.append(('bridge_g%d' % i, br['g'][:, i * d_c:(i + 1) * d_c]))
        vectors.append(('bridge_beta%d' % i, br['beta'][:, i * d_c:(i + 1) * d_c]))
    vectors.append(('bridge_b', br['b']))
    f = lp['ffn']
    weights += [('ffn_w1', f['w1']), ('ffn_w2', f['w2'])]
    vectors += [('ffn_ln_g', f['ln_g']), ('ffn_ln_b', f['ln_b']),
                ('ffn_b1', f['b1']), ('ffn_b2', f['b2'])]
    return weights, vectors


def pack_layers(layer_params, *, H, d_model, d_c):
    """Pack N per-layer param trees into streamable blobs:
       * one bf16 weight blob per distinct output width (16-row-aligned matrices)
       * one f32 blob holding every bias / LN vector as its own lane-padded row."""
    per_layer = [_layer_entries(lp, H, d_model, d_c) for lp in layer_params]

    # static weight layout: name -> (width, row_offset, rows)
    w_layout, row_count = {}, {}
    for name, arr in per_layer[0][0]:
        r, c = arr.shape
        off = row_count.get(c, 0)
        w_layout[name] = (c, off, r)
        row_count[c] = off + _round_up(r, _ROW_ALIGN)

    # static vector layout: name -> (row, length)
    vpad = _round_up(max(a.size for _, a in per_layer[0][1]), 128)
    v_layout = {name: (i, int(arr.size)) for i, (name, arr) in enumerate(per_layer[0][1])}

    def pack_one(entries):
        wl, vl = entries
        blobs = {}
        for width, total in row_count.items():
            blob = jnp.zeros((total, width), jnp.float32)
            for name, arr in wl:
                wd, off, r = w_layout[name]
                if wd == width:
                    blob = blob.at[off:off + r, :].set(arr)
            blobs[width] = blob.astype(jnp.bfloat16)
        vecb = jnp.zeros((len(vl), vpad), jnp.float32)
        for i, (_, arr) in enumerate(vl):
            vecb = vecb.at[i, :arr.size].set(arr.reshape(-1))
        return blobs, vecb

    packed_per_layer = [pack_one(e) for e in per_layer]
    w_blobs = {width: jnp.stack([p[0][width] for p in packed_per_layer], axis=0)
               for width in row_count}
    vec_blob = jnp.stack([p[1] for p in packed_per_layer], axis=0)
    return dict(w=w_blobs, vec=vec_blob, w_layout=w_layout, v_layout=v_layout)


# ==========================================================================
# Pure-JAX f32 reference (mirrors the PyTorch module), per batch element
# ==========================================================================
def _ref_mha(xq, kv, mask, p, H):
    dk = p['wq'].shape[1] // H
    scale = 1.0 / math.sqrt(dk)
    Q = (xq @ p['wq'] + p['bq']) * scale
    K = kv @ p['wk'] + p['bk']
    V = kv @ p['wv'] + p['bv']
    outs = []
    for h in range(H):
        sl = slice(h * dk, (h + 1) * dk)
        s = Q[:, sl] @ K[:, sl].T
        if mask is not None:
            s = jnp.where(mask == 0, NEG_INF, s)
        outs.append(jax.nn.softmax(s, axis=-1) @ V[:, sl])
    return jnp.concatenate(outs, axis=-1) @ p['wo'] + p['bo']


def _ref_layer(C, A, V, AVT, cmask, lp, H):
    p = lp['self_att']
    xn = _layer_norm(C, p['ln_g'], p['ln_b'])
    C = C + _ref_mha(xn, xn, cmask, p, H)

    def cross(mem, p):
        xq = _layer_norm(C, p['ln_g'], p['ln_b'])
        return C + _ref_mha(xq, mem, None, p, H)

    Cavt = cross(AVT, lp['enc_avt'])
    Ca = cross(A, lp['enc_a'])
    Cv = cross(V, lp['enc_v'])

    br = lp['bridge']
    cat = jnp.concatenate([Cv, Cavt, Ca], axis=-1)
    Cb = jnp.maximum(_layer_norm(cat, br['g'], br['beta']) @ br['w'] + br['b'], 0.0)

    f = lp['ffn']
    h = jnp.maximum(_layer_norm(Cb, f['ln_g'], f['ln_b']) @ f['w1'] + f['b1'], 0.0)
    return Cb + h @ f['w2'] + f['b2']


def ref_decoder(C, A, V, AVT, cmask, layer_params, H):
    for lp in layer_params:
        C = _ref_layer(C, A, V, AVT, cmask, lp, H)
    return C


# ==========================================================================
# Demo
# ==========================================================================
if __name__ == "__main__":
    d_raw_caps = 32   # == d_model_AVT
    d_model_A = 24
    d_model_V = 28
    d_model_C = 32
    d_model = 32
    H = 4
    N = 2
    d_ff_C = 64

    B, Sc, Sa, Sv, Savt = 2, 8, 8, 8, 8

    key = jax.random.PRNGKey(0)
    k_c, k_a, k_v, k_avt, k_p = jax.random.split(key, 5)

    C = jax.random.normal(k_c, (B, Sc, d_model_C), jnp.float32)
    A = jax.random.normal(k_a, (B, Sa, d_model_A), jnp.float32)
    V = jax.random.normal(k_v, (B, Sv, d_model_V), jnp.float32)
    AVT = jax.random.normal(k_avt, (B, Savt, d_raw_caps), jnp.float32)

    # causal caption mask, (B, Sc, Sc)
    C_mask = jnp.broadcast_to(jnp.tril(jnp.ones((Sc, Sc), jnp.float32)), (B, Sc, Sc))
    masks = dict(C_mask=C_mask)

    layer_params = [
        init_layer(k, d_raw_caps, d_model_A, d_model_V, d_model_C, d_model, H, d_ff_C)
        for k in jax.random.split(k_p, N)
    ]
    packed = pack_layers(layer_params, H=H, d_model=d_model, d_c=d_model_C)

    out = tri_model_decoder((C, (A, V, AVT)), masks, packed, H=H)
    out = jax.block_until_ready(out)

    assert out.shape == (B, Sc, d_model_C)
    assert bool(jnp.all(jnp.isfinite(out)))

    # cross-check vs the f32 reference (kernel uses bf16 matmul operands + approx
    # reciprocal in softmax, so allow a generous tolerance)
    ref = jnp.stack([ref_decoder(C[b], A[b], V[b], AVT[b], C_mask[b], layer_params, H)
                     for b in range(B)])
    max_diff = float(jnp.max(jnp.abs(out - ref)))
    assert max_diff < 0.5, f"mismatch vs reference: {max_diff}"

    print("KERNEL_OK")
</pallas_src>

<mosaic_0001>
module attributes {stable_mosaic.version = 11 : i64} {
  func.func @_tri_layer_kernel(%arg0: i32, %arg1: i32, %arg2: memref<1x8x32xf32, #tpu.memory_space<vmem>>, %arg3: memref<1x8x24xbf16, #tpu.memory_space<vmem>>, %arg4: memref<1x8x28xbf16, #tpu.memory_space<vmem>>, %arg5: memref<1x8x32xbf16, #tpu.memory_space<vmem>>, %arg6: memref<1x8x8xf32, #tpu.memory_space<vmem>>, %arg7: memref<1x35x128xf32, #tpu.memory_space<vmem>>, %arg8: memref<1x800x32xbf16, #tpu.memory_space<vmem>>, %arg9: memref<1x32x64xbf16, #tpu.memory_space<vmem>>, %arg10: memref<1x8x32xf32, #tpu.memory_space<vmem>>) attributes {dimension_semantics = [#tpu.dimension_semantics<parallel>, #tpu.dimension_semantics<arbitrary>], iteration_bounds = array<i64: 2, 2>, scalar_prefetch = 0 : i64, scratch_operands = 0 : i64, tpu.core_type = #tpu.core_type<tc>, window_params = [{transform_indices = @transform_0, window_bounds = array<i64: 1, 8, 32>}, {transform_indices = @transform_1, window_bounds = array<i64: 1, 8, 24>}, {transform_indices = @transform_2, window_bounds = array<i64: 1, 8, 28>}, {transform_indices = @transform_3, window_bounds = array<i64: 1, 8, 32>}, {transform_indices = @transform_4, window_bounds = array<i64: 1, 8, 8>}, {transform_indices = @transform_5, window_bounds = array<i64: 1, 35, 128>}, {transform_indices = @transform_6, window_bounds = array<i64: 1, 800, 32>}, {transform_indices = @transform_7, window_bounds = array<i64: 1, 32, 64>}, {transform_indices = @transform_8, window_bounds = array<i64: 1, 8, 32>}]} {
    %c0_i32 = arith.constant 0 : i32
    %0 = arith.cmpi eq, %arg1, %c0_i32 : i32
    %1 = arith.extui %0 : i1 to i32
    %c0_i32_0 = arith.constant 0 : i32
    %2 = arith.cmpi ne, %1, %c0_i32_0 : i32
    scf.if %2 {
      %c0_295 = arith.constant 0 : index
      %c0_296 = arith.constant 0 : index
      %c0_297 = arith.constant 0 : index
      %718 = vector.load %arg2[%c0_295, %c0_296, %c0_297] : memref<1x8x32xf32, #tpu.memory_space<vmem>>, vector<1x8x32xf32>
      %719 = vector.shape_cast %718 : vector<1x8x32xf32> to vector<8x32xf32>
      %c0_298 = arith.constant 0 : index
      %c0_299 = arith.constant 0 : index
      %c0_300 = arith.constant 0 : index
      %720 = vector.load %arg10[%c0_298, %c0_299, %c0_300] : memref<1x8x32xf32, #tpu.memory_space<vmem>>, vector<1x8x32xf32>
      %721 = vector.shape_cast %720 : vector<1x8x32xf32> to vector<8x32xf32>
      %722 = vector.shape_cast %719 : vector<8x32xf32> to vector<1x8x32xf32>
      tpu.vector_store %arg10[%c0_298, %c0_299, %c0_300], %722 {strides = array<i32>} : memref<1x8x32xf32, #tpu.memory_space<vmem>>, vector<1x8x32xf32>,
    } else {
    }
    %c0 = arith.constant 0 : index
    %c0_1 = arith.constant 0 : index
    %c0_2 = arith.constant 0 : index
    %3 = vector.load %arg10[%c0, %c0_1, %c0_2] : memref<1x8x32xf32, #tpu.memory_space<vmem>>, vector<1x8x32xf32>
    %4 = vector.shape_cast %3 : vector<1x8x32xf32> to vector<8x32xf32>
    %c0_3 = arith.constant 0 : index
    %c0_4 = arith.constant 0 : index
    %c0_5 = arith.constant 0 : index
    %5 = vector.load %arg3[%c0_3, %c0_4, %c0_5] : memref<1x8x24xbf16, #tpu.memory_space<vmem>>, vector<1x8x24xbf16>
    %6 = vector.shape_cast %5 : vector<1x8x24xbf16> to vector<8x24xbf16>
    %c0_6 = arith.constant 0 : index
    %c0_7 = arith.constant 0 : index
    %c0_8 = arith.constant 0 : index
    %7 = vector.load %arg4[%c0_6, %c0_7, %c0_8] : memref<1x8x28xbf16, #tpu.memory_space<vmem>>, vector<1x8x28xbf16>
    %8 = vector.shape_cast %7 : vector<1x8x28xbf16> to vector<8x28xbf16>
    %c0_9 = arith.constant 0 : index
    %c0_10 = arith.constant 0 : index
    %c0_11 = arith.constant 0 : index
    %9 = vector.load %arg5[%c0_9, %c0_10, %c0_11] : memref<1x8x32xbf16, #tpu.memory_space<vmem>>, vector<1x8x32xbf16>
    %10 = vector.shape_cast %9 : vector<1x8x32xbf16> to vector<8x32xbf16>
    %c0_12 = arith.constant 0 : index
    %c0_13 = arith.constant 0 : index
    %c0_14 = arith.constant 0 : index
    %11 = vector.load %arg6[%c0_12, %c0_13, %c0_14] : memref<1x8x8xf32, #tpu.memory_space<vmem>>, vector<1x8x8xf32>
    %12 = vector.shape_cast %11 : vector<1x8x8xf32> to vector<8x8xf32>
    %cst = arith.constant 0.000000e+00 : f32
    %13 = vector.broadcast %cst : f32 to vector<8x8xf32>
    %14 = arith.cmpf oeq, %12, %13 : vector<8x8xf32>
    %cst_15 = arith.constant -1.000000e+30 : f32
    %cst_16 = arith.constant 0.000000e+00 : f32
    %15 = vector.broadcast %cst_15 : f32 to vector<8x8xf32>
    %16 = vector.broadcast %cst_16 : f32 to vector<8x8xf32>
    %17 = arith.select %14, %15, %16 : vector<8x8xi1>, vector<8x8xf32>
    %c0_17 = arith.constant 0 : index
    %c0_18 = arith.constant 0 : index
    %c0_19 = arith.constant 0 : index
    %18 = vector.load %arg7[%c0_17, %c0_18, %c0_19] : memref<1x35x128xf32, #tpu.memory_space<vmem>>, vector<1x1x32xf32>
    %19 = vector.shape_cast %18 : vector<1x1x32xf32> to vector<1x32xf32>
    %c0_20 = arith.constant 0 : index
    %c1 = arith.constant 1 : index
    %c0_21 = arith.constant 0 : index
    %20 = vector.load %arg7[%c0_20, %c1, %c0_21] : memref<1x35x128xf32, #tpu.memory_space<vmem>>, vector<1x1x32xf32>
    %21 = vector.shape_cast %20 : vector<1x1x32xf32> to vector<1x32xf32>
    %cst_22 = arith.constant dense<0.000000e+00> : vector<8xf32>
    %22 = vector.multi_reduction <add>, %4, %cst_22 [1] : vector<8x32xf32> to vector<8xf32>
    %23 = vector.shape_cast %22 : vector<8xf32> to vector<8x1xf32>
    %cst_23 = arith.constant 3.200000e+01 : f32
    %24 = vector.broadcast %cst_23 : f32 to vector<8x1xf32>
    %25 = arith.divf %23, %24 : vector<8x1xf32>
    %26 = vector.broadcast %25 : vector<8x1xf32> to vector<8x32xf32>
    %27 = arith.subf %4, %26 : vector<8x32xf32>
    %28 = arith.mulf %27, %27 : vector<8x32xf32>
    %cst_24 = arith.constant dense<0.000000e+00> : vector<8xf32>
    %29 = vector.multi_reduction <add>, %28, %cst_24 [1] : vector<8x32xf32> to vector<8xf32>
    %30 = vector.shape_cast %29 : vector<8xf32> to vector<8x1xf32>
    %cst_25 = arith.constant 3.200000e+01 : f32
    %31 = vector.broadcast %cst_25 : f32 to vector<8x1xf32>
    %32 = arith.divf %30, %31 : vector<8x1xf32>
    %33 = vector.broadcast %25 : vector<8x1xf32> to vector<8x32xf32>
    %34 = arith.subf %4, %33 : vector<8x32xf32>
    %cst_26 = arith.constant 9.99999974E-6 : f32
    %35 = vector.broadcast %cst_26 : f32 to vector<8x1xf32>
    %36 = arith.addf %32, %35 : vector<8x1xf32>
    %37 = math.rsqrt %36 : vector<8x1xf32>
    %38 = vector.broadcast %37 : vector<8x1xf32> to vector<8x32xf32>
    %39 = arith.mulf %34, %38 : vector<8x32xf32>
    %40 = vector.broadcast %19 : vector<1x32xf32> to vector<8x32xf32>
    %41 = arith.mulf %39, %40 : vector<8x32xf32>
    %42 = vector.broadcast %21 : vector<1x32xf32> to vector<8x32xf32>
    %43 = arith.addf %41, %42 : vector<8x32xf32>
    %44 = arith.truncf %43 : vector<8x32xf32> to vector<8x32xbf16>
    %c0_27 = arith.constant 0 : index
    %c0_28 = arith.constant 0 : index
    %c0_29 = arith.constant 0 : index
    %45 = vector.load %arg8[%c0_27, %c0_28, %c0_29] : memref<1x800x32xbf16, #tpu.memory_space<vmem>>, vector<1x32x32xbf16>
    %46 = vector.shape_cast %45 : vector<1x32x32xbf16> to vector<32x32xbf16>
    %cst_30 = arith.constant dense<0.000000e+00> : vector<8x32xf32>
    %47 = tpu.matmul %44, %46, %cst_30 {dimension_numbers = #tpu.dot_dimension_numbers<[1], [0], [0], [1], [0, 0, 1, 1], [], []>} : vector<8x32xbf16>, vector<32x32xbf16>, vector<8x32xf32> -> vector<8x32xf32>
    %c0_31 = arith.constant 0 : index
    %c2 = arith.constant 2 : index
    %c0_32 = arith.constant 0 : index
    %48 = vector.load %arg7[%c0_31, %c2, %c0_32] : memref<1x35x128xf32, #tpu.memory_space<vmem>>, vector<1x1x32xf32>
    %49 = vector.shape_cast %48 : vector<1x1x32xf32> to vector<1x32xf32>
    %50 = vector.broadcast %49 : vector<1x32xf32> to vector<8x32xf32>
    %51 = arith.addf %47, %50 : vector<8x32xf32>
    %c0_33 = arith.constant 0 : index
    %c32 = arith.constant 32 : index
    %c0_34 = arith.constant 0 : index
    %52 = vector.load %arg8[%c0_33, %c32, %c0_34] : memref<1x800x32xbf16, #tpu.memory_space<vmem>>, vector<1x32x32xbf16>
    %53 = vector.shape_cast %52 : vector<1x32x32xbf16> to vector<32x32xbf16>
    %cst_35 = arith.constant dense<0.000000e+00> : vector<8x32xf32>
    %54 = tpu.matmul %44, %53, %cst_35 {dimension_numbers = #tpu.dot_dimension_numbers<[1], [0], [0], [1], [0, 0, 1, 1], [], []>} : vector<8x32xbf16>, vector<32x32xbf16>, vector<8x32xf32> -> vector<8x32xf32>
    %c0_36 = arith.constant 0 : index
    %c3 = arith.constant 3 : index
    %c0_37 = arith.constant 0 : index
    %55 = vector.load %arg7[%c0_36, %c3, %c0_37] : memref<1x35x128xf32, #tpu.memory_space<vmem>>, vector<1x1x32xf32>
    %56 = vector.shape_cast %55 : vector<1x1x32xf32> to vector<1x32xf32>
    %57 = vector.broadcast %56 : vector<1x32xf32> to vector<8x32xf32>
    %58 = arith.addf %54, %57 : vector<8x32xf32>
    %c0_38 = arith.constant 0 : index
    %c64 = arith.constant 64 : index
    %c0_39 = arith.constant 0 : index
    %59 = vector.load %arg8[%c0_38, %c64, %c0_39] : memref<1x800x32xbf16, #tpu.memory_space<vmem>>, vector<1x32x32xbf16>
    %60 = vector.shape_cast %59 : vector<1x32x32xbf16> to vector<32x32xbf16>
    %cst_40 = arith.constant dense<0.000000e+00> : vector<8x32xf32>
    %61 = tpu.matmul %44, %60, %cst_40 {dimension_numbers = #tpu.dot_dimension_numbers<[1], [0], [0], [1], [0, 0, 1, 1], [], []>} : vector<8x32xbf16>, vector<32x32xbf16>, vector<8x32xf32> -> vector<8x32xf32>
    %c0_41 = arith.constant 0 : index
    %c4 = arith.constant 4 : index
    %c0_42 = arith.constant 0 : index
    %62 = vector.load %arg7[%c0_41, %c4, %c0_42] : memref<1x35x128xf32, #tpu.memory_space<vmem>>, vector<1x1x32xf32>
    %63 = vector.shape_cast %62 : vector<1x1x32xf32> to vector<1x32xf32>
    %64 = vector.broadcast %63 : vector<1x32xf32> to vector<8x32xf32>
    %65 = arith.addf %61, %64 : vector<8x32xf32>
    %66 = arith.truncf %51 : vector<8x32xf32> to vector<8x32xbf16>
    %67 = arith.truncf %58 : vector<8x32xf32> to vector<8x32xbf16>
    %68 = arith.truncf %65 : vector<8x32xf32> to vector<8x32xbf16>
    %c0_43 = arith.constant 0 : index
    %c5 = arith.constant 5 : index
    %c0_44 = arith.constant 0 : index
    %69 = vector.load %arg7[%c0_43, %c5, %c0_44] : memref<1x35x128xf32, #tpu.memory_space<vmem>>, vector<1x1x32xf32>
    %70 = vector.shape_cast %69 : vector<1x1x32xf32> to vector<1x32xf32>
    %71 = vector.extract_strided_slice %66 {offsets = [0, 0], sizes = [8, 8], strides = [1, 1]} : vector<8x32xbf16> to vector<8x8xbf16>
    %72 = vector.extract_strided_slice %67 {offsets = [0, 0], sizes = [8, 8], strides = [1, 1]} : vector<8x32xbf16> to vector<8x8xbf16>
    %cst_45 = arith.constant dense<0.000000e+00> : vector<8x8xf32>
    %73 = tpu.matmul %71, %72, %cst_45 {dimension_numbers = #tpu.dot_dimension_numbers<[1], [1], [0], [0], [0, 0, 1, 0], [], []>} : vector<8x8xbf16>, vector<8x8xbf16>, vector<8x8xf32> -> vector<8x8xf32>
    %74 = arith.addf %73, %17 : vector<8x8xf32>
    %cst_46 = arith.constant dense<0xFF800000> : vector<8xf32>
    %75 = vector.multi_reduction <maximumf>, %74, %cst_46 [1] : vector<8x8xf32> to vector<8xf32>
    %76 = vector.shape_cast %75 : vector<8xf32> to vector<8x1xf32>
    %77 = vector.broadcast %76 : vector<8x1xf32> to vector<8x8xf32>
    %78 = arith.subf %74, %77 : vector<8x8xf32>
    %79 = math.exp %78 : vector<8x8xf32>
    %cst_47 = arith.constant dense<0.000000e+00> : vector<8xf32>
    %80 = vector.multi_reduction <add>, %79, %cst_47 [1] : vector<8x8xf32> to vector<8xf32>
    %81 = vector.shape_cast %80 : vector<8xf32> to vector<8x1xf32>
    %82 = tpu.reciprocal %81 {approx = true} : vector<8x1xf32> -> vector<8x1xf32>
    %83 = vector.broadcast %82 : vector<8x1xf32> to vector<8x8xf32>
    %84 = arith.mulf %79, %83 : vector<8x8xf32>
    %85 = arith.truncf %84 : vector<8x8xf32> to vector<8x8xbf16>
    %86 = vector.extract_strided_slice %68 {offsets = [0, 0], sizes = [8, 8], strides = [1, 1]} : vector<8x32xbf16> to vector<8x8xbf16>
    %cst_48 = arith.constant dense<0.000000e+00> : vector<8x8xf32>
    %87 = tpu.matmul %85, %86, %cst_48 {dimension_numbers = #tpu.dot_dimension_numbers<[1], [0], [0], [1], [0, 0, 1, 1], [], []>} : vector<8x8xbf16>, vector<8x8xbf16>, vector<8x8xf32> -> vector<8x8xf32>
    %88 = arith.truncf %87 : vector<8x8xf32> to vector<8x8xbf16>
    %c0_49 = arith.constant 0 : index
    %c96 = arith.constant 96 : index
    %c0_50 = arith.constant 0 : index
    %89 = vector.load %arg8[%c0_49, %c96, %c0_50] : memref<1x800x32xbf16, #tpu.memory_space<vmem>>, vector<1x8x32xbf16>
    %90 = vector.shape_cast %89 : vector<1x8x32xbf16> to vector<8x32xbf16>
    %cst_51 = arith.constant dense<0.000000e+00> : vector<8x32xf32>
    %91 = tpu.matmul %88, %90, %cst_51 {dimension_numbers = #tpu.dot_dimension_numbers<[1], [0], [0], [1], [0, 0, 1, 1], [], []>} : vector<8x8xbf16>, vector<8x32xbf16>, vector<8x32xf32> -> vector<8x32xf32>
    %92 = vector.broadcast %70 : vector<1x32xf32> to vector<8x32xf32>
    %93 = arith.addf %92, %91 : vector<8x32xf32>
    %94 = vector.extract_strided_slice %66 {offsets = [0, 8], sizes = [8, 8], strides = [1, 1]} : vector<8x32xbf16> to vector<8x8xbf16>
    %95 = vector.extract_strided_slice %67 {offsets = [0, 8], sizes = [8, 8], strides = [1, 1]} : vector<8x32xbf16> to vector<8x8xbf16>
    %cst_52 = arith.constant dense<0.000000e+00> : vector<8x8xf32>
    %96 = tpu.matmul %94, %95, %cst_52 {dimension_numbers = #tpu.dot_dimension_numbers<[1], [1], [0], [0], [0, 0, 1, 0], [], []>} : vector<8x8xbf16>, vector<8x8xbf16>, vector<8x8xf32> -> vector<8x8xf32>
    %97 = arith.addf %96, %17 : vector<8x8xf32>
    %cst_53 = arith.constant dense<0xFF800000> : vector<8xf32>
    %98 = vector.multi_reduction <maximumf>, %97, %cst_53 [1] : vector<8x8xf32> to vector<8xf32>
    %99 = vector.shape_cast %98 : vector<8xf32> to vector<8x1xf32>
    %100 = vector.broadcast %99 : vector<8x1xf32> to vector<8x8xf32>
    %101 = arith.subf %97, %100 : vector<8x8xf32>
    %102 = math.exp %101 : vector<8x8xf32>
    %cst_54 = arith.constant dense<0.000000e+00> : vector<8xf32>
    %103 = vector.multi_reduction <add>, %102, %cst_54 [1] : vector<8x8xf32> to vector<8xf32>
    %104 = vector.shape_cast %103 : vector<8xf32> to vector<8x1xf32>
    %105 = tpu.reciprocal %104 {approx = true} : vector<8x1xf32> -> vector<8x1xf32>
    %106 = vector.broadcast %105 : vector<8x1xf32> to vector<8x8xf32>
    %107 = arith.mulf %102, %106 : vector<8x8xf32>
    %108 = arith.truncf %107 : vector<8x8xf32> to vector<8x8xbf16>
    %109 = vector.extract_strided_slice %68 {offsets = [0, 8], sizes = [8, 8], strides = [1, 1]} : vector<8x32xbf16> to vector<8x8xbf16>
    %cst_55 = arith.constant dense<0.000000e+00> : vector<8x8xf32>
    %110 = tpu.matmul %108, %109, %cst_55 {dimension_numbers = #tpu.dot_dimension_numbers<[1], [0], [0], [1], [0, 0, 1, 1], [], []>} : vector<8x8xbf16>, vector<8x8xbf16>, vector<8x8xf32> -> vector<8x8xf32>
    %111 = arith.truncf %110 : vector<8x8xf32> to vector<8x8xbf16>
    %c0_56 = arith.constant 0 : index
    %c112 = arith.constant 112 : index
    %c0_57 = arith.constant 0 : index
    %112 = vector.load %arg8[%c0_56, %c112, %c0_57] : memref<1x800x32xbf16, #tpu.memory_space<vmem>>, vector<1x8x32xbf16>
    %113 = vector.shape_cast %112 : vector<1x8x32xbf16> to vector<8x32xbf16>
    %cst_58 = arith.constant dense<0.000000e+00> : vector<8x32xf32>
    %114 = tpu.matmul %111, %113, %cst_58 {dimension_numbers = #tpu.dot_dimension_numbers<[1], [0], [0], [1], [0, 0, 1, 1], [], []>} : vector<8x8xbf16>, vector<8x32xbf16>, vector<8x32xf32> -> vector<8x32xf32>
    %115 = arith.addf %93, %114 : vector<8x32xf32>
    %116 = vector.extract_strided_slice %66 {offsets = [0, 16], sizes = [8, 8], strides = [1, 1]} : vector<8x32xbf16> to vector<8x8xbf16>
    %117 = vector.extract_strided_slice %67 {offsets = [0, 16], sizes = [8, 8], strides = [1, 1]} : vector<8x32xbf16> to vector<8x8xbf16>
    %cst_59 = arith.constant dense<0.000000e+00> : vector<8x8xf32>
    %118 = tpu.matmul %116, %117, %cst_59 {dimension_numbers = #tpu.dot_dimension_numbers<[1], [1], [0], [0], [0, 0, 1, 0], [], []>} : vector<8x8xbf16>, vector<8x8xbf16>, vector<8x8xf32> -> vector<8x8xf32>
    %119 = arith.addf %118, %17 : vector<8x8xf32>
    %cst_60 = arith.constant dense<0xFF800000> : vector<8xf32>
    %120 = vector.multi_reduction <maximumf>, %119, %cst_60 [1] : vector<8x8xf32> to vector<8xf32>
    %121 = vector.shape_cast %120 : vector<8xf32> to vector<8x1xf32>
    %122 = vector.broadcast %121 : vector<8x1xf32> to vector<8x8xf32>
    %123 = arith.subf %119, %122 : vector<8x8xf32>
    %124 = math.exp %123 : vector<8x8xf32>
    %cst_61 = arith.constant dense<0.000000e+00> : vector<8xf32>
    %125 = vector.multi_reduction <add>, %124, %cst_61 [1] : vector<8x8xf32> to vector<8xf32>
    %126 = vector.shape_cast %125 : vector<8xf32> to vector<8x1xf32>
    %127 = tpu.reciprocal %126 {approx = true} : vector<8x1xf32> -> vector<8x1xf32>
    %128 = vector.broadcast %127 : vector<8x1xf32> to vector<8x8xf32>
    %129 = arith.mulf %124, %128 : vector<8x8xf32>
    %130 = arith.truncf %129 : vector<8x8xf32> to vector<8x8xbf16>
    %131 = vector.extract_strided_slice %68 {offsets = [0, 16], sizes = [8, 8], strides = [1, 1]} : vector<8x32xbf16> to vector<8x8xbf16>
    %cst_62 = arith.constant dense<0.000000e+00> : vector<8x8xf32>
    %132 = tpu.matmul %130, %131, %cst_62 {dimension_numbers = #tpu.dot_dimension_numbers<[1], [0], [0], [1], [0, 0, 1, 1], [], []>} : vector<8x8xbf16>, vector<8x8xbf16>, vector<8x8xf32> -> vector<8x8xf32>
    %133 = arith.truncf %132 : vector<8x8xf32> to vector<8x8xbf16>
    %c0_63 = arith.constant 0 : index
    %c128 = arith.constant 128 : index
    %c0_64 = arith.constant 0 : index
    %134 = vector.load %arg8[%c0_63, %c128, %c0_64] : memref<1x800x32xbf16, #tpu.memory_space<vmem>>, vector<1x8x32xbf16>
    %135 = vector.shape_cast %134 : vector<1x8x32xbf16> to vector<8x32xbf16>
    %cst_65 = arith.constant dense<0.000000e+00> : vector<8x32xf32>
    %136 = tpu.matmul %133, %135, %cst_65 {dimension_numbers = #tpu.dot_dimension_numbers<[1], [0], [0], [1], [0, 0, 1, 1], [], []>} : vector<8x8xbf16>, vector<8x32xbf16>, vector<8x32xf32> -> vector<8x32xf32>
    %137 = arith.addf %115, %136 : vector<8x32xf32>
    %138 = vector.extract_strided_slice %66 {offsets = [0, 24], sizes = [8, 8], strides = [1, 1]} : vector<8x32xbf16> to vector<8x8xbf16>
    %139 = vector.extract_strided_slice %67 {offsets = [0, 24], sizes = [8, 8], strides = [1, 1]} : vector<8x32xbf16> to vector<8x8xbf16>
    %cst_66 = arith.constant dense<0.000000e+00> : vector<8x8xf32>
    %140 = tpu.matmul %138, %139, %cst_66 {dimension_numbers = #tpu.dot_dimension_numbers<[1], [1], [0], [0], [0, 0, 1, 0], [], []>} : vector<8x8xbf16>, vector<8x8xbf16>, vector<8x8xf32> -> vector<8x8xf32>
    %141 = arith.addf %140, %17 : vector<8x8xf32>
    %cst_67 = arith.constant dense<0xFF800000> : vector<8xf32>
    %142 = vector.multi_reduction <maximumf>, %141, %cst_67 [1] : vector<8x8xf32> to vector<8xf32>
    %143 = vector.shape_cast %142 : vector<8xf32> to vector<8x1xf32>
    %144 = vector.broadcast %143 : vector<8x1xf32> to vector<8x8xf32>
    %145 = arith.subf %141, %144 : vector<8x8xf32>
    %146 = math.exp %145 : vector<8x8xf32>
    %cst_68 = arith.constant dense<0.000000e+00> : vector<8xf32>
    %147 = vector.multi_reduction <add>, %146, %cst_68 [1] : vector<8x8xf32> to vector<8xf32>
    %148 = vector.shape_cast %147 : vector<8xf32> to vector<8x1xf32>
    %149 = tpu.reciprocal %148 {approx = true} : vector<8x1xf32> -> vector<8x1xf32>
    %150 = vector.broadcast %149 : vector<8x1xf32> to vector<8x8xf32>
    %151 = arith.mulf %146, %150 : vector<8x8xf32>
    %152 = arith.truncf %151 : vector<8x8xf32> to vector<8x8xbf16>
    %153 = vector.extract_strided_slice %68 {offsets = [0, 24], sizes = [8, 8], strides = [1, 1]} : vector<8x32xbf16> to vector<8x8xbf16>
    %cst_69 = arith.constant dense<0.000000e+00> : vector<8x8xf32>
    %154 = tpu.matmul %152, %153, %cst_69 {dimension_numbers = #tpu.dot_dimension_numbers<[1], [0], [0], [1], [0, 0, 1, 1], [], []>} : vector<8x8xbf16>, vector<8x8xbf16>, vector<8x8xf32> -> vector<8x8xf32>
    %155 = arith.truncf %154 : vector<8x8xf32> to vector<8x8xbf16>
    %c0_70 = arith.constant 0 : index
    %c144 = arith.constant 144 : index
    %c0_71 = arith.constant 0 : index
    %156 = vector.load %arg8[%c0_70, %c144, %c0_71] : memref<1x800x32xbf16, #tpu.memory_space<vmem>>, vector<1x8x32xbf16>
    %157 = vector.shape_cast %156 : vector<1x8x32xbf16> to vector<8x32xbf16>
    %cst_72 = arith.constant dense<0.000000e+00> : vector<8x32xf32>
    %158 = tpu.matmul %155, %157, %cst_72 {dimension_numbers = #tpu.dot_dimension_numbers<[1], [0], [0], [1], [0, 0, 1, 1], [], []>} : vector<8x8xbf16>, vector<8x32xbf16>, vector<8x32xf32> -> vector<8x32xf32>
    %159 = arith.addf %137, %158 : vector<8x32xf32>
    %160 = arith.addf %4, %159 : vector<8x32xf32>
    %c0_73 = arith.constant 0 : index
    %c6 = arith.constant 6 : index
    %c0_74 = arith.constant 0 : index
    %161 = vector.load %arg7[%c0_73, %c6, %c0_74] : memref<1x35x128xf32, #tpu.memory_space<vmem>>, vector<1x1x32xf32>
    %162 = vector.shape_cast %161 : vector<1x1x32xf32> to vector<1x32xf32>
    %c0_75 = arith.constant 0 : index
    %c7 = arith.constant 7 : index
    %c0_76 = arith.constant 0 : index
    %163 = vector.load %arg7[%c0_75, %c7, %c0_76] : memref<1x35x128xf32, #tpu.memory_space<vmem>>, vector<1x1x32xf32>
    %164 = vector.shape_cast %163 : vector<1x1x32xf32> to vector<1x32xf32>
    %cst_77 = arith.constant dense<0.000000e+00> : vector<8xf32>
    %165 = vector.multi_reduction <add>, %160, %cst_77 [1] : vector<8x32xf32> to vector<8xf32>
    %166 = vector.shape_cast %165 : vector<8xf32> to vector<8x1xf32>
    %cst_78 = arith.constant 3.200000e+01 : f32
    %167 = vector.broadcast %cst_78 : f32 to vector<8x1xf32>
    %168 = arith.divf %166, %167 : vector<8x1xf32>
    %169 = vector.broadcast %168 : vector<8x1xf32> to vector<8x32xf32>
    %170 = arith.subf %160, %169 : vector<8x32xf32>
    %171 = arith.mulf %170, %170 : vector<8x32xf32>
    %cst_79 = arith.constant dense<0.000000e+00> : vector<8xf32>
    %172 = vector.multi_reduction <add>, %171, %cst_79 [1] : vector<8x32xf32> to vector<8xf32>
    %173 = vector.shape_cast %172 : vector<8xf32> to vector<8x1xf32>
    %cst_80 = arith.constant 3.200000e+01 : f32
    %174 = vector.broadcast %cst_80 : f32 to vector<8x1xf32>
    %175 = arith.divf %173, %174 : vector<8x1xf32>
    %176 = vector.broadcast %168 : vector<8x1xf32> to vector<8x32xf32>
    %177 = arith.subf %160, %176 : vector<8x32xf32>
    %cst_81 = arith.constant 9.99999974E-6 : f32
    %178 = vector.broadcast %cst_81 : f32 to vector<8x1xf32>
    %179 = arith.addf %175, %178 : vector<8x1xf32>
    %180 = math.rsqrt %179 : vector<8x1xf32>
    %181 = vector.broadcast %180 : vector<8x1xf32> to vector<8x32xf32>
    %182 = arith.mulf %177, %181 : vector<8x32xf32>
    %183 = vector.broadcast %162 : vector<1x32xf32> to vector<8x32xf32>
    %184 = arith.mulf %182, %183 : vector<8x32xf32>
    %185 = vector.broadcast %164 : vector<1x32xf32> to vector<8x32xf32>
    %186 = arith.addf %184, %185 : vector<8x32xf32>
    %187 = arith.truncf %186 : vector<8x32xf32> to vector<8x32xbf16>
    %c0_82 = arith.constant 0 : index
    %c160 = arith.constant 160 : index
    %c0_83 = arith.constant 0 : index
    %188 = vector.load %arg8[%c0_82, %c160, %c0_83] : memref<1x800x32xbf16, #tpu.memory_space<vmem>>, vector<1x32x32xbf16>
    %189 = vector.shape_cast %188 : vector<1x32x32xbf16> to vector<32x32xbf16>
    %cst_84 = arith.constant dense<0.000000e+00> : vector<8x32xf32>
    %190 = tpu.matmul %187, %189, %cst_84 {dimension_numbers = #tpu.dot_dimension_numbers<[1], [0], [0], [1], [0, 0, 1, 1], [], []>} : vector<8x32xbf16>, vector<32x32xbf16>, vector<8x32xf32> -> vector<8x32xf32>
    %c0_85 = arith.constant 0 : index
    %c8 = arith.constant 8 : index
    %c0_86 = arith.constant 0 : index
    %191 = vector.load %arg7[%c0_85, %c8, %c0_86] : memref<1x35x128xf32, #tpu.memory_space<vmem>>, vector<1x1x32xf32>
    %192 = vector.shape_cast %191 : vector<1x1x32xf32> to vector<1x32xf32>
    %193 = vector.broadcast %192 : vector<1x32xf32> to vector<8x32xf32>
    %194 = arith.addf %190, %193 : vector<8x32xf32>
    %c0_87 = arith.constant 0 : index
    %c192 = arith.constant 192 : index
    %c0_88 = arith.constant 0 : index
    %195 = vector.load %arg8[%c0_87, %c192, %c0_88] : memref<1x800x32xbf16, #tpu.memory_space<vmem>>, vector<1x32x32xbf16>
    %196 = vector.shape_cast %195 : vector<1x32x32xbf16> to vector<32x32xbf16>
    %cst_89 = arith.constant dense<0.000000e+00> : vector<8x32xf32>
    %197 = tpu.matmul %10, %196, %cst_89 {dimension_numbers = #tpu.dot_dimension_numbers<[1], [0], [0], [1], [0, 0, 1, 1], [], []>} : vector<8x32xbf16>, vector<32x32xbf16>, vector<8x32xf32> -> vector<8x32xf32>
    %c0_90 = arith.constant 0 : index
    %c9 = arith.constant 9 : index
    %c0_91 = arith.constant 0 : index
    %198 = vector.load %arg7[%c0_90, %c9, %c0_91] : memref<1x35x128xf32, #tpu.memory_space<vmem>>, vector<1x1x32xf32>
    %199 = vector.shape_cast %198 : vector<1x1x32xf32> to vector<1x32xf32>
    %200 = vector.broadcast %199 : vector<1x32xf32> to vector<8x32xf32>
    %201 = arith.addf %197, %200 : vector<8x32xf32>
    %c0_92 = arith.constant 0 : index
    %c224 = arith.constant 224 : index
    %c0_93 = arith.constant 0 : index
    %202 = vector.load %arg8[%c0_92, %c224, %c0_93] : memref<1x800x32xbf16, #tpu.memory_space<vmem>>, vector<1x32x32xbf16>
    %203 = vector.shape_cast %202 : vector<1x32x32xbf16> to vector<32x32xbf16>
    %cst_94 = arith.constant dense<0.000000e+00> : vector<8x32xf32>
    %204 = tpu.matmul %10, %203, %cst_94 {dimension_numbers = #tpu.dot_dimension_numbers<[1], [0], [0], [1], [0, 0, 1, 1], [], []>} : vector<8x32xbf16>, vector<32x32xbf16>, vector<8x32xf32> -> vector<8x32xf32>
    %c0_95 = arith.constant 0 : index
    %c10 = arith.constant 10 : index
    %c0_96 = arith.constant 0 : index
    %205 = vector.load %arg7[%c0_95, %c10, %c0_96] : memref<1x35x128xf32, #tpu.memory_space<vmem>>, vector<1x1x32xf32>
    %206 = vector.shape_cast %205 : vector<1x1x32xf32> to vector<1x32xf32>
    %207 = vector.broadcast %206 : vector<1x32xf32> to vector<8x32xf32>
    %208 = arith.addf %204, %207 : vector<8x32xf32>
    %209 = arith.truncf %194 : vector<8x32xf32> to vector<8x32xbf16>
    %210 = arith.truncf %201 : vector<8x32xf32> to vector<8x32xbf16>
    %211 = arith.truncf %208 : vector<8x32xf32> to vector<8x32xbf16>
    %c0_97 = arith.constant 0 : index
    %c11 = arith.constant 11 : index
    %c0_98 = arith.constant 0 : index
    %212 = vector.load %arg7[%c0_97, %c11, %c0_98] : memref<1x35x128xf32, #tpu.memory_space<vmem>>, vector<1x1x32xf32>
    %213 = vector.shape_cast %212 : vector<1x1x32xf32> to vector<1x32xf32>
    %214 = vector.extract_strided_slice %209 {offsets = [0, 0], sizes = [8, 8], strides = [1, 1]} : vector<8x32xbf16> to vector<8x8xbf16>
    %215 = vector.extract_strided_slice %210 {offsets = [0, 0], sizes = [8, 8], strides = [1, 1]} : vector<8x32xbf16> to vector<8x8xbf16>
    %cst_99 = arith.constant dense<0.000000e+00> : vector<8x8xf32>
    %216 = tpu.matmul %214, %215, %cst_99 {dimension_numbers = #tpu.dot_dimension_numbers<[1], [1], [0], [0], [0, 0, 1, 0], [], []>} : vector<8x8xbf16>, vector<8x8xbf16>, vector<8x8xf32> -> vector<8x8xf32>
    %cst_100 = arith.constant dense<0xFF800000> : vector<8xf32>
    %217 = vector.multi_reduction <maximumf>, %216, %cst_100 [1] : vector<8x8xf32> to vector<8xf32>
    %218 = vector.shape_cast %217 : vector<8xf32> to vector<8x1xf32>
    %219 = vector.broadcast %218 : vector<8x1xf32> to vector<8x8xf32>
    %220 = arith.subf %216, %219 : vector<8x8xf32>
    %221 = math.exp %220 : vector<8x8xf32>
    %cst_101 = arith.constant dense<0.000000e+00> : vector<8xf32>
    %222 = vector.multi_reduction <add>, %221, %cst_101 [1] : vector<8x8xf32> to vector<8xf32>
    %223 = vector.shape_cast %222 : vector<8xf32> to vector<8x1xf32>
    %224 = tpu.reciprocal %223 {approx = true} : vector<8x1xf32> -> vector<8x1xf32>
    %225 = vector.broadcast %224 : vector<8x1xf32> to vector<8x8xf32>
    %226 = arith.mulf %221, %225 : vector<8x8xf32>
    %227 = arith.truncf %226 : vector<8x8xf32> to vector<8x8xbf16>
    %228 = vector.extract_strided_slice %211 {offsets = [0, 0], sizes = [8, 8], strides = [1, 1]} : vector<8x32xbf16> to vector<8x8xbf16>
    %cst_102 = arith.constant dense<0.000000e+00> : vector<8x8xf32>
    %229 = tpu.matmul %227, %228, %cst_102 {dimension_numbers = #tpu.dot_dimension_numbers<[1], [0], [0], [1], [0, 0, 1, 1], [], []>} : vector<8x8xbf16>, vector<8x8xbf16>, vector<8x8xf32> -> vector<8x8xf32>
    %230 = arith.truncf %229 : vector<8x8xf32> to vector<8x8xbf16>
    %c0_103 = arith.constant 0 : index
    %c256 = arith.constant 256 : index
    %c0_104 = arith.constant 0 : index
    %231 = vector.load %arg8[%c0_103, %c256, %c0_104] : memref<1x800x32xbf16, #tpu.memory_space<vmem>>, vector<1x8x32xbf16>
    %232 = vector.shape_cast %231 : vector<1x8x32xbf16> to vector<8x32xbf16>
    %cst_105 = arith.constant dense<0.000000e+00> : vector<8x32xf32>
    %233 = tpu.matmul %230, %232, %cst_105 {dimension_numbers = #tpu.dot_dimension_numbers<[1], [0], [0], [1], [0, 0, 1, 1], [], []>} : vector<8x8xbf16>, vector<8x32xbf16>, vector<8x32xf32> -> vector<8x32xf32>
    %234 = vector.broadcast %213 : vector<1x32xf32> to vector<8x32xf32>
    %235 = arith.addf %234, %233 : vector<8x32xf32>
    %236 = vector.extract_strided_slice %209 {offsets = [0, 8], sizes = [8, 8], strides = [1, 1]} : vector<8x32xbf16> to vector<8x8xbf16>
    %237 = vector.extract_strided_slice %210 {offsets = [0, 8], sizes = [8, 8], strides = [1, 1]} : vector<8x32xbf16> to vector<8x8xbf16>
    %cst_106 = arith.constant dense<0.000000e+00> : vector<8x8xf32>
    %238 = tpu.matmul %236, %237, %cst_106 {dimension_numbers = #tpu.dot_dimension_numbers<[1], [1], [0], [0], [0, 0, 1, 0], [], []>} : vector<8x8xbf16>, vector<8x8xbf16>, vector<8x8xf32> -> vector<8x8xf32>
    %cst_107 = arith.constant dense<0xFF800000> : vector<8xf32>
    %239 = vector.multi_reduction <maximumf>, %238, %cst_107 [1] : vector<8x8xf32> to vector<8xf32>
    %240 = vector.shape_cast %239 : vector<8xf32> to vector<8x1xf32>
    %241 = vector.broadcast %240 : vector<8x1xf32> to vector<8x8xf32>
    %242 = arith.subf %238, %241 : vector<8x8xf32>
    %243 = math.exp %242 : vector<8x8xf32>
    %cst_108 = arith.constant dense<0.000000e+00> : vector<8xf32>
    %244 = vector.multi_reduction <add>, %243, %cst_108 [1] : vector<8x8xf32> to vector<8xf32>
    %245 = vector.shape_cast %244 : vector<8xf32> to vector<8x1xf32>
    %246 = tpu.reciprocal %245 {approx = true} : vector<8x1xf32> -> vector<8x1xf32>
    %247 = vector.broadcast %246 : vector<8x1xf32> to vector<8x8xf32>
    %248 = arith.mulf %243, %247 : vector<8x8xf32>
    %249 = arith.truncf %248 : vector<8x8xf32> to vector<8x8xbf16>
    %250 = vector.extract_strided_slice %211 {offsets = [0, 8], sizes = [8, 8], strides = [1, 1]} : vector<8x32xbf16> to vector<8x8xbf16>
    %cst_109 = arith.constant dense<0.000000e+00> : vector<8x8xf32>
    %251 = tpu.matmul %249, %250, %cst_109 {dimension_numbers = #tpu.dot_dimension_numbers<[1], [0], [0], [1], [0, 0, 1, 1], [], []>} : vector<8x8xbf16>, vector<8x8xbf16>, vector<8x8xf32> -> vector<8x8xf32>
    %252 = arith.truncf %251 : vector<8x8xf32> to vector<8x8xbf16>
    %c0_110 = arith.constant 0 : index
    %c272 = arith.constant 272 : index
    %c0_111 = arith.constant 0 : index
    %253 = vector.load %arg8[%c0_110, %c272, %c0_111] : memref<1x800x32xbf16, #tpu.memory_space<vmem>>, vector<1x8x32xbf16>
    %254 = vector.shape_cast %253 : vector<1x8x32xbf16> to vector<8x32xbf16>
    %cst_112 = arith.constant dense<0.000000e+00> : vector<8x32xf32>
    %255 = tpu.matmul %252, %254, %cst_112 {dimension_numbers = #tpu.dot_dimension_numbers<[1], [0], [0], [1], [0, 0, 1, 1], [], []>} : vector<8x8xbf16>, vector<8x32xbf16>, vector<8x32xf32> -> vector<8x32xf32>
    %256 = arith.addf %235, %255 : vector<8x32xf32>
    %257 = vector.extract_strided_slice %209 {offsets = [0, 16], sizes = [8, 8], strides = [1, 1]} : vector<8x32xbf16> to vector<8x8xbf16>
    %258 = vector.extract_strided_slice %210 {offsets = [0, 16], sizes = [8, 8], strides = [1, 1]} : vector<8x32xbf16> to vector<8x8xbf16>
    %cst_113 = arith.constant dense<0.000000e+00> : vector<8x8xf32>
    %259 = tpu.matmul %257, %258, %cst_113 {dimension_numbers = #tpu.dot_dimension_numbers<[1], [1], [0], [0], [0, 0, 1, 0], [], []>} : vector<8x8xbf16>, vector<8x8xbf16>, vector<8x8xf32> -> vector<8x8xf32>
    %cst_114 = arith.constant dense<0xFF800000> : vector<8xf32>
    %260 = vector.multi_reduction <maximumf>, %259, %cst_114 [1] : vector<8x8xf32> to vector<8xf32>
    %261 = vector.shape_cast %260 : vector<8xf32> to vector<8x1xf32>
    %262 = vector.broadcast %261 : vector<8x1xf32> to vector<8x8xf32>
    %263 = arith.subf %259, %262 : vector<8x8xf32>
    %264 = math.exp %263 : vector<8x8xf32>
    %cst_115 = arith.constant dense<0.000000e+00> : vector<8xf32>
    %265 = vector.multi_reduction <add>, %264, %cst_115 [1] : vector<8x8xf32> to vector<8xf32>
    %266 = vector.shape_cast %265 : vector<8xf32> to vector<8x1xf32>
    %267 = tpu.reciprocal %266 {approx = true} : vector<8x1xf32> -> vector<8x1xf32>
    %268 = vector.broadcast %267 : vector<8x1xf32> to vector<8x8xf32>
    %269 = arith.mulf %264, %268 : vector<8x8xf32>
    %270 = arith.truncf %269 : vector<8x8xf32> to vector<8x8xbf16>
    %271 = vector.extract_strided_slice %211 {offsets = [0, 16], sizes = [8, 8], strides = [1, 1]} : vector<8x32xbf16> to vector<8x8xbf16>
    %cst_116 = arith.constant dense<0.000000e+00> : vector<8x8xf32>
    %272 = tpu.matmul %270, %271, %cst_116 {dimension_numbers = #tpu.dot_dimension_numbers<[1], [0], [0], [1], [0, 0, 1, 1], [], []>} : vector<8x8xbf16>, vector<8x8xbf16>, vector<8x8xf32> -> vector<8x8xf32>
    %273 = arith.truncf %272 : vector<8x8xf32> to vector<8x8xbf16>
    %c0_117 = arith.constant 0 : index
    %c288 = arith.constant 288 : index
    %c0_118 = arith.constant 0 : index
    %274 = vector.load %arg8[%c0_117, %c288, %c0_118] : memref<1x800x32xbf16, #tpu.memory_space<vmem>>, vector<1x8x32xbf16>
    %275 = vector.shape_cast %274 : vector<1x8x32xbf16> to vector<8x32xbf16>
    %cst_119 = arith.constant dense<0.000000e+00> : vector<8x32xf32>
    %276 = tpu.matmul %273, %275, %cst_119 {dimension_numbers = #tpu.dot_dimension_numbers<[1], [0], [0], [1], [0, 0, 1, 1], [], []>} : vector<8x8xbf16>, vector<8x32xbf16>, vector<8x32xf32> -> vector<8x32xf32>
    %277 = arith.addf %256, %276 : vector<8x32xf32>
    %278 = vector.extract_strided_slice %209 {offsets = [0, 24], sizes = [8, 8], strides = [1, 1]} : vector<8x32xbf16> to vector<8x8xbf16>
    %279 = vector.extract_strided_slice %210 {offsets = [0, 24], sizes = [8, 8], strides = [1, 1]} : vector<8x32xbf16> to vector<8x8xbf16>
    %cst_120 = arith.constant dense<0.000000e+00> : vector<8x8xf32>
    %280 = tpu.matmul %278, %279, %cst_120 {dimension_numbers = #tpu.dot_dimension_numbers<[1], [1], [0], [0], [0, 0, 1, 0], [], []>} : vector<8x8xbf16>, vector<8x8xbf16>, vector<8x8xf32> -> vector<8x8xf32>
    %cst_121 = arith.constant dense<0xFF800000> : vector<8xf32>
    %281 = vector.multi_reduction <maximumf>, %280, %cst_121 [1] : vector<8x8xf32> to vector<8xf32>
    %282 = vector.shape_cast %281 : vector<8xf32> to vector<8x1xf32>
    %283 = vector.broadcast %282 : vector<8x1xf32> to vector<8x8xf32>
    %284 = arith.subf %280, %283 : vector<8x8xf32>
    %285 = math.exp %284 : vector<8x8xf32>
    %cst_122 = arith.constant dense<0.000000e+00> : vector<8xf32>
    %286 = vector.multi_reduction <add>, %285, %cst_122 [1] : vector<8x8xf32> to vector<8xf32>
    %287 = vector.shape_cast %286 : vector<8xf32> to vector<8x1xf32>
    %288 = tpu.reciprocal %287 {approx = true} : vector<8x1xf32> -> vector<8x1xf32>
    %289 = vector.broadcast %288 : vector<8x1xf32> to vector<8x8xf32>
    %290 = arith.mulf %285, %289 : vector<8x8xf32>
    %291 = arith.truncf %290 : vector<8x8xf32> to vector<8x8xbf16>
    %292 = vector.extract_strided_slice %211 {offsets = [0, 24], sizes = [8, 8], strides = [1, 1]} : vector<8x32xbf16> to vector<8x8xbf16>
    %cst_123 = arith.constant dense<0.000000e+00> : vector<8x8xf32>
    %293 = tpu.matmul %291, %292, %cst_123 {dimension_numbers = #tpu.dot_dimension_numbers<[1], [0], [0], [1], [0, 0, 1, 1], [], []>} : vector<8x8xbf16>, vector<8x8xbf16>, vector<8x8xf32> -> vector<8x8xf32>
    %294 = arith.truncf %293 : vector<8x8xf32> to vector<8x8xbf16>
    %c0_124 = arith.constant 0 : index
    %c304 = arith.constant 304 : index
    %c0_125 = arith.constant 0 : index
    %295 = vector.load %arg8[%c0_124, %c304, %c0_125] : memref<1x800x32xbf16, #tpu.memory_space<vmem>>, vector<1x8x32xbf16>
    %296 = vector.shape_cast %295 : vector<1x8x32xbf16> to vector<8x32xbf16>
    %cst_126 = arith.constant dense<0.000000e+00> : vector<8x32xf32>
    %297 = tpu.matmul %294, %296, %cst_126 {dimension_numbers = #tpu.dot_dimension_numbers<[1], [0], [0], [1], [0, 0, 1, 1], [], []>} : vector<8x8xbf16>, vector<8x32xbf16>, vector<8x32xf32> -> vector<8x32xf32>
    %298 = arith.addf %277, %297 : vector<8x32xf32>
    %299 = arith.addf %160, %298 : vector<8x32xf32>
    %c0_127 = arith.constant 0 : index
    %c12 = arith.constant 12 : index
    %c0_128 = arith.constant 0 : index
    %300 = vector.load %arg7[%c0_127, %c12, %c0_128] : memref<1x35x128xf32, #tpu.memory_space<vmem>>, vector<1x1x32xf32>
    %301 = vector.shape_cast %300 : vector<1x1x32xf32> to vector<1x32xf32>
    %c0_129 = arith.constant 0 : index
    %c13 = arith.constant 13 : index
    %c0_130 = arith.constant 0 : index
    %302 = vector.load %arg7[%c0_129, %c13, %c0_130] : memref<1x35x128xf32, #tpu.memory_space<vmem>>, vector<1x1x32xf32>
    %303 = vector.shape_cast %302 : vector<1x1x32xf32> to vector<1x32xf32>
    %cst_131 = arith.constant dense<0.000000e+00> : vector<8xf32>
    %304 = vector.multi_reduction <add>, %160, %cst_131 [1] : vector<8x32xf32> to vector<8xf32>
    %305 = vector.shape_cast %304 : vector<8xf32> to vector<8x1xf32>
    %cst_132 = arith.constant 3.200000e+01 : f32
    %306 = vector.broadcast %cst_132 : f32 to vector<8x1xf32>
    %307 = arith.divf %305, %306 : vector<8x1xf32>
    %308 = vector.broadcast %307 : vector<8x1xf32> to vector<8x32xf32>
    %309 = arith.subf %160, %308 : vector<8x32xf32>
    %310 = arith.mulf %309, %309 : vector<8x32xf32>
    %cst_133 = arith.constant dense<0.000000e+00> : vector<8xf32>
    %311 = vector.multi_reduction <add>, %310, %cst_133 [1] : vector<8x32xf32> to vector<8xf32>
    %312 = vector.shape_cast %311 : vector<8xf32> to vector<8x1xf32>
    %cst_134 = arith.constant 3.200000e+01 : f32
    %313 = vector.broadcast %cst_134 : f32 to vector<8x1xf32>
    %314 = arith.divf %312, %313 : vector<8x1xf32>
    %315 = vector.broadcast %307 : vector<8x1xf32> to vector<8x32xf32>
    %316 = arith.subf %160, %315 : vector<8x32xf32>
    %cst_135 = arith.constant 9.99999974E-6 : f32
    %317 = vector.broadcast %cst_135 : f32 to vector<8x1xf32>
    %318 = arith.addf %314, %317 : vector<8x1xf32>
    %319 = math.rsqrt %318 : vector<8x1xf32>
    %320 = vector.broadcast %319 : vector<8x1xf32> to vector<8x32xf32>
    %321 = arith.mulf %316, %320 : vector<8x32xf32>
    %322 = vector.broadcast %301 : vector<1x32xf32> to vector<8x32xf32>
    %323 = arith.mulf %321, %322 : vector<8x32xf32>
    %324 = vector.broadcast %303 : vector<1x32xf32> to vector<8x32xf32>
    %325 = arith.addf %323, %324 : vector<8x32xf32>
    %326 = arith.truncf %325 : vector<8x32xf32> to vector<8x32xbf16>
    %c0_136 = arith.constant 0 : index
    %c320 = arith.constant 320 : index
    %c0_137 = arith.constant 0 : index
    %327 = vector.load %arg8[%c0_136, %c320, %c0_137] : memref<1x800x32xbf16, #tpu.memory_space<vmem>>, vector<1x32x32xbf16>
    %328 = vector.shape_cast %327 : vector<1x32x32xbf16> to vector<32x32xbf16>
    %cst_138 = arith.constant dense<0.000000e+00> : vector<8x32xf32>
    %329 = tpu.matmul %326, %328, %cst_138 {dimension_numbers = #tpu.dot_dimension_numbers<[1], [0], [0], [1], [0, 0, 1, 1], [], []>} : vector<8x32xbf16>, vector<32x32xbf16>, vector<8x32xf32> -> vector<8x32xf32>
    %c0_139 = arith.constant 0 : index
    %c14 = arith.constant 14 : index
    %c0_140 = arith.constant 0 : index
    %330 = vector.load %arg7[%c0_139, %c14, %c0_140] : memref<1x35x128xf32, #tpu.memory_space<vmem>>, vector<1x1x32xf32>
    %331 = vector.shape_cast %330 : vector<1x1x32xf32> to vector<1x32xf32>
    %332 = vector.broadcast %331 : vector<1x32xf32> to vector<8x32xf32>
    %333 = arith.addf %329, %332 : vector<8x32xf32>
    %c0_141 = arith.constant 0 : index
    %c352 = arith.constant 352 : index
    %c0_142 = arith.constant 0 : index
    %334 = vector.load %arg8[%c0_141, %c352, %c0_142] : memref<1x800x32xbf16, #tpu.memory_space<vmem>>, vector<1x24x32xbf16>
    %335 = vector.shape_cast %334 : vector<1x24x32xbf16> to vector<24x32xbf16>
    %cst_143 = arith.constant dense<0.000000e+00> : vector<8x32xf32>
    %336 = tpu.matmul %6, %335, %cst_143 {dimension_numbers = #tpu.dot_dimension_numbers<[1], [0], [0], [1], [0, 0, 1, 1], [], []>} : vector<8x24xbf16>, vector<24x32xbf16>, vector<8x32xf32> -> vector<8x32xf32>
    %c0_144 = arith.constant 0 : index
    %c15 = arith.constant 15 : index
    %c0_145 = arith.constant 0 : index
    %337 = vector.load %arg7[%c0_144, %c15, %c0_145] : memref<1x35x128xf32, #tpu.memory_space<vmem>>, vector<1x1x32xf32>
    %338 = vector.shape_cast %337 : vector<1x1x32xf32> to vector<1x32xf32>
    %339 = vector.broadcast %338 : vector<1x32xf32> to vector<8x32xf32>
    %340 = arith.addf %336, %339 : vector<8x32xf32>
    %c0_146 = arith.constant 0 : index
    %c384 = arith.constant 384 : index
    %c0_147 = arith.constant 0 : index
    %341 = vector.load %arg8[%c0_146, %c384, %c0_147] : memref<1x800x32xbf16, #tpu.memory_space<vmem>>, vector<1x24x32xbf16>
    %342 = vector.shape_cast %341 : vector<1x24x32xbf16> to vector<24x32xbf16>
    %cst_148 = arith.constant dense<0.000000e+00> : vector<8x32xf32>
    %343 = tpu.matmul %6, %342, %cst_148 {dimension_numbers = #tpu.dot_dimension_numbers<[1], [0], [0], [1], [0, 0, 1, 1], [], []>} : vector<8x24xbf16>, vector<24x32xbf16>, vector<8x32xf32> -> vector<8x32xf32>
    %c0_149 = arith.constant 0 : index
    %c16 = arith.constant 16 : index
    %c0_150 = arith.constant 0 : index
    %344 = vector.load %arg7[%c0_149, %c16, %c0_150] : memref<1x35x128xf32, #tpu.memory_space<vmem>>, vector<1x1x32xf32>
    %345 = vector.shape_cast %344 : vector<1x1x32xf32> to vector<1x32xf32>
    %346 = vector.broadcast %345 : vector<1x32xf32> to vector<8x32xf32>
    %347 = arith.addf %343, %346 : vector<8x32xf32>
    %348 = arith.truncf %333 : vector<8x32xf32> to vector<8x32xbf16>
    %349 = arith.truncf %340 : vector<8x32xf32> to vector<8x32xbf16>
    %350 = arith.truncf %347 : vector<8x32xf32> to vector<8x32xbf16>
    %c0_151 = arith.constant 0 : index
    %c17 = arith.constant 17 : index
    %c0_152 = arith.constant 0 : index
    %351 = vector.load %arg7[%c0_151, %c17, %c0_152] : memref<1x35x128xf32, #tpu.memory_space<vmem>>, vector<1x1x32xf32>
    %352 = vector.shape_cast %351 : vector<1x1x32xf32> to vector<1x32xf32>
    %353 = vector.extract_strided_slice %348 {offsets = [0, 0], sizes = [8, 8], strides = [1, 1]} : vector<8x32xbf16> to vector<8x8xbf16>
    %354 = vector.extract_strided_slice %349 {offsets = [0, 0], sizes = [8, 8], strides = [1, 1]} : vector<8x32xbf16> to vector<8x8xbf16>
    %cst_153 = arith.constant dense<0.000000e+00> : vector<8x8xf32>
    %355 = tpu.matmul %353, %354, %cst_153 {dimension_numbers = #tpu.dot_dimension_numbers<[1], [1], [0], [0], [0, 0, 1, 0], [], []>} : vector<8x8xbf16>, vector<8x8xbf16>, vector<8x8xf32> -> vector<8x8xf32>
    %cst_154 = arith.constant dense<0xFF800000> : vector<8xf32>
    %356 = vector.multi_reduction <maximumf>, %355, %cst_154 [1] : vector<8x8xf32> to vector<8xf32>
    %357 = vector.shape_cast %356 : vector<8xf32> to vector<8x1xf32>
    %358 = vector.broadcast %357 : vector<8x1xf32> to vector<8x8xf32>
    %359 = arith.subf %355, %358 : vector<8x8xf32>
    %360 = math.exp %359 : vector<8x8xf32>
    %cst_155 = arith.constant dense<0.000000e+00> : vector<8xf32>
    %361 = vector.multi_reduction <add>, %360, %cst_155 [1] : vector<8x8xf32> to vector<8xf32>
    %362 = vector.shape_cast %361 : vector<8xf32> to vector<8x1xf32>
    %363 = tpu.reciprocal %362 {approx = true} : vector<8x1xf32> -> vector<8x1xf32>
    %364 = vector.broadcast %363 : vector<8x1xf32> to vector<8x8xf32>
    %365 = arith.mulf %360, %364 : vector<8x8xf32>
    %366 = arith.truncf %365 : vector<8x8xf32> to vector<8x8xbf16>
    %367 = vector.extract_strided_slice %350 {offsets = [0, 0], sizes = [8, 8], strides = [1, 1]} : vector<8x32xbf16> to vector<8x8xbf16>
    %cst_156 = arith.constant dense<0.000000e+00> : vector<8x8xf32>
    %368 = tpu.matmul %366, %367, %cst_156 {dimension_numbers = #tpu.dot_dimension_numbers<[1], [0], [0], [1], [0, 0, 1, 1], [], []>} : vector<8x8xbf16>, vector<8x8xbf16>, vector<8x8xf32> -> vector<8x8xf32>
    %369 = arith.truncf %368 : vector<8x8xf32> to vector<8x8xbf16>
    %c0_157 = arith.constant 0 : index
    %c416 = arith.constant 416 : index
    %c0_158 = arith.constant 0 : index
    %370 = vector.load %arg8[%c0_157, %c416, %c0_158] : memref<1x800x32xbf16, #tpu.memory_space<vmem>>, vector<1x8x32xbf16>
    %371 = vector.shape_cast %370 : vector<1x8x32xbf16> to vector<8x32xbf16>
    %cst_159 = arith.constant dense<0.000000e+00> : vector<8x32xf32>
    %372 = tpu.matmul %369, %371, %cst_159 {dimension_numbers = #tpu.dot_dimension_numbers<[1], [0], [0], [1], [0, 0, 1, 1], [], []>} : vector<8x8xbf16>, vector<8x32xbf16>, vector<8x32xf32> -> vector<8x32xf32>
    %373 = vector.broadcast %352 : vector<1x32xf32> to vector<8x32xf32>
    %374 = arith.addf %373, %372 : vector<8x32xf32>
    %375 = vector.extract_strided_slice %348 {offsets = [0, 8], sizes = [8, 8], strides = [1, 1]} : vector<8x32xbf16> to vector<8x8xbf16>
    %376 = vector.extract_strided_slice %349 {offsets = [0, 8], sizes = [8, 8], strides = [1, 1]} : vector<8x32xbf16> to vector<8x8xbf16>
    %cst_160 = arith.constant dense<0.000000e+00> : vector<8x8xf32>
    %377 = tpu.matmul %375, %376, %cst_160 {dimension_numbers = #tpu.dot_dimension_numbers<[1], [1], [0], [0], [0, 0, 1, 0], [], []>} : vector<8x8xbf16>, vector<8x8xbf16>, vector<8x8xf32> -> vector<8x8xf32>
    %cst_161 = arith.constant dense<0xFF800000> : vector<8xf32>
    %378 = vector.multi_reduction <maximumf>, %377, %cst_161 [1] : vector<8x8xf32> to vector<8xf32>
    %379 = vector.shape_cast %378 : vector<8xf32> to vector<8x1xf32>
    %380 = vector.broadcast %379 : vector<8x1xf32> to vector<8x8xf32>
    %381 = arith.subf %377, %380 : vector<8x8xf32>
    %382 = math.exp %381 : vector<8x8xf32>
    %cst_162 = arith.constant dense<0.000000e+00> : vector<8xf32>
    %383 = vector.multi_reduction <add>, %382, %cst_162 [1] : vector<8x8xf32> to vector<8xf32>
    %384 = vector.shape_cast %383 : vector<8xf32> to vector<8x1xf32>
    %385 = tpu.reciprocal %384 {approx = true} : vector<8x1xf32> -> vector<8x1xf32>
    %386 = vector.broadcast %385 : vector<8x1xf32> to vector<8x8xf32>
    %387 = arith.mulf %382, %386 : vector<8x8xf32>
    %388 = arith.truncf %387 : vector<8x8xf32> to vector<8x8xbf16>
    %389 = vector.extract_strided_slice %350 {offsets = [0, 8], sizes = [8, 8], strides = [1, 1]} : vector<8x32xbf16> to vector<8x8xbf16>
    %cst_163 = arith.constant dense<0.000000e+00> : vector<8x8xf32>
    %390 = tpu.matmul %388, %389, %cst_163 {dimension_numbers = #tpu.dot_dimension_numbers<[1], [0], [0], [1], [0, 0, 1, 1], [], []>} : vector<8x8xbf16>, vector<8x8xbf16>, vector<8x8xf32> -> vector<8x8xf32>
    %391 = arith.truncf %390 : vector<8x8xf32> to vector<8x8xbf16>
    %c0_164 = arith.constant 0 : index
    %c432 = arith.constant 432 : index
    %c0_165 = arith.constant 0 : index
    %392 = vector.load %arg8[%c0_164, %c432, %c0_165] : memref<1x800x32xbf16, #tpu.memory_space<vmem>>, vector<1x8x32xbf16>
    %393 = vector.shape_cast %392 : vector<1x8x32xbf16> to vector<8x32xbf16>
    %cst_166 = arith.constant dense<0.000000e+00> : vector<8x32xf32>
    %394 = tpu.matmul %391, %393, %cst_166 {dimension_numbers = #tpu.dot_dimension_numbers<[1], [0], [0], [1], [0, 0, 1, 1], [], []>} : vector<8x8xbf16>, vector<8x32xbf16>, vector<8x32xf32> -> vector<8x32xf32>
    %395 = arith.addf %374, %394 : vector<8x32xf32>
    %396 = vector.extract_strided_slice %348 {offsets = [0, 16], sizes = [8, 8], strides = [1, 1]} : vector<8x32xbf16> to vector<8x8xbf16>
    %397 = vector.extract_strided_slice %349 {offsets = [0, 16], sizes = [8, 8], strides = [1, 1]} : vector<8x32xbf16> to vector<8x8xbf16>
    %cst_167 = arith.constant dense<0.000000e+00> : vector<8x8xf32>
    %398 = tpu.matmul %396, %397, %cst_167 {dimension_numbers = #tpu.dot_dimension_numbers<[1], [1], [0], [0], [0, 0, 1, 0], [], []>} : vector<8x8xbf16>, vector<8x8xbf16>, vector<8x8xf32> -> vector<8x8xf32>
    %cst_168 = arith.constant dense<0xFF800000> : vector<8xf32>
    %399 = vector.multi_reduction <maximumf>, %398, %cst_168 [1] : vector<8x8xf32> to vector<8xf32>
    %400 = vector.shape_cast %399 : vector<8xf32> to vector<8x1xf32>
    %401 = vector.broadcast %400 : vector<8x1xf32> to vector<8x8xf32>
    %402 = arith.subf %398, %401 : vector<8x8xf32>
    %403 = math.exp %402 : vector<8x8xf32>
    %cst_169 = arith.constant dense<0.000000e+00> : vector<8xf32>
    %404 = vector.multi_reduction <add>, %403, %cst_169 [1] : vector<8x8xf32> to vector<8xf32>
    %405 = vector.shape_cast %404 : vector<8xf32> to vector<8x1xf32>
    %406 = tpu.reciprocal %405 {approx = true} : vector<8x1xf32> -> vector<8x1xf32>
    %407 = vector.broadcast %406 : vector<8x1xf32> to vector<8x8xf32>
    %408 = arith.mulf %403, %407 : vector<8x8xf32>
    %409 = arith.truncf %408 : vector<8x8xf32> to vector<8x8xbf16>
    %410 = vector.extract_strided_slice %350 {offsets = [0, 16], sizes = [8, 8], strides = [1, 1]} : vector<8x32xbf16> to vector<8x8xbf16>
    %cst_170 = arith.constant dense<0.000000e+00> : vector<8x8xf32>
    %411 = tpu.matmul %409, %410, %cst_170 {dimension_numbers = #tpu.dot_dimension_numbers<[1], [0], [0], [1], [0, 0, 1, 1], [], []>} : vector<8x8xbf16>, vector<8x8xbf16>, vector<8x8xf32> -> vector<8x8xf32>
    %412 = arith.truncf %411 : vector<8x8xf32> to vector<8x8xbf16>
    %c0_171 = arith.constant 0 : index
    %c448 = arith.constant 448 : index
    %c0_172 = arith.constant 0 : index
    %413 = vector.load %arg8[%c0_171, %c448, %c0_172] : memref<1x800x32xbf16, #tpu.memory_space<vmem>>, vector<1x8x32xbf16>
    %414 = vector.shape_cast %413 : vector<1x8x32xbf16> to vector<8x32xbf16>
    %cst_173 = arith.constant dense<0.000000e+00> : vector<8x32xf32>
    %415 = tpu.matmul %412, %414, %cst_173 {dimension_numbers = #tpu.dot_dimension_numbers<[1], [0], [0], [1], [0, 0, 1, 1], [], []>} : vector<8x8xbf16>, vector<8x32xbf16>, vector<8x32xf32> -> vector<8x32xf32>
    %416 = arith.addf %395, %415 : vector<8x32xf32>
    %417 = vector.extract_strided_slice %348 {offsets = [0, 24], sizes = [8, 8], strides = [1, 1]} : vector<8x32xbf16> to vector<8x8xbf16>
    %418 = vector.extract_strided_slice %349 {offsets = [0, 24], sizes = [8, 8], strides = [1, 1]} : vector<8x32xbf16> to vector<8x8xbf16>
    %cst_174 = arith.constant dense<0.000000e+00> : vector<8x8xf32>
    %419 = tpu.matmul %417, %418, %cst_174 {dimension_numbers = #tpu.dot_dimension_numbers<[1], [1], [0], [0], [0, 0, 1, 0], [], []>} : vector<8x8xbf16>, vector<8x8xbf16>, vector<8x8xf32> -> vector<8x8xf32>
    %cst_175 = arith.constant dense<0xFF800000> : vector<8xf32>
    %420 = vector.multi_reduction <maximumf>, %419, %cst_175 [1] : vector<8x8xf32> to vector<8xf32>
    %421 = vector.shape_cast %420 : vector<8xf32> to vector<8x1xf32>
    %422 = vector.broadcast %421 : vector<8x1xf32> to vector<8x8xf32>
    %423 = arith.subf %419, %422 : vector<8x8xf32>
    %424 = math.exp %423 : vector<8x8xf32>
    %cst_176 = arith.constant dense<0.000000e+00> : vector<8xf32>
    %425 = vector.multi_reduction <add>, %424, %cst_176 [1] : vector<8x8xf32> to vector<8xf32>
    %426 = vector.shape_cast %425 : vector<8xf32> to vector<8x1xf32>
    %427 = tpu.reciprocal %426 {approx = true} : vector<8x1xf32> -> vector<8x1xf32>
    %428 = vector.broadcast %427 : vector<8x1xf32> to vector<8x8xf32>
    %429 = arith.mulf %424, %428 : vector<8x8xf32>
    %430 = arith.truncf %429 : vector<8x8xf32> to vector<8x8xbf16>
    %431 = vector.extract_strided_slice %350 {offsets = [0, 24], sizes = [8, 8], strides = [1, 1]} : vector<8x32xbf16> to vector<8x8xbf16>
    %cst_177 = arith.constant dense<0.000000e+00> : vector<8x8xf32>
    %432 = tpu.matmul %430, %431, %cst_177 {dimension_numbers = #tpu.dot_dimension_numbers<[1], [0], [0], [1], [0, 0, 1, 1], [], []>} : vector<8x8xbf16>, vector<8x8xbf16>, vector<8x8xf32> -> vector<8x8xf32>
    %433 = arith.truncf %432 : vector<8x8xf32> to vector<8x8xbf16>
    %c0_178 = arith.constant 0 : index
    %c464 = arith.constant 464 : index
    %c0_179 = arith.constant 0 : index
    %434 = vector.load %arg8[%c0_178, %c464, %c0_179] : memref<1x800x32xbf16, #tpu.memory_space<vmem>>, vector<1x8x32xbf16>
    %435 = vector.shape_cast %434 : vector<1x8x32xbf16> to vector<8x32xbf16>
    %cst_180 = arith.constant dense<0.000000e+00> : vector<8x32xf32>
    %436 = tpu.matmul %433, %435, %cst_180 {dimension_numbers = #tpu.dot_dimension_numbers<[1], [0], [0], [1], [0, 0, 1, 1], [], []>} : vector<8x8xbf16>, vector<8x32xbf16>, vector<8x32xf32> -> vector<8x32xf32>
    %437 = arith.addf %416, %436 : vector<8x32xf32>
    %438 = arith.addf %160, %437 : vector<8x32xf32>
    %c0_181 = arith.constant 0 : index
    %c18 = arith.constant 18 : index
    %c0_182 = arith.constant 0 : index
    %439 = vector.load %arg7[%c0_181, %c18, %c0_182] : memref<1x35x128xf32, #tpu.memory_space<vmem>>, vector<1x1x32xf32>
    %440 = vector.shape_cast %439 : vector<1x1x32xf32> to vector<1x32xf32>
    %c0_183 = arith.constant 0 : index
    %c19 = arith.constant 19 : index
    %c0_184 = arith.constant 0 : index
    %441 = vector.load %arg7[%c0_183, %c19, %c0_184] : memref<1x35x128xf32, #tpu.memory_space<vmem>>, vector<1x1x32xf32>
    %442 = vector.shape_cast %441 : vector<1x1x32xf32> to vector<1x32xf32>
    %cst_185 = arith.constant dense<0.000000e+00> : vector<8xf32>
    %443 = vector.multi_reduction <add>, %160, %cst_185 [1] : vector<8x32xf32> to vector<8xf32>
    %444 = vector.shape_cast %443 : vector<8xf32> to vector<8x1xf32>
    %cst_186 = arith.constant 3.200000e+01 : f32
    %445 = vector.broadcast %cst_186 : f32 to vector<8x1xf32>
    %446 = arith.divf %444, %445 : vector<8x1xf32>
    %447 = vector.broadcast %446 : vector<8x1xf32> to vector<8x32xf32>
    %448 = arith.subf %160, %447 : vector<8x32xf32>
    %449 = arith.mulf %448, %448 : vector<8x32xf32>
    %cst_187 = arith.constant dense<0.000000e+00> : vector<8xf32>
    %450 = vector.multi_reduction <add>, %449, %cst_187 [1] : vector<8x32xf32> to vector<8xf32>
    %451 = vector.shape_cast %450 : vector<8xf32> to vector<8x1xf32>
    %cst_188 = arith.constant 3.200000e+01 : f32
    %452 = vector.broadcast %cst_188 : f32 to vector<8x1xf32>
    %453 = arith.divf %451, %452 : vector<8x1xf32>
    %454 = vector.broadcast %446 : vector<8x1xf32> to vector<8x32xf32>
    %455 = arith.subf %160, %454 : vector<8x32xf32>
    %cst_189 = arith.constant 9.99999974E-6 : f32
    %456 = vector.broadcast %cst_189 : f32 to vector<8x1xf32>
    %457 = arith.addf %453, %456 : vector<8x1xf32>
    %458 = math.rsqrt %457 : vector<8x1xf32>
    %459 = vector.broadcast %458 : vector<8x1xf32> to vector<8x32xf32>
    %460 = arith.mulf %455, %459 : vector<8x32xf32>
    %461 = vector.broadcast %440 : vector<1x32xf32> to vector<8x32xf32>
    %462 = arith.mulf %460, %461 : vector<8x32xf32>
    %463 = vector.broadcast %442 : vector<1x32xf32> to vector<8x32xf32>
    %464 = arith.addf %462, %463 : vector<8x32xf32>
    %465 = arith.truncf %464 : vector<8x32xf32> to vector<8x32xbf16>
    %c0_190 = arith.constant 0 : index
    %c480 = arith.constant 480 : index
    %c0_191 = arith.constant 0 : index
    %466 = vector.load %arg8[%c0_190, %c480, %c0_191] : memref<1x800x32xbf16, #tpu.memory_space<vmem>>, vector<1x32x32xbf16>
    %467 = vector.shape_cast %466 : vector<1x32x32xbf16> to vector<32x32xbf16>
    %cst_192 = arith.constant dense<0.000000e+00> : vector<8x32xf32>
    %468 = tpu.matmul %465, %467, %cst_192 {dimension_numbers = #tpu.dot_dimension_numbers<[1], [0], [0], [1], [0, 0, 1, 1], [], []>} : vector<8x32xbf16>, vector<32x32xbf16>, vector<8x32xf32> -> vector<8x32xf32>
    %c0_193 = arith.constant 0 : index
    %c20 = arith.constant 20 : index
    %c0_194 = arith.constant 0 : index
    %469 = vector.load %arg7[%c0_193, %c20, %c0_194] : memref<1x35x128xf32, #tpu.memory_space<vmem>>, vector<1x1x32xf32>
    %470 = vector.shape_cast %469 : vector<1x1x32xf32> to vector<1x32xf32>
    %471 = vector.broadcast %470 : vector<1x32xf32> to vector<8x32xf32>
    %472 = arith.addf %468, %471 : vector<8x32xf32>
    %c0_195 = arith.constant 0 : index
    %c512 = arith.constant 512 : index
    %c0_196 = arith.constant 0 : index
    %473 = vector.load %arg8[%c0_195, %c512, %c0_196] : memref<1x800x32xbf16, #tpu.memory_space<vmem>>, vector<1x28x32xbf16>
    %474 = vector.shape_cast %473 : vector<1x28x32xbf16> to vector<28x32xbf16>
    %cst_197 = arith.constant dense<0.000000e+00> : vector<8x32xf32>
    %475 = tpu.matmul %8, %474, %cst_197 {dimension_numbers = #tpu.dot_dimension_numbers<[1], [0], [0], [1], [0, 0, 1, 1], [], []>} : vector<8x28xbf16>, vector<28x32xbf16>, vector<8x32xf32> -> vector<8x32xf32>
    %c0_198 = arith.constant 0 : index
    %c21 = arith.constant 21 : index
    %c0_199 = arith.constant 0 : index
    %476 = vector.load %arg7[%c0_198, %c21, %c0_199] : memref<1x35x128xf32, #tpu.memory_space<vmem>>, vector<1x1x32xf32>
    %477 = vector.shape_cast %476 : vector<1x1x32xf32> to vector<1x32xf32>
    %478 = vector.broadcast %477 : vector<1x32xf32> to vector<8x32xf32>
    %479 = arith.addf %475, %478 : vector<8x32xf32>
    %c0_200 = arith.constant 0 : index
    %c544 = arith.constant 544 : index
    %c0_201 = arith.constant 0 : index
    %480 = vector.load %arg8[%c0_200, %c544, %c0_201] : memref<1x800x32xbf16, #tpu.memory_space<vmem>>, vector<1x28x32xbf16>
    %481 = vector.shape_cast %480 : vector<1x28x32xbf16> to vector<28x32xbf16>
    %cst_202 = arith.constant dense<0.000000e+00> : vector<8x32xf32>
    %482 = tpu.matmul %8, %481, %cst_202 {dimension_numbers = #tpu.dot_dimension_numbers<[1], [0], [0], [1], [0, 0, 1, 1], [], []>} : vector<8x28xbf16>, vector<28x32xbf16>, vector<8x32xf32> -> vector<8x32xf32>
    %c0_203 = arith.constant 0 : index
    %c22 = arith.constant 22 : index
    %c0_204 = arith.constant 0 : index
    %483 = vector.load %arg7[%c0_203, %c22, %c0_204] : memref<1x35x128xf32, #tpu.memory_space<vmem>>, vector<1x1x32xf32>
    %484 = vector.shape_cast %483 : vector<1x1x32xf32> to vector<1x32xf32>
    %485 = vector.broadcast %484 : vector<1x32xf32> to vector<8x32xf32>
    %486 = arith.addf %482, %485 : vector<8x32xf32>
    %487 = arith.truncf %472 : vector<8x32xf32> to vector<8x32xbf16>
    %488 = arith.truncf %479 : vector<8x32xf32> to vector<8x32xbf16>
    %489 = arith.truncf %486 : vector<8x32xf32> to vector<8x32xbf16>
    %c0_205 = arith.constant 0 : index
    %c23 = arith.constant 23 : index
    %c0_206 = arith.constant 0 : index
    %490 = vector.load %arg7[%c0_205, %c23, %c0_206] : memref<1x35x128xf32, #tpu.memory_space<vmem>>, vector<1x1x32xf32>
    %491 = vector.shape_cast %490 : vector<1x1x32xf32> to vector<1x32xf32>
    %492 = vector.extract_strided_slice %487 {offsets = [0, 0], sizes = [8, 8], strides = [1, 1]} : vector<8x32xbf16> to vector<8x8xbf16>
    %493 = vector.extract_strided_slice %488 {offsets = [0, 0], sizes = [8, 8], strides = [1, 1]} : vector<8x32xbf16> to vector<8x8xbf16>
    %cst_207 = arith.constant dense<0.000000e+00> : vector<8x8xf32>
    %494 = tpu.matmul %492, %493, %cst_207 {dimension_numbers = #tpu.dot_dimension_numbers<[1], [1], [0], [0], [0, 0, 1, 0], [], []>} : vector<8x8xbf16>, vector<8x8xbf16>, vector<8x8xf32> -> vector<8x8xf32>
    %cst_208 = arith.constant dense<0xFF800000> : vector<8xf32>
    %495 = vector.multi_reduction <maximumf>, %494, %cst_208 [1] : vector<8x8xf32> to vector<8xf32>
    %496 = vector.shape_cast %495 : vector<8xf32> to vector<8x1xf32>
    %497 = vector.broadcast %496 : vector<8x1xf32> to vector<8x8xf32>
    %498 = arith.subf %494, %497 : vector<8x8xf32>
    %499 = math.exp %498 : vector<8x8xf32>
    %cst_209 = arith.constant dense<0.000000e+00> : vector<8xf32>
    %500 = vector.multi_reduction <add>, %499, %cst_209 [1] : vector<8x8xf32> to vector<8xf32>
    %501 = vector.shape_cast %500 : vector<8xf32> to vector<8x1xf32>
    %502 = tpu.reciprocal %501 {approx = true} : vector<8x1xf32> -> vector<8x1xf32>
    %503 = vector.broadcast %502 : vector<8x1xf32> to vector<8x8xf32>
    %504 = arith.mulf %499, %503 : vector<8x8xf32>
    %505 = arith.truncf %504 : vector<8x8xf32> to vector<8x8xbf16>
    %506 = vector.extract_strided_slice %489 {offsets = [0, 0], sizes = [8, 8], strides = [1, 1]} : vector<8x32xbf16> to vector<8x8xbf16>
    %cst_210 = arith.constant dense<0.000000e+00> : vector<8x8xf32>
    %507 = tpu.matmul %505, %506, %cst_210 {dimension_numbers = #tpu.dot_dimension_numbers<[1], [0], [0], [1], [0, 0, 1, 1], [], []>} : vector<8x8xbf16>, vector<8x8xbf16>, vector<8x8xf32> -> vector<8x8xf32>
    %508 = arith.truncf %507 : vector<8x8xf32> to vector<8x8xbf16>
    %c0_211 = arith.constant 0 : index
    %c576 = arith.constant 576 : index
    %c0_212 = arith.constant 0 : index
    %509 = vector.load %arg8[%c0_211, %c576, %c0_212] : memref<1x800x32xbf16, #tpu.memory_space<vmem>>, vector<1x8x32xbf16>
    %510 = vector.shape_cast %509 : vector<1x8x32xbf16> to vector<8x32xbf16>
    %cst_213 = arith.constant dense<0.000000e+00> : vector<8x32xf32>
    %511 = tpu.matmul %508, %510, %cst_213 {dimension_numbers = #tpu.dot_dimension_numbers<[1], [0], [0], [1], [0, 0, 1, 1], [], []>} : vector<8x8xbf16>, vector<8x32xbf16>, vector<8x32xf32> -> vector<8x32xf32>
    %512 = vector.broadcast %491 : vector<1x32xf32> to vector<8x32xf32>
    %513 = arith.addf %512, %511 : vector<8x32xf32>
    %514 = vector.extract_strided_slice %487 {offsets = [0, 8], sizes = [8, 8], strides = [1, 1]} : vector<8x32xbf16> to vector<8x8xbf16>
    %515 = vector.extract_strided_slice %488 {offsets = [0, 8], sizes = [8, 8], strides = [1, 1]} : vector<8x32xbf16> to vector<8x8xbf16>
    %cst_214 = arith.constant dense<0.000000e+00> : vector<8x8xf32>
    %516 = tpu.matmul %514, %515, %cst_214 {dimension_numbers = #tpu.dot_dimension_numbers<[1], [1], [0], [0], [0, 0, 1, 0], [], []>} : vector<8x8xbf16>, vector<8x8xbf16>, vector<8x8xf32> -> vector<8x8xf32>
    %cst_215 = arith.constant dense<0xFF800000> : vector<8xf32>
    %517 = vector.multi_reduction <maximumf>, %516, %cst_215 [1] : vector<8x8xf32> to vector<8xf32>
    %518 = vector.shape_cast %517 : vector<8xf32> to vector<8x1xf32>
    %519 = vector.broadcast %518 : vector<8x1xf32> to vector<8x8xf32>
    %520 = arith.subf %516, %519 : vector<8x8xf32>
    %521 = math.exp %520 : vector<8x8xf32>
    %cst_216 = arith.constant dense<0.000000e+00> : vector<8xf32>
    %522 = vector.multi_reduction <add>, %521, %cst_216 [1] : vector<8x8xf32> to vector<8xf32>
    %523 = vector.shape_cast %522 : vector<8xf32> to vector<8x1xf32>
    %524 = tpu.reciprocal %523 {approx = true} : vector<8x1xf32> -> vector<8x1xf32>
    %525 = vector.broadcast %524 : vector<8x1xf32> to vector<8x8xf32>
    %526 = arith.mulf %521, %525 : vector<8x8xf32>
    %527 = arith.truncf %526 : vector<8x8xf32> to vector<8x8xbf16>
    %528 = vector.extract_strided_slice %489 {offsets = [0, 8], sizes = [8, 8], strides = [1, 1]} : vector<8x32xbf16> to vector<8x8xbf16>
    %cst_217 = arith.constant dense<0.000000e+00> : vector<8x8xf32>
    %529 = tpu.matmul %527, %528, %cst_217 {dimension_numbers = #tpu.dot_dimension_numbers<[1], [0], [0], [1], [0, 0, 1, 1], [], []>} : vector<8x8xbf16>, vector<8x8xbf16>, vector<8x8xf32> -> vector<8x8xf32>
    %530 = arith.truncf %529 : vector<8x8xf32> to vector<8x8xbf16>
    %c0_218 = arith.constant 0 : index
    %c592 = arith.constant 592 : index
    %c0_219 = arith.constant 0 : index
    %531 = vector.load %arg8[%c0_218, %c592, %c0_219] : memref<1x800x32xbf16, #tpu.memory_space<vmem>>, vector<1x8x32xbf16>
    %532 = vector.shape_cast %531 : vector<1x8x32xbf16> to vector<8x32xbf16>
    %cst_220 = arith.constant dense<0.000000e+00> : vector<8x32xf32>
    %533 = tpu.matmul %530, %532, %cst_220 {dimension_numbers = #tpu.dot_dimension_numbers<[1], [0], [0], [1], [0, 0, 1, 1], [], []>} : vector<8x8xbf16>, vector<8x32xbf16>, vector<8x32xf32> -> vector<8x32xf32>
    %534 = arith.addf %513, %533 : vector<8x32xf32>
    %535 = vector.extract_strided_slice %487 {offsets = [0, 16], sizes = [8, 8], strides = [1, 1]} : vector<8x32xbf16> to vector<8x8xbf16>
    %536 = vector.extract_strided_slice %488 {offsets = [0, 16], sizes = [8, 8], strides = [1, 1]} : vector<8x32xbf16> to vector<8x8xbf16>
    %cst_221 = arith.constant dense<0.000000e+00> : vector<8x8xf32>
    %537 = tpu.matmul %535, %536, %cst_221 {dimension_numbers = #tpu.dot_dimension_numbers<[1], [1], [0], [0], [0, 0, 1, 0], [], []>} : vector<8x8xbf16>, vector<8x8xbf16>, vector<8x8xf32> -> vector<8x8xf32>
    %cst_222 = arith.constant dense<0xFF800000> : vector<8xf32>
    %538 = vector.multi_reduction <maximumf>, %537, %cst_222 [1] : vector<8x8xf32> to vector<8xf32>
    %539 = vector.shape_cast %538 : vector<8xf32> to vector<8x1xf32>
    %540 = vector.broadcast %539 : vector<8x1xf32> to vector<8x8xf32>
    %541 = arith.subf %537, %540 : vector<8x8xf32>
    %542 = math.exp %541 : vector<8x8xf32>
    %cst_223 = arith.constant dense<0.000000e+00> : vector<8xf32>
    %543 = vector.multi_reduction <add>, %542, %cst_223 [1] : vector<8x8xf32> to vector<8xf32>
    %544 = vector.shape_cast %543 : vector<8xf32> to vector<8x1xf32>
    %545 = tpu.reciprocal %544 {approx = true} : vector<8x1xf32> -> vector<8x1xf32>
    %546 = vector.broadcast %545 : vector<8x1xf32> to vector<8x8xf32>
    %547 = arith.mulf %542, %546 : vector<8x8xf32>
    %548 = arith.truncf %547 : vector<8x8xf32> to vector<8x8xbf16>
    %549 = vector.extract_strided_slice %489 {offsets = [0, 16], sizes = [8, 8], strides = [1, 1]} : vector<8x32xbf16> to vector<8x8xbf16>
    %cst_224 = arith.constant dense<0.000000e+00> : vector<8x8xf32>
    %550 = tpu.matmul %548, %549, %cst_224 {dimension_numbers = #tpu.dot_dimension_numbers<[1], [0], [0], [1], [0, 0, 1, 1], [], []>} : vector<8x8xbf16>, vector<8x8xbf16>, vector<8x8xf32> -> vector<8x8xf32>
    %551 = arith.truncf %550 : vector<8x8xf32> to vector<8x8xbf16>
    %c0_225 = arith.constant 0 : index
    %c608 = arith.constant 608 : index
    %c0_226 = arith.constant 0 : index
    %552 = vector.load %arg8[%c0_225, %c608, %c0_226] : memref<1x800x32xbf16, #tpu.memory_space<vmem>>, vector<1x8x32xbf16>
    %553 = vector.shape_cast %552 : vector<1x8x32xbf16> to vector<8x32xbf16>
    %cst_227 = arith.constant dense<0.000000e+00> : vector<8x32xf32>
    %554 = tpu.matmul %551, %553, %cst_227 {dimension_numbers = #tpu.dot_dimension_numbers<[1], [0], [0], [1], [0, 0, 1, 1], [], []>} : vector<8x8xbf16>, vector<8x32xbf16>, vector<8x32xf32> -> vector<8x32xf32>
    %555 = arith.addf %534, %554 : vector<8x32xf32>
    %556 = vector.extract_strided_slice %487 {offsets = [0, 24], sizes = [8, 8], strides = [1, 1]} : vector<8x32xbf16> to vector<8x8xbf16>
    %557 = vector.extract_strided_slice %488 {offsets = [0, 24], sizes = [8, 8], strides = [1, 1]} : vector<8x32xbf16> to vector<8x8xbf16>
    %cst_228 = arith.constant dense<0.000000e+00> : vector<8x8xf32>
    %558 = tpu.matmul %556, %557, %cst_228 {dimension_numbers = #tpu.dot_dimension_numbers<[1], [1], [0], [0], [0, 0, 1, 0], [], []>} : vector<8x8xbf16>, vector<8x8xbf16>, vector<8x8xf32> -> vector<8x8xf32>
    %cst_229 = arith.constant dense<0xFF800000> : vector<8xf32>
    %559 = vector.multi_reduction <maximumf>, %558, %cst_229 [1] : vector<8x8xf32> to vector<8xf32>
    %560 = vector.shape_cast %559 : vector<8xf32> to vector<8x1xf32>
    %561 = vector.broadcast %560 : vector<8x1xf32> to vector<8x8xf32>
    %562 = arith.subf %558, %561 : vector<8x8xf32>
    %563 = math.exp %562 : vector<8x8xf32>
    %cst_230 = arith.constant dense<0.000000e+00> : vector<8xf32>
    %564 = vector.multi_reduction <add>, %563, %cst_230 [1] : vector<8x8xf32> to vector<8xf32>
    %565 = vector.shape_cast %564 : vector<8xf32> to vector<8x1xf32>
    %566 = tpu.reciprocal %565 {approx = true} : vector<8x1xf32> -> vector<8x1xf32>
    %567 = vector.broadcast %566 : vector<8x1xf32> to vector<8x8xf32>
    %568 = arith.mulf %563, %567 : vector<8x8xf32>
    %569 = arith.truncf %568 : vector<8x8xf32> to vector<8x8xbf16>
    %570 = vector.extract_strided_slice %489 {offsets = [0, 24], sizes = [8, 8], strides = [1, 1]} : vector<8x32xbf16> to vector<8x8xbf16>
    %cst_231 = arith.constant dense<0.000000e+00> : vector<8x8xf32>
    %571 = tpu.matmul %569, %570, %cst_231 {dimension_numbers = #tpu.dot_dimension_numbers<[1], [0], [0], [1], [0, 0, 1, 1], [], []>} : vector<8x8xbf16>, vector<8x8xbf16>, vector<8x8xf32> -> vector<8x8xf32>
    %572 = arith.truncf %571 : vector<8x8xf32> to vector<8x8xbf16>
    %c0_232 = arith.constant 0 : index
    %c624 = arith.constant 624 : index
    %c0_233 = arith.constant 0 : index
    %573 = vector.load %arg8[%c0_232, %c624, %c0_233] : memref<1x800x32xbf16, #tpu.memory_space<vmem>>, vector<1x8x32xbf16>
    %574 = vector.shape_cast %573 : vector<1x8x32xbf16> to vector<8x32xbf16>
    %cst_234 = arith.constant dense<0.000000e+00> : vector<8x32xf32>
    %575 = tpu.matmul %572, %574, %cst_234 {dimension_numbers = #tpu.dot_dimension_numbers<[1], [0], [0], [1], [0, 0, 1, 1], [], []>} : vector<8x8xbf16>, vector<8x32xbf16>, vector<8x32xf32> -> vector<8x32xf32>
    %576 = arith.addf %555, %575 : vector<8x32xf32>
    %577 = arith.addf %160, %576 : vector<8x32xf32>
    %cst_235 = arith.constant dense<0.000000e+00> : vector<8xf32>
    %578 = vector.multi_reduction <add>, %577, %cst_235 [1] : vector<8x32xf32> to vector<8xf32>
    %579 = vector.shape_cast %578 : vector<8xf32> to vector<8x1xf32>
    %cst_236 = arith.constant 0.000000e+00 : f32
    %580 = vector.broadcast %cst_236 : f32 to vector<8x1xf32>
    %581 = arith.addf %580, %579 : vector<8x1xf32>
    %cst_237 = arith.constant dense<0.000000e+00> : vector<8xf32>
    %582 = vector.multi_reduction <add>, %299, %cst_237 [1] : vector<8x32xf32> to vector<8xf32>
    %583 = vector.shape_cast %582 : vector<8xf32> to vector<8x1xf32>
    %584 = arith.addf %581, %583 : vector<8x1xf32>
    %cst_238 = arith.constant dense<0.000000e+00> : vector<8xf32>
    %585 = vector.multi_reduction <add>, %438, %cst_238 [1] : vector<8x32xf32> to vector<8xf32>
    %586 = vector.shape_cast %585 : vector<8xf32> to vector<8x1xf32>
    %587 = arith.addf %584, %586 : vector<8x1xf32>
    %cst_239 = arith.constant 9.600000e+01 : f32
    %588 = vector.broadcast %cst_239 : f32 to vector<8x1xf32>
    %589 = arith.divf %587, %588 : vector<8x1xf32>
    %590 = vector.broadcast %589 : vector<8x1xf32> to vector<8x32xf32>
    %591 = arith.subf %577, %590 : vector<8x32xf32>
    %592 = arith.mulf %591, %591 : vector<8x32xf32>
    %cst_240 = arith.constant dense<0.000000e+00> : vector<8xf32>
    %593 = vector.multi_reduction <add>, %592, %cst_240 [1] : vector<8x32xf32> to vector<8xf32>
    %594 = vector.shape_cast %593 : vector<8xf32> to vector<8x1xf32>
    %cst_241 = arith.constant 0.000000e+00 : f32
    %595 = vector.broadcast %cst_241 : f32 to vector<8x1xf32>
    %596 = arith.addf %595, %594 : vector<8x1xf32>
    %597 = vector.broadcast %589 : vector<8x1xf32> to vector<8x32xf32>
    %598 = arith.subf %299, %597 : vector<8x32xf32>
    %599 = arith.mulf %598, %598 : vector<8x32xf32>
    %cst_242 = arith.constant dense<0.000000e+00> : vector<8xf32>
    %600 = vector.multi_reduction <add>, %599, %cst_242 [1] : vector<8x32xf32> to vector<8xf32>
    %601 = vector.shape_cast %600 : vector<8xf32> to vector<8x1xf32>
    %602 = arith.addf %596, %601 : vector<8x1xf32>
    %603 = vector.broadcast %589 : vector<8x1xf32> to vector<8x32xf32>
    %604 = arith.subf %438, %603 : vector<8x32xf32>
    %605 = arith.mulf %604, %604 : vector<8x32xf32>
    %cst_243 = arith.constant dense<0.000000e+00> : vector<8xf32>
    %606 = vector.multi_reduction <add>, %605, %cst_243 [1] : vector<8x32xf32> to vector<8xf32>
    %607 = vector.shape_cast %606 : vector<8xf32> to vector<8x1xf32>
    %608 = arith.addf %602, %607 : vector<8x1xf32>
    %cst_244 = arith.constant 9.600000e+01 : f32
    %609 = vector.broadcast %cst_244 : f32 to vector<8x1xf32>
    %610 = arith.divf %608, %609 : vector<8x1xf32>
    %cst_245 = arith.constant 9.99999974E-6 : f32
    %611 = vector.broadcast %cst_245 : f32 to vector<8x1xf32>
    %612 = arith.addf %610, %611 : vector<8x1xf32>
    %613 = math.rsqrt %612 : vector<8x1xf32>
    %c0_246 = arith.constant 0 : index
    %c30 = arith.constant 30 : index
    %c0_247 = arith.constant 0 : index
    %614 = vector.load %arg7[%c0_246, %c30, %c0_247] : memref<1x35x128xf32, #tpu.memory_space<vmem>>, vector<1x1x32xf32>
    %615 = vector.shape_cast %614 : vector<1x1x32xf32> to vector<1x32xf32>
    %616 = vector.broadcast %589 : vector<8x1xf32> to vector<8x32xf32>
    %617 = arith.subf %577, %616 : vector<8x32xf32>
    %618 = vector.broadcast %613 : vector<8x1xf32> to vector<8x32xf32>
    %619 = arith.mulf %617, %618 : vector<8x32xf32>
    %c0_248 = arith.constant 0 : index
    %c24 = arith.constant 24 : index
    %c0_249 = arith.constant 0 : index
    %620 = vector.load %arg7[%c0_248, %c24, %c0_249] : memref<1x35x128xf32, #tpu.memory_space<vmem>>, vector<1x1x32xf32>
    %621 = vector.shape_cast %620 : vector<1x1x32xf32> to vector<1x32xf32>
    %622 = vector.broadcast %621 : vector<1x32xf32> to vector<8x32xf32>
    %623 = arith.mulf %619, %622 : vector<8x32xf32>
    %c0_250 = arith.constant 0 : index
    %c25 = arith.constant 25 : index
    %c0_251 = arith.constant 0 : index
    %624 = vector.load %arg7[%c0_250, %c25, %c0_251] : memref<1x35x128xf32, #tpu.memory_space<vmem>>, vector<1x1x32xf32>
    %625 = vector.shape_cast %624 : vector<1x1x32xf32> to vector<1x32xf32>
    %626 = vector.broadcast %625 : vector<1x32xf32> to vector<8x32xf32>
    %627 = arith.addf %623, %626 : vector<8x32xf32>
    %628 = arith.truncf %627 : vector<8x32xf32> to vector<8x32xbf16>
    %c0_252 = arith.constant 0 : index
    %c640 = arith.constant 640 : index
    %c0_253 = arith.constant 0 : index
    %629 = vector.load %arg8[%c0_252, %c640, %c0_253] : memref<1x800x32xbf16, #tpu.memory_space<vmem>>, vector<1x32x32xbf16>
    %630 = vector.shape_cast %629 : vector<1x32x32xbf16> to vector<32x32xbf16>
    %cst_254 = arith.constant dense<0.000000e+00> : vector<8x32xf32>
    %631 = tpu.matmul %628, %630, %cst_254 {dimension_numbers = #tpu.dot_dimension_numbers<[1], [0], [0], [1], [0, 0, 1, 1], [], []>} : vector<8x32xbf16>, vector<32x32xbf16>, vector<8x32xf32> -> vector<8x32xf32>
    %632 = vector.broadcast %615 : vector<1x32xf32> to vector<8x32xf32>
    %633 = arith.addf %632, %631 : vector<8x32xf32>
    %634 = vector.broadcast %589 : vector<8x1xf32> to vector<8x32xf32>
    %635 = arith.subf %299, %634 : vector<8x32xf32>
    %636 = vector.broadcast %613 : vector<8x1xf32> to vector<8x32xf32>
    %637 = arith.mulf %635, %636 : vector<8x32xf32>
    %c0_255 = arith.constant 0 : index
    %c26 = arith.constant 26 : index
    %c0_256 = arith.constant 0 : index
    %638 = vector.load %arg7[%c0_255, %c26, %c0_256] : memref<1x35x128xf32, #tpu.memory_space<vmem>>, vector<1x1x32xf32>
    %639 = vector.shape_cast %638 : vector<1x1x32xf32> to vector<1x32xf32>
    %640 = vector.broadcast %639 : vector<1x32xf32> to vector<8x32xf32>
    %641 = arith.mulf %637, %640 : vector<8x32xf32>
    %c0_257 = arith.constant 0 : index
    %c27 = arith.constant 27 : index
    %c0_258 = arith.constant 0 : index
    %642 = vector.load %arg7[%c0_257, %c27, %c0_258] : memref<1x35x128xf32, #tpu.memory_space<vmem>>, vector<1x1x32xf32>
    %643 = vector.shape_cast %642 : vector<1x1x32xf32> to vector<1x32xf32>
    %644 = vector.broadcast %643 : vector<1x32xf32> to vector<8x32xf32>
    %645 = arith.addf %641, %644 : vector<8x32xf32>
    %646 = arith.truncf %645 : vector<8x32xf32> to vector<8x32xbf16>
    %c0_259 = arith.constant 0 : index
    %c672 = arith.constant 672 : index
    %c0_260 = arith.constant 0 : index
    %647 = vector.load %arg8[%c0_259, %c672, %c0_260] : memref<1x800x32xbf16, #tpu.memory_space<vmem>>, vector<1x32x32xbf16>
    %648 = vector.shape_cast %647 : vector<1x32x32xbf16> to vector<32x32xbf16>
    %cst_261 = arith.constant dense<0.000000e+00> : vector<8x32xf32>
    %649 = tpu.matmul %646, %648, %cst_261 {dimension_numbers = #tpu.dot_dimension_numbers<[1], [0], [0], [1], [0, 0, 1, 1], [], []>} : vector<8x32xbf16>, vector<32x32xbf16>, vector<8x32xf32> -> vector<8x32xf32>
    %650 = arith.addf %633, %649 : vector<8x32xf32>
    %651 = vector.broadcast %589 : vector<8x1xf32> to vector<8x32xf32>
    %652 = arith.subf %438, %651 : vector<8x32xf32>
    %653 = vector.broadcast %613 : vector<8x1xf32> to vector<8x32xf32>
    %654 = arith.mulf %652, %653 : vector<8x32xf32>
    %c0_262 = arith.constant 0 : index
    %c28 = arith.constant 28 : index
    %c0_263 = arith.constant 0 : index
    %655 = vector.load %arg7[%c0_262, %c28, %c0_263] : memref<1x35x128xf32, #tpu.memory_space<vmem>>, vector<1x1x32xf32>
    %656 = vector.shape_cast %655 : vector<1x1x32xf32> to vector<1x32xf32>
    %657 = vector.broadcast %656 : vector<1x32xf32> to vector<8x32xf32>
    %658 = arith.mulf %654, %657 : vector<8x32xf32>
    %c0_264 = arith.constant 0 : index
    %c29 = arith.constant 29 : index
    %c0_265 = arith.constant 0 : index
    %659 = vector.load %arg7[%c0_264, %c29, %c0_265] : memref<1x35x128xf32, #tpu.memory_space<vmem>>, vector<1x1x32xf32>
    %660 = vector.shape_cast %659 : vector<1x1x32xf32> to vector<1x32xf32>
    %661 = vector.broadcast %660 : vector<1x32xf32> to vector<8x32xf32>
    %662 = arith.addf %658, %661 : vector<8x32xf32>
    %663 = arith.truncf %662 : vector<8x32xf32> to vector<8x32xbf16>
    %c0_266 = arith.constant 0 : index
    %c704 = arith.constant 704 : index
    %c0_267 = arith.constant 0 : index
    %664 = vector.load %arg8[%c0_266, %c704, %c0_267] : memref<1x800x32xbf16, #tpu.memory_space<vmem>>, vector<1x32x32xbf16>
    %665 = vector.shape_cast %664 : vector<1x32x32xbf16> to vector<32x32xbf16>
    %cst_268 = arith.constant dense<0.000000e+00> : vector<8x32xf32>
    %666 = tpu.matmul %663, %665, %cst_268 {dimension_numbers = #tpu.dot_dimension_numbers<[1], [0], [0], [1], [0, 0, 1, 1], [], []>} : vector<8x32xbf16>, vector<32x32xbf16>, vector<8x32xf32> -> vector<8x32xf32>
    %667 = arith.addf %650, %666 : vector<8x32xf32>
    %cst_269 = arith.constant 0.000000e+00 : f32
    %668 = vector.broadcast %cst_269 : f32 to vector<8x32xf32>
    %669 = arith.maximumf %667, %668 : vector<8x32xf32>
    %c0_270 = arith.constant 0 : index
    %c31 = arith.constant 31 : index
    %c0_271 = arith.constant 0 : index
    %670 = vector.load %arg7[%c0_270, %c31, %c0_271] : memref<1x35x128xf32, #tpu.memory_space<vmem>>, vector<1x1x32xf32>
    %671 = vector.shape_cast %670 : vector<1x1x32xf32> to vector<1x32xf32>
    %c0_272 = arith.constant 0 : index
    %c32_273 = arith.constant 32 : index
    %c0_274 = arith.constant 0 : index
    %672 = vector.load %arg7[%c0_272, %c32_273, %c0_274] : memref<1x35x128xf32, #tpu.memory_space<vmem>>, vector<1x1x32xf32>
    %673 = vector.shape_cast %672 : vector<1x1x32xf32> to vector<1x32xf32>
    %cst_275 = arith.constant dense<0.000000e+00> : vector<8xf32>
    %674 = vector.multi_reduction <add>, %669, %cst_275 [1] : vector<8x32xf32> to vector<8xf32>
    %675 = vector.shape_cast %674 : vector<8xf32> to vector<8x1xf32>
    %cst_276 = arith.constant 3.200000e+01 : f32
    %676 = vector.broadcast %cst_276 : f32 to vector<8x1xf32>
    %677 = arith.divf %675, %676 : vector<8x1xf32>
    %678 = vector.broadcast %677 : vector<8x1xf32> to vector<8x32xf32>
    %679 = arith.subf %669, %678 : vector<8x32xf32>
    %680 = arith.mulf %679, %679 : vector<8x32xf32>
    %cst_277 = arith.constant dense<0.000000e+00> : vector<8xf32>
    %681 = vector.multi_reduction <add>, %680, %cst_277 [1] : vector<8x32xf32> to vector<8xf32>
    %682 = vector.shape_cast %681 : vector<8xf32> to vector<8x1xf32>
    %cst_278 = arith.constant 3.200000e+01 : f32
    %683 = vector.broadcast %cst_278 : f32 to vector<8x1xf32>
    %684 = arith.divf %682, %683 : vector<8x1xf32>
    %685 = vector.broadcast %677 : vector<8x1xf32> to vector<8x32xf32>
    %686 = arith.subf %669, %685 : vector<8x32xf32>
    %cst_279 = arith.constant 9.99999974E-6 : f32
    %687 = vector.broadcast %cst_279 : f32 to vector<8x1xf32>
    %688 = arith.addf %684, %687 : vector<8x1xf32>
    %689 = math.rsqrt %688 : vector<8x1xf32>
    %690 = vector.broadcast %689 : vector<8x1xf32> to vector<8x32xf32>
    %691 = arith.mulf %686, %690 : vector<8x32xf32>
    %692 = vector.broadcast %671 : vector<1x32xf32> to vector<8x32xf32>
    %693 = arith.mulf %691, %692 : vector<8x32xf32>
    %694 = vector.broadcast %673 : vector<1x32xf32> to vector<8x32xf32>
    %695 = arith.addf %693, %694 : vector<8x32xf32>
    %696 = arith.truncf %695 : vector<8x32xf32> to vector<8x32xbf16>
    %c0_280 = arith.constant 0 : index
    %c0_281 = arith.constant 0 : index
    %c0_282 = arith.constant 0 : index
    %697 = vector.load %arg9[%c0_280, %c0_281, %c0_282] : memref<1x32x64xbf16, #tpu.memory_space<vmem>>, vector<1x32x64xbf16>
    %698 = vector.shape_cast %697 : vector<1x32x64xbf16> to vector<32x64xbf16>
    %cst_283 = arith.constant dense<0.000000e+00> : vector<8x64xf32>
    %699 = tpu.matmul %696, %698, %cst_283 {dimension_numbers = #tpu.dot_dimension_numbers<[1], [0], [0], [1], [0, 0, 1, 1], [], []>} : vector<8x32xbf16>, vector<32x64xbf16>, vector<8x64xf32> -> vector<8x64xf32>
    %c0_284 = arith.constant 0 : index
    %c33 = arith.constant 33 : index
    %c0_285 = arith.constant 0 : index
    %700 = vector.load %arg7[%c0_284, %c33, %c0_285] : memref<1x35x128xf32, #tpu.memory_space<vmem>>, vector<1x1x64xf32>
    %701 = vector.shape_cast %700 : vector<1x1x64xf32> to vector<1x64xf32>
    %702 = vector.broadcast %701 : vector<1x64xf32> to vector<8x64xf32>
    %703 = arith.addf %699, %702 : vector<8x64xf32>
    %cst_286 = arith.constant 0.000000e+00 : f32
    %704 = vector.broadcast %cst_286 : f32 to vector<8x64xf32>
    %705 = arith.maximumf %703, %704 : vector<8x64xf32>
    %706 = arith.truncf %705 : vector<8x64xf32> to vector<8x64xbf16>
    %c0_287 = arith.constant 0 : index
    %c736 = arith.constant 736 : index
    %c0_288 = arith.constant 0 : index
    %707 = vector.load %arg8[%c0_287, %c736, %c0_288] : memref<1x800x32xbf16, #tpu.memory_space<vmem>>, vector<1x64x32xbf16>
    %708 = vector.shape_cast %707 : vector<1x64x32xbf16> to vector<64x32xbf16>
    %cst_289 = arith.constant dense<0.000000e+00> : vector<8x32xf32>
    %709 = tpu.matmul %706, %708, %cst_289 {dimension_numbers = #tpu.dot_dimension_numbers<[1], [0], [0], [1], [0, 0, 1, 1], [], []>} : vector<8x64xbf16>, vector<64x32xbf16>, vector<8x32xf32> -> vector<8x32xf32>
    %710 = arith.addf %669, %709 : vector<8x32xf32>
    %c0_290 = arith.constant 0 : index
    %c34 = arith.constant 34 : index
    %c0_291 = arith.constant 0 : index
    %711 = vector.load %arg7[%c0_290, %c34, %c0_291] : memref<1x35x128xf32, #tpu.memory_space<vmem>>, vector<1x1x32xf32>
    %712 = vector.shape_cast %711 : vector<1x1x32xf32> to vector<1x32xf32>
    %713 = vector.broadcast %712 : vector<1x32xf32> to vector<8x32xf32>
    %714 = arith.addf %710, %713 : vector<8x32xf32>
    %c0_292 = arith.constant 0 : index
    %c0_293 = arith.constant 0 : index
    %c0_294 = arith.constant 0 : index
    %715 = vector.load %arg10[%c0_292, %c0_293, %c0_294] : memref<1x8x32xf32, #tpu.memory_space<vmem>>, vector<1x8x32xf32>
    %716 = vector.shape_cast %715 : vector<1x8x32xf32> to vector<8x32xf32>
    %717 = vector.shape_cast %714 : vector<8x32xf32> to vector<1x8x32xf32>
    tpu.vector_store %arg10[%c0_292, %c0_293, %c0_294], %717 {strides = array<i32>} : memref<1x8x32xf32, #tpu.memory_space<vmem>>, vector<1x8x32xf32>,
    return
  }
  func.func @transform_0(%arg0: i32, %arg1: i32) -> (i32, i32, i32) {
    %c0_i32 = arith.constant 0 : i32
    %c0_i32_0 = arith.constant 0 : i32
    %c0_i32_1 = arith.constant 0 : i32
    return %arg0, %c0_i32, %c0_i32_0 : i32, i32, i32
  }
  func.func @transform_1(%arg0: i32, %arg1: i32) -> (i32, i32, i32) {
    %c0_i32 = arith.constant 0 : i32
    %c0_i32_0 = arith.constant 0 : i32
    %c0_i32_1 = arith.constant 0 : i32
    return %arg0, %c0_i32, %c0_i32_0 : i32, i32, i32
  }
  func.func @transform_2(%arg0: i32, %arg1: i32) -> (i32, i32, i32) {
    %c0_i32 = arith.constant 0 : i32
    %c0_i32_0 = arith.constant 0 : i32
    %c0_i32_1 = arith.constant 0 : i32
    return %arg0, %c0_i32, %c0_i32_0 : i32, i32, i32
  }
  func.func @transform_3(%arg0: i32, %arg1: i32) -> (i32, i32, i32) {
    %c0_i32 = arith.constant 0 : i32
    %c0_i32_0 = arith.constant 0 : i32
    %c0_i32_1 = arith.constant 0 : i32
    return %arg0, %c0_i32, %c0_i32_0 : i32, i32, i32
  }
  func.func @transform_4(%arg0: i32, %arg1: i32) -> (i32, i32, i32) {
    %c0_i32 = arith.constant 0 : i32
    %c0_i32_0 = arith.constant 0 : i32
    %c0_i32_1 = arith.constant 0 : i32
    return %arg0, %c0_i32, %c0_i32_0 : i32, i32, i32
  }
  func.func @transform_5(%arg0: i32, %arg1: i32) -> (i32, i32, i32) {
    %c0_i32 = arith.constant 0 : i32
    %c0_i32_0 = arith.constant 0 : i32
    %c0_i32_1 = arith.constant 0 : i32
    return %arg1, %c0_i32, %c0_i32_0 : i32, i32, i32
  }
  func.func @transform_6(%arg0: i32, %arg1: i32) -> (i32, i32, i32) {
    %c0_i32 = arith.constant 0 : i32
    %c0_i32_0 = arith.constant 0 : i32
    %c0_i32_1 = arith.constant 0 : i32
    return %arg1, %c0_i32, %c0_i32_0 : i32, i32, i32
  }
  func.func @transform_7(%arg0: i32, %arg1: i32) -> (i32, i32, i32) {
    %c0_i32 = arith.constant 0 : i32
    %c0_i32_0 = arith.constant 0 : i32
    %c0_i32_1 = arith.constant 0 : i32
    return %arg1, %c0_i32, %c0_i32_0 : i32, i32, i32
  }
  func.func @transform_8(%arg0: i32, %arg1: i32) -> (i32, i32, i32) {
    %c0_i32 = arith.constant 0 : i32
    %c0_i32_0 = arith.constant 0 : i32
    %c0_i32_1 = arith.constant 0 : i32
    return %arg0, %c0_i32, %c0_i32_0 : i32, i32, i32
  }
}

</mosaic_0001>

<bundles_post_ra>
// kernel: tpu_custom_call.1
= control target key start
LH: loop header
LB: loop body
LE: loop exit
PB: predicated region body
PF: predicated region fallthrough
CT: control target
= control target key end

     0   :  { %s3825_s0 = inlined_call_operand.vmem [shape: f32[2,8,32], index: 0, kind: input, shape index: {}]   ;;  %s3826_s1 = inlined_call_operand.vmem [shape: bf16[2,8,24], index: 1, kind: input, shape index: {}]   ;;  %s3827_s2 = inlined_call_operand.vmem [shape: bf16[2,8,28], index: 2, kind: input, shape index: {}]   ;;  %s3828_s3 = inlined_call_operand.vmem [shape: bf16[2,8,32], index: 3, kind: input, shape index: {}]   ;;  %s3829_s4 = inlined_call_operand.vmem [shape: f32[2,8,8], index: 4, kind: input, shape index: {}]   ;;  %s3830_s5 = inlined_call_operand.vmem [shape: f32[2,35,128], index: 5, kind: input, shape index: {}]   ;;  %s3831_s6 = inlined_call_operand.vmem [shape: bf16[2,800,32], index: 6, kind: input, shape index: {}]   ;;  %s3832_s7 = inlined_call_operand.vmem [shape: bf16[2,32,64], index: 7, kind: input, shape index: {}]   ;;  %s3833_s8 = inlined_call_operand.hbm [shape: f32[2,8,32], index: 8, kind: output, shape index: {}]  }
   0x1   :  { %3847 = sst [smem:[#allocation16_spill]] %s3825_s0 }
   0x2   :  { %3848 = sst [smem:[#allocation17_spill]] %s3833_s8 }
   0x3   :  { %13 = vsyncpa [#allocation3], 0 }
   0x4   :  { %15 = vsyncpa [#allocation3 + $0x1], 0  ;;  %s3278_s27 = smov 0   ;;  %s3280_s28 = smov 0  }
   0x5   :  { %s3282_s29 = smov 0   ;;  %s3284_s30 = smov 0  }
   0x6   :  { %s3286_s9 = smov 0   ;;  %s3288_s10 = smov 0  }
   0x7   :  { %s3290_s11 = smov 0   ;;  %s3292_s12 = smov 0  }
   0x8 LB: > { %3849 = sst [smem:[#allocation5_spill]] %s3197_s27  ;;  %s2685_s13 = sadd.s32 4294967295, %s3225_s12   ;;  %s3225_s12 = sphi %s3292_s12, %s21_s12   ;;  %s3221_s11 = sphi %s3290_s11, %s3877_s11   ;;  %s3217_s10 = sphi %s3288_s10, %s3876_s10   ;;  %s3213_s9 = sphi %s3286_s9, %s3875_s9   ;;  %s3209_s30 = sphi %s3284_s30, %s3874_s30   ;;  %s3205_s29 = sphi %s3282_s29, %s3873_s29   ;;  %s3201_s28 = sphi %s3280_s28, %s3872_s28   ;;  %s3197_s27 = sphi %s3278_s27, %s3871_s27  }
   0x9   : > { %3850 = sst [smem:[#allocation6_spill]] %s3201_s28  ;;  %s2686_s14 = sadd.s32 4294967294, %s3225_s12  }
   0xa   : > { %3851 = sst [smem:[#allocation7_spill]] %s3205_s29  ;;  %s30_s15 = sadd.s32 1, %s3217_s10 }
   0xb   : > { %3852 = sst [smem:[#allocation8_spill]] %s3217_s10  ;;  %p31_p0 = scmp.ge.s32.totalorder %s30_s15, 2 }
   0xc   : > { %3853 = sst [smem:[#allocation9_spill]] %s3221_s11  ;;  %s33_s16 = sadd.s32 1, %s3221_s11 }
   0xd   : > { %3854 = sst [smem:[#allocation10_spill]] %s3225_s12  ;;  %p258_p1 = scmp.ne.s32.totalorder %s3205_s29, %s3201_s28 }
   0xe   : > { %p259_p2 = scmp.eq.s32.totalorder %s2685_s13, 3  ;;  %s3879_s15 = smov (%p31_p0, %s30_s15), 0 }
   0xf   : > { %3855 = sst [smem:[#allocation11_spill]] %s3879_s15  ;;  %s3881_s16 = smov (!%p31_p0, %s33_s16), %s3221_s11 }
  0x10   : > { %p3327_p3 = por %p259_p2, %p258_p1  ;;  %p264_p4 = scmp.ne.s32.totalorder %s3201_s28, %s3197_s27 }
  0x11   : > { %p35_p5 = scmp.ge.s32.totalorder %s3881_s16, 2  ;;  %p265_p6 = scmp.eq.s32.totalorder %s2686_s14, 3 }
  0x12   : > { %s3856_s17 = scalar_select %p3327_p3, 1, 0 }
  0x13   : > { %p2689_p7 = scmp.ge.s32.totalorder %s3225_s12, 1  ;;  %p342_p8 = scmp.lt.s32.totalorder %s3225_s12, 5 }
  0x14   : > { %3857 = sst [smem:[#allocation12_spill]] %s3856_s17  ;;  %s3883_s16 = smov (%p35_p5, %s3881_s16), 0 }
  0x15   : > { %3858 = sst [smem:[#allocation13_spill]] %s3883_s16  ;;  %p3337_p9 = por %p265_p6, %p264_p4 }
  0x16   : > { %p343_p10 = pnand %p2689_p7, %p342_p8  ;;  %s245_s19 = ssub.s32 %s3221_s11, %s3883_s16 }
  0x17   : > { %s3859_s18 = scalar_select %p3337_p9, 1, 0 }
  0x18   : > { %s248_s20 = sadd.s32 1, %s3205_s29  ;;  %p246_p11 = scmp.eq.s32.totalorder %s245_s19, 0 }
  0x19   : > { %3860 = sst [smem:[#allocation14_spill]] %s3859_s18  ;;  %346 = sbr.rel (%p343_p10) target bundleno = 6858 (0x1aca), region = 52 }
  0x1a   : > { %s3345_s21 = scalar_select %p246_p11, %s3205_s29, %s248_s20  }
  0x1b   : > { %s3837_s22 = sand.u32 (!%p343_p10), 1, %s3201_s28   ;;  %p406_p12 = scmp.lt.s32.totalorder (!%p343_p10), %s3213_s9, 1 }
  0x1c   : > { %3861 = sst [smem:[#allocation15_spill]] %s3345_s21  ;;  %s2690_s23 = sshll.u32 (!%p343_p10), %s3837_s22, 3 }
  0x1d   : > { %p426_p13 = scmp.lt.s32.totalorder (!%p343_p10), %s3209_s30, 1  ;;  %s3862_s0 = sld [smem:[#allocation16_spill]] (!%p343_p10) }
  0x1e   : > { %s407_s24 = scalar_select %p406_p12, %s3213_s9, 1 }
  0x1f   : > { %s427_s25 = scalar_select %p426_p13, %s3209_s30, 1 }
  0x20   : > { %s2691_s26 = sshll.u32 %s407_s24, 3  ;;  %s3354_s13 = sshll.u32 %s407_s24, 2 }
  0x21   : > { %s413_s11 = scalar_lea.vmem %s3826_s1, %s3354_s13  ;;  %s421_s24 = scalar_lea.vmem %s3828_s3, %s3354_s13 }
  0x22   : > { %s3374_s14 = scalar_lea.vmem %s3829_s4, %s2691_s26  ;;  %s2941_s19 = smul.u32 40, %s427_s25 }
  0x23   : > { %s409_s20 = scalar_lea.vmem %s3862_s0, %s2691_s26  ;;  %s2942_s17 = smul.u32 400, %s427_s25 }
  0x24   : > { %s2906_s0 = sshll.u32 %s427_s25, 4  ;;  %s3379_s15 = scalar_lea.vmem %s3830_s5, %s2941_s19 }
  0x25   : > { %s3384_s21 = scalar_lea.vmem %s3832_s7, %s2906_s0  ;;  %s3389_s22 = scalar_lea.vmem %s3831_s6, %s2942_s17 }
  0x26   : > { %s3391_s27 = scalar_lea.vmem [#allocation2], %s2690_s23  ;;  %p2700_p0 = scmp.ne.s32.totalorder %s3209_s30, 0 }
  0x28   : > { %445 = sbr.rel (%p2700_p0) target bundleno = 47 (0x2f), region = 56 }
  0x2d   : > { %v446_v0 = vld [vmem:[%s409_s20] sm:$0xff]  ;;  %vm447_vm0 = vcmask 261120  }
  0x2e   : > { %448 = vst.msk [vmem:[%s3391_s27] sm:$0xff] %vm447_vm0, %v446_v0 }
  0x2f PF: > { %vm458_vm1 = vcmask 261120   ;;  %v3227_v3 = vmov 32.0   ;;  %v2908_v15 = vld [vmem:[%s3389_s22 + $0x8] sm:$0xff]  ;;  %v2910_v16 = vld [vmem:[%s3389_s22 + $0x18] sm:$0xff]  ;;  %v2907_v18 = vld [vmem:[%s3389_s22] sm:$0xff]  ;;  %vm593_vm6 = vcmask 64512   ;;  %s3863_s26 = scalar_lea.vmem %s3827_s2, %s3354_s13 }
  0x30   : > { %3055 = vrcp.f32 %v3227_v3  ;;  %v2912_v17 = vld [vmem:[%s3389_s22 + $0x28] sm:$0xff]  ;;  %520 = vmatpush.bf16.msra.mxu0 %v2908_v15  ;;  %551 = vmatpush.bf16.msra.mxu1 %v2910_v16  ;;  %v2909_v19 = vld [vmem:[%s3389_s22 + $0x10] sm:$0xff]  ;;  %v2911_v20 = vld [vmem:[%s3389_s22 + $0x20] sm:$0xff]  ;;  %s3228_s0 = smov 120   ;;  %vm628_vm7 = vcmask 1043456   ;;  %v3229_v62 = vmov 0.0  }
  0x31   : > { %582 = vmatpush.bf16.msra.mxu2 %v2912_v17  ;;  %v3020_v30 = vld [vmem:[%s3379_s15] ss:$0 sm:$0xff]  ;;  %v3021_v33 = vld [vmem:[%s3379_s15 + $0x1] ss:$0 sm:$0xff]  ;;  %v3023_v37 = vld [vmem:[%s3379_s15 + $0x3] ss:$0 sm:$0xff] }
  0x32   : > { %v3022_v38 = vld [vmem:[%s3379_s15 + $0x2] ss:$0 sm:$0xff]  ;;  %v3024_v44 = vld [vmem:[%s3379_s15 + $0x4] ss:$0 sm:$0xff]  ;;  %s3230_s8 = smov 112   ;;  %s3231_s28 = smov 104  }
  0x33   : > { %v453_v61 = vld [vmem:[%s3374_s14] sm:$0xff]  ;;  %v646_v17 = vld [vmem:[%s3389_s22 + $0x30] sm:$0xf]  ;;  %vm1416_vm12 = vcmask 195584   ;;  %vm1849_vm13 = vcmask 1045504   ;;  %vm1845_vm14 = vcmask 228352  }
  0x34   : > { %521 = vmatpush.bf16.msra.mxu0 %v2907_v18  ;;  %552 = vmatpush.bf16.msra.mxu1 %v2909_v19  ;;  %vm454_vm8 = vcmp.eq.f32.partialorder %v453_v61, 0.0  ;;  %v651_v18 = vsel %vm628_vm7, %v646_v17, 0  ;;  %s3864_s13 = sld [smem:[#allocation6_spill]]  ;;  %s2903_s20 = sshll.u32 %s3213_s9, 3 }
  0x35   : > { %v3396_v1 = vld [vmem:[%s3391_s27] sm:$0xff]  ;;  %583 = vmatpush.bf16.msra.mxu2 %v2911_v20  ;;  %v3428_v63 = vsel %vm454_vm8, -1e+30, %v3229_v62  ;;  %s3865_s19 = sld [smem:[#allocation17_spill]] }
  0x36   : > { %v459_v2 = vsel %vm458_vm1, %v3396_v1, 0.0  ;;  %v3056_v4 = vpop.eup %3055 }
  0x37   : > { %460 = vadd.xlane.f32.xlu0 %v459_v2  ;;  %v463_v5 = vmul.f32 32.0, %v3056_v4  ;;  %vm467_vm2 = vweird.f32 %v3056_v4 }
  0x38   : > { %660 = vmatpush.bf16.msrb.mxu1 %v651_v18 }
  0x39   : > { %v464_v6 = vsub.f32 1.0, %v463_v5 }
  0x3a   : > { %s3867_s29 = sand.u32 1, %s3864_s13  }
  0x3b   : > { %v465_v7 = vmul.f32 %v3056_v4, %v464_v6  ;;  %s2526_s10 = scalar_lea.hbm %s3865_s19, %s2903_s20  ;;  %s2516_s18 = scalar_lea.sflag [#allocation3], %s3867_s29 }
  0x3d   : > { %v466_v8 = vadd.f32 %v3056_v4, %v465_v7 }
  0x3f   : > { %v3400_v9 = vsel %vm467_vm2, %v3056_v4, %v466_v8 }
  0xaa   : > { %v461_v10 = vpop.xlane.xlu0 %460 }
  0xab   : > { %v469_v11 = vmul.f32 %v3400_v9, %v461_v10 }
  0xad   : > { %v470_v12 = vsub.f32 %v3396_v1, %v469_v11 }
  0xaf   : > { %v471_v13 = vmul.f32 %v470_v12, %v470_v12 }
  0xb1   : > { %v472_v14 = vsel %vm458_vm1, %v471_v13, 0.0 }
  0xb2   : > { %473 = vadd.xlane.f32.xlu0 %v472_v14 }
 0x125   : > { %v474_v21 = vpop.xlane.xlu0 %473 }
 0x126   : > { %v475_v22 = vmul.f32 %v474_v21, %v3400_v9 }
 0x128   : > { %v476_v23 = vadd.f32 1e-05, %v475_v22  ;;  %v734_v22 = vld [vmem:[%s3389_s22 + $0x38] sm:$0xf] }
 0x12a   : > { %3057 = vrsqrt.f32 %v476_v23  ;;  %vm483_vm4 = vweird.f32 %v476_v23 }
 0x130   : > { %v3058_v24 = vpop.eup %3057 }
 0x131   : > { %v478_v25 = vmul.f32 %v3058_v24, %v476_v23  ;;  %vm484_vm3 = vweird.f32 %v3058_v24  ;;  %v739_v23 = vsel %vm628_vm7, %v734_v22, 0 }
 0x132   : > { %vm485_vm5 = vmor %vm483_vm4, %vm484_vm3 }
 0x133   : > { %v479_v26 = vmul.f32 %v3058_v24, %v478_v25 }
 0x135   : > { %v480_v27 = vmul.f32 0.5, %v479_v26 }
 0x137   : > { %v481_v28 = vsub.f32 1.5, %v480_v27 }
 0x139   : > { %v482_v29 = vmul.f32 %v3058_v24, %v481_v28 }
 0x13b   : > { %v486_v31 = vsel %vm485_vm5, %v3058_v24, %v482_v29 }
 0x13c   : > { %v487_v32 = vmul.f32 %v486_v31, %v470_v12 }
 0x13e   : > { %v489_v34 = vmul.f32 %v3020_v30, %v487_v32 }
 0x140   : > { %v491_v35 = vadd.f32 %v3021_v33, %v489_v34 }
 0x142   : > { %v492_v36 = vpack.c.bf16 %v491_v35, %v491_v35 }
 0x144   : > { %2709 = vmatmul.msk.bf16.vlgmr.msra.gmra.mxu0 %vm458_vm1, %v492_v36  ;;  %2718 = vmatmul.msk.bf16.vlgmr.msra.gmra.mxu1 %vm458_vm1, %v492_v36 }
 0x145   : > { %2727 = vmatmul.msk.bf16.vlgmr.msra.gmra.mxu2 %vm458_vm1, %v492_v36 }
 0x1c1   : > { %v523_v39 = vpop.f32.mrf.mxu0  ;;  %v554_v40 = vpop.f32.mrf.mxu1 }
 0x1c2   : > { %v555_v41 = vadd.f32 %v3023_v37, %v554_v40  ;;  %v524_v42 = vadd.f32 %v3022_v38, %v523_v39 }
 0x1c4   : > { %v590_v43 = vpack.c.bf16 %v555_v41, %v555_v41  ;;  %v589_v47 = vpack.c.bf16 %v524_v42, %v524_v42 }
 0x1c6   : > { %v674_v45 = vunpack.c.l.b16 %v590_v43  ;;  %v598_v46 = vsel %vm593_vm6, %v590_v43, 0  ;;  %v669_v54 = vunpack.c.l.b16 %v589_v47 }
 0x1c7   : > { %607 = vmatpush.bf16.xpose.msra.mxu3 %v598_v46 }
 0x1c8   : > { %v675_v48 = vpack.c.b16 %v674_v45, %v674_v45  ;;  %v585_v49 = vpop.f32.mrf.mxu2  ;;  %v670_v56 = vpack.c.b16 %v669_v54, %v669_v54 }
 0x1c9   : > { %v586_v50 = vadd.f32 %v3024_v44, %v585_v49  ;;  %v525_v51 = vpop.f32.mrf.mxu0  ;;  %v556_v52 = vpop.f32.mrf.mxu1 }
 0x1ca   : > { %676 = vrot.lane.b32.xlu1 %v675_v48, %s3228_s0 }
 0x1cb   : > { %v591_v53 = vpack.c.bf16 %v586_v50, %v586_v50 }
 0x1cd   : > { %v630_v55 = vsel %vm628_vm7, %v591_v53, 0  ;;  %v710_v15 = vunpack.c.l.b16 %v591_v53 }
 0x1ce   : > { %639 = vmatpush.bf16.msrb.mxu0 %v630_v55  ;;  %2728 = vmatmul.msk.bf16.vlgmr.msra.gmra.mxu3 %vm593_vm6, %v589_v47 }
 0x1cf   : > { %v3435_v16 = vpack.c.b16 %v710_v15, %v710_v15 }
 0x1d0   : > { %v587_v57 = vpop.f32.mrf.mxu2 }
 0x1d2   : > { %671 = vrot.lane.b32.xlu1 %v670_v56, %s3228_s0  ;;  %748 = vmatpush.bf16.msra.mxu0 %v739_v23 }
 0x23c   : > { %v677_v58 = vpop.permute.xlu1 %676 }
 0x23d   : > { %v682_v59 = vsel %vm593_vm6, %v677_v58, 0 }
 0x23e   : > { %691 = vmatpush.bf16.xpose.msrb.mxu2 %v682_v59 }
 0x244   : > { %v672_v60 = vpop.permute.xlu1 %671 }
 0x245   : > { %2731 = vmatmul.msk.bf16.vlgmr.msrb.gmra.mxu2 %vm593_vm6, %v672_v60 }
 0x251   : > { %v609_v0 = vpop.f32.mrf.mxu3 }
 0x252   : > { %v610_v2 = vadd.f32 %v609_v0, %v3428_v63 }
 0x254   : > { %v613_v3 = vsel %vm593_vm6, %v610_v2, -inf }
 0x255   : > { %614 = vmax.xlane.f32.xlu2 %v613_v3 }
 0x259   : > { %v611_v4 = vpop.f32.mrf.mxu3 }
 0x2c8   : > { %v693_v5 = vpop.f32.mrf.mxu2  ;;  %v615_v6 = vpop.xlane.xlu2 %614 }
 0x2c9   : > { %v694_v7 = vadd.f32 %v693_v5, %v3428_v63  ;;  %v616_v8 = vsub.f32 %v610_v2, %v615_v6 }
 0x2cb   : > { %v617_v10 = vmul.f32 1.442695, %v616_v8  ;;  %v697_v11 = vsel %vm593_vm6, %v694_v7, -inf }
 0x2cc   : > { %698 = vmax.xlane.f32.xlu2 %v697_v11 }
 0x2cd   : > { %3059 = vpow2.f32 %v617_v10 }
 0x2d0   : > { %v695_v12 = vpop.f32.mrf.mxu2 }
 0x2d3   : > { %v3060_v13 = vpop.eup %3059 }
 0x2d4   : > { %v619_v14 = vsel %vm593_vm6, %v3060_v13, 0.0 }
 0x2d5   : > { %620 = vadd.xlane.f32.xlu0 %v619_v14 }
 0x2e4   : > { %712 = vrot.lane.b32.xlu2 %v3435_v16, %s3228_s0 }
 0x2e9   : > { %757 = vrot.lane.b32.xlu0 %v675_v48, %s3230_s8 }
 0x2ec   : > { %755 = vrot.lane.b32.xlu2 %v670_v56, %s3230_s8 }
 0x2f1   : > { %835 = vrot.lane.b32.xlu0 %v675_v48, %s3231_s28 }
 0x2f4   : > { %833 = vrot.lane.b32.xlu2 %v670_v56, %s3231_s28  ;;  %v3025_v56 = vld [vmem:[%s3379_s15 + $0x5] ss:$0 sm:$0xff] }
 0x33f   : > { %v699_v19 = vpop.xlane.xlu2 %698 }
 0x340   : > { %v700_v20 = vsub.f32 %v694_v7, %v699_v19  ;;  %v812_v19 = vld [vmem:[%s3389_s22 + $0x40] sm:$0xf] }
 0x342   : > { %v701_v21 = vmul.f32 1.442695, %v700_v20  ;;  %v817_v20 = vsel %vm628_vm7, %v812_v19, 0 }
 0x344   : > { %3061 = vpow2.f32 %v701_v21 }
 0x347   : > { %v713_v24 = vpop.permute.xlu2 %712 }
 0x348   : > { %v621_v25 = vpop.xlane.xlu0 %620  ;;  %v718_v26 = vsel %vm628_vm7, %v713_v24, 0 }
 0x349   : > { %3063 = vrcp.f32 %v621_v25  ;;  %727 = vmatpush.bf16.msrb.mxu3 %v718_v26 }
 0x34a   : > { %v3062_v27 = vpop.eup %3061 }
 0x34b   : > { %v703_v28 = vsel %vm593_vm6, %v3062_v27, 0.0 }
 0x34c   : > { %704 = vadd.xlane.f32.xlu1 %v703_v28  ;;  %v890_v28 = vld [vmem:[%s3389_s22 + $0x48] sm:$0xf] }
 0x34d   : > { %826 = vmatpush.bf16.msra.mxu3 %v817_v20  ;;  %v2917_v20 = vld [vmem:[%s3389_s22 + $0x70] sm:$0xff] }
 0x34f   : > { %v3064_v29 = vpop.eup %3063  ;;  %v756_v45 = vpop.permute.xlu2 %755 }
 0x350   : > { %v623_v30 = vmul.f32 %v3064_v29, %v3060_v13  ;;  %v895_v29 = vsel %vm628_vm7, %v890_v28, 0 }
 0x352   : > { %v624_v31 = vpack.c.bf16 %v623_v30, %v623_v30 }
 0x354   : > { %2729 = vmatmul.msk.bf16.vlgmr.msrb.gmra.mxu0 %vm593_vm6, %v624_v31 }
 0x357   : > { %v834_v51 = vpop.permute.xlu2 %833 }
 0x35b   : > { %v758_v32 = vpop.permute.xlu0 %757 }
 0x35c   : > { %v763_v33 = vsel %vm593_vm6, %v758_v32, 0 }
 0x35d   : > { %772 = vmatpush.bf16.xpose.msra.mxu1 %v763_v33 }
 0x363   : > { %v836_v34 = vpop.permute.xlu0 %835 }
 0x364   : > { %v841_v35 = vsel %vm593_vm6, %v836_v34, 0 }
 0x365   : > { %850 = vmatpush.bf16.xpose.msrb.mxu0 %v841_v35  ;;  %790 = vrot.lane.b32.xlu1 %v3435_v16, %s3230_s8 }
 0x3bf   : > { %v705_v36 = vpop.xlane.xlu1 %704 }
 0x3c0   : > { %3065 = vrcp.f32 %v705_v36 }
 0x3c6   : > { %v3066_v37 = vpop.eup %3065 }
 0x3c7   : > { %v707_v38 = vmul.f32 %v3066_v37, %v3062_v27 }
 0x3c9   : > { %v708_v39 = vpack.c.bf16 %v707_v38, %v707_v38 }
 0x3cb   : > { %2732 = vmatmul.msk.bf16.vlgmr.msrb.gmra.mxu3 %vm593_vm6, %v708_v39 }
 0x3d1   : > { %v641_v40 = vpop.f32.mrf.mxu0 }
 0x3d2   : > { %v645_v41 = vpack.c.bf16 %v641_v40, %v641_v40 }
 0x3d4   : > { %2730 = vmatmul.msk.bf16.vlgmr.msrb.gmra.mxu1 %vm593_vm6, %v645_v41 }
 0x3d7   : > { %v791_v42 = vpop.permute.xlu1 %790 }
 0x3d8   : > { %v796_v43 = vsel %vm628_vm7, %v791_v42, 0 }
 0x3d9   : > { %v643_v44 = vpop.f32.mrf.mxu0  ;;  %805 = vmatpush.bf16.msra.mxu2 %v796_v43 }
 0x3dd   : > { %904 = vmatpush.bf16.msrb.mxu2 %v895_v29 }
 0x3e4   : > { %2734 = vmatmul.msk.bf16.vlgmr.msra.gmra.mxu1 %vm593_vm6, %v756_v45 }
 0x44e   : > { %v729_v46 = vpop.f32.mrf.mxu3 }
 0x44f   : > { %v733_v47 = vpack.c.bf16 %v729_v46, %v729_v46  ;;  %v2916_v46 = vld [vmem:[%s3389_s22 + $0x68] sm:$0xff] }
 0x451   : > { %v662_v48 = vpop.f32.mrf.mxu1  ;;  %2733 = vmatmul.msk.bf16.vlgmr.msra.gmra.mxu0 %vm593_vm6, %v733_v47  ;;  %v452_v47 = vld [vmem:[%s421_s24] sm:$0xf] }
 0x452   : > { %v667_v57 = vadd.f32 %v3025_v56, %v662_v48  ;;  %1002 = vmatpush.bf16.msra.mxu0 %v2916_v46  ;;  %v2914_v48 = vld [vmem:[%s3389_s22 + $0x58] sm:$0xff] }
 0x453   : > { %968 = vmatpush.bf16.msrb.mxu3 %v2914_v48 }
 0x456   : > { %v731_v49 = vpop.f32.mrf.mxu3 }
 0x457   : > { %v2913_v49 = vld [vmem:[%s3389_s22 + $0x50] sm:$0xff] }
 0x458   : > { %969 = vmatpush.bf16.msrb.mxu3 %v2913_v49 }
 0x459   : > { %v664_v50 = vpop.f32.mrf.mxu1 }
 0x461   : > { %v774_v52 = vpop.f32.mrf.mxu1  ;;  %2737 = vmatmul.msk.bf16.vlgmr.msrb.gmra.mxu0 %vm593_vm6, %v834_v51 }
 0x462   : > { %v775_v53 = vadd.f32 %v774_v52, %v3428_v63 }
 0x464   : > { %v778_v54 = vsel %vm593_vm6, %v775_v53, -inf }
 0x465   : > { %779 = vmax.xlane.f32.xlu0 %v778_v54 }
 0x469   : > { %v776_v55 = vpop.f32.mrf.mxu1 }
 0x479   : > { %868 = vrot.lane.b32.xlu0 %v3435_v16, %s3231_s28 }
 0x4ce   : > { %v750_v58 = vpop.f32.mrf.mxu0 }
 0x4cf   : > { %v754_v59 = vadd.f32 %v750_v58, %v667_v57 }
 0x4d6   : > { %v752_v60 = vpop.f32.mrf.mxu0 }
 0x4d8   : > { %v780_v61 = vpop.xlane.xlu0 %779 }
 0x4d9   : > { %v781_v62 = vsub.f32 %v775_v53, %v780_v61 }
 0x4db   : > { %v782_v0 = vmul.f32 1.442695, %v781_v62  ;;  %v3029_v62 = vld [vmem:[%s3379_s15 + $0x7] ss:$0 sm:$0xff] }
 0x4dd   : > { %3067 = vpow2.f32 %v782_v0 }
 0x4de   : > { %v852_v2 = vpop.f32.mrf.mxu0 }
 0x4df   : > { %v853_v3 = vadd.f32 %v852_v2, %v3428_v63 }
 0x4e1   : > { %v856_v4 = vsel %vm593_vm6, %v853_v3, -inf }
 0x4e2   : > { %857 = vmax.xlane.f32.xlu2 %v856_v4  ;;  %v3030_v4 = vld [vmem:[%s3379_s15 + $0x9] ss:$0 sm:$0xff] }
 0x4e3   : > { %v3068_v5 = vpop.eup %3067 }
 0x4e4   : > { %v784_v6 = vsel %vm593_vm6, %v3068_v5, 0.0 }
 0x4e5   : > { %785 = vadd.xlane.f32.xlu1 %v784_v6 }
 0x4e6   : > { %v854_v7 = vpop.f32.mrf.mxu0 }
 0x4eb   : > { %v869_v8 = vpop.permute.xlu0 %868 }
 0x4ec   : > { %v874_v10 = vsel %vm628_vm7, %v869_v8, 0 }
 0x4ed   : > { %883 = vmatpush.bf16.msrb.mxu1 %v874_v10 }
 0x555   : > { %v858_v11 = vpop.xlane.xlu2 %857 }
 0x556   : > { %v859_v12 = vsub.f32 %v853_v3, %v858_v11 }
 0x558   : > { %v860_v13 = vmul.f32 1.442695, %v859_v12  ;;  %v786_v14 = vpop.xlane.xlu1 %785 }
 0x559   : > { %3069 = vrcp.f32 %v786_v14  ;;  %v3031_v14 = vld [vmem:[%s3379_s15 + $0x8] ss:$0 sm:$0xff] }
 0x55a   : > { %3071 = vpow2.f32 %v860_v13  ;;  %v2918_v13 = vld [vmem:[%s3389_s22 + $0x78] sm:$0xff] }
 0x55b   : > { %1033 = vmatpush.bf16.msra.mxu1 %v2918_v13 }
 0x55f   : > { %v3070_v63 = vpop.eup %3069  ;;  %1034 = vmatpush.bf16.msra.mxu1 %v2917_v20  ;;  %v3033_v20 = vld [vmem:[%s3379_s15 + $0xb] ss:$0 sm:$0xff] }
 0x560   : > { %v3072_v15 = vpop.eup %3071  ;;  %v788_v16 = vmul.f32 %v3070_v63, %v3068_v5 }
 0x561   : > { %v862_v17 = vsel %vm593_vm6, %v3072_v15, 0.0 }
 0x562   : > { %v789_v18 = vpack.c.bf16 %v788_v16, %v788_v16  ;;  %863 = vadd.xlane.f32.xlu1 %v862_v17 }
 0x564   : > { %2735 = vmatmul.msk.bf16.vlgmr.msra.gmra.mxu2 %vm593_vm6, %v789_v18 }
 0x5d5   : > { %v864_v21 = vpop.xlane.xlu1 %863 }
 0x5d6   : > { %3073 = vrcp.f32 %v864_v21 }
 0x5dc   : > { %v3074_v22 = vpop.eup %3073 }
 0x5dd   : > { %v866_v23 = vmul.f32 %v3074_v22, %v3072_v15 }
 0x5df   : > { %v867_v24 = vpack.c.bf16 %v866_v23, %v866_v23 }
 0x5e1   : > { %2738 = vmatmul.msk.bf16.vlgmr.msrb.gmra.mxu1 %vm593_vm6, %v867_v24 }
 0x5e7   : > { %v807_v25 = vpop.f32.mrf.mxu2 }
 0x5e8   : > { %v811_v26 = vpack.c.bf16 %v807_v25, %v807_v25 }
 0x5ea   : > { %2736 = vmatmul.msk.bf16.vlgmr.msra.gmra.mxu3 %vm593_vm6, %v811_v26 }
 0x5ef   : > { %v809_v27 = vpop.f32.mrf.mxu2 }
 0x5f0   : > { %v3032_v27 = vld [vmem:[%s3379_s15 + $0xa] ss:$0 sm:$0xff] }
 0x5f1   : > { %2766 = vmatmul.msk.bf16.vlgmr.msra.gmra.mxu1 %vm458_vm1, %v452_v47 }
 0x65e   : > { %v885_v30 = vpop.f32.mrf.mxu1 }
 0x65f   : > { %v889_v31 = vpack.c.bf16 %v885_v30, %v885_v30 }
 0x661   : > { %2739 = vmatmul.msk.bf16.vlgmr.msrb.gmra.mxu2 %vm593_vm6, %v889_v31 }
 0x666   : > { %v887_v32 = vpop.f32.mrf.mxu1 }
 0x66d   : > { %v828_v33 = vpop.f32.mrf.mxu3 }
 0x66e   : > { %v832_v34 = vadd.f32 %v828_v33, %v754_v59  ;;  %v3026_v59 = vld [vmem:[%s3379_s15 + $0x6] ss:$0 sm:$0xff]  ;;  %v1036_v28 = vpop.f32.mrf.mxu1  ;;  %v1095_v33 = vld [vmem:[%s3389_s22 + $0x80] sm:$0xf] }
 0x66f   : > { %v1037_v29 = vadd.f32 %v3032_v27, %v1036_v28 }
 0x671   : > { %v1042_v30 = vpack.c.bf16 %v1037_v29, %v1037_v29 }
 0x673   : > { %v1079_v31 = vsel %vm628_vm7, %v1042_v30, 0  ;;  %v1159_v46 = vunpack.c.l.b16 %v1042_v30 }
 0x674   : > { %1088 = vmatpush.bf16.msra.mxu3 %v1079_v31 }
 0x675   : > { %v830_v35 = vpop.f32.mrf.mxu3 }
 0x676   : > { %v1038_v32 = vpop.f32.mrf.mxu1 }
 0x6e4   : > { %v906_v36 = vpop.f32.mrf.mxu2 }
 0x6e5   : > { %v910_v37 = vadd.f32 %v906_v36, %v832_v34  ;;  %v1100_v34 = vsel %vm628_vm7, %v1095_v33, 0 }
 0x6e7   : > { %v3479_v38 = vadd.f32 %v910_v37, %v3396_v1  ;;  %v2915_v1 = vld [vmem:[%s3389_s22 + $0x60] sm:$0xff] }
 0x6e8   : > { %1003 = vmatpush.bf16.msra.mxu0 %v2915_v1  ;;  %v3527_v1 = vpack.c.b16 %v1159_v46, %v1159_v46 }
 0x6e9   : > { %v914_v39 = vsel %vm458_vm1, %v3479_v38, 0.0 }
 0x6ea   : > { %915 = vadd.xlane.f32.xlu2 %v914_v39 }
 0x6eb   : > { %2757 = vmatmul.msk.bf16.vlgmr.msra.gmra.mxu0 %vm458_vm1, %v452_v47  ;;  %v1183_v47 = vld [vmem:[%s3389_s22 + $0x88] sm:$0xf] }
 0x6ec   : > { %v908_v40 = vpop.f32.mrf.mxu2  ;;  %1109 = vmatpush.bf16.msrb.mxu0 %v1100_v34  ;;  %v1188_v48 = vsel %vm628_vm7, %v1183_v47, 0 }
 0x75d   : > { %v916_v41 = vpop.xlane.xlu2 %915 }
 0x75e   : > { %v917_v42 = vmul.f32 %v916_v41, %v3400_v9 }
 0x760   : > { %v918_v43 = vsub.f32 %v3479_v38, %v917_v42 }
 0x762   : > { %v919_v44 = vmul.f32 %v918_v43, %v918_v43 }
 0x764   : > { %v920_v45 = vsel %vm458_vm1, %v919_v44, 0.0 }
 0x765   : > { %921 = vadd.xlane.f32.xlu2 %v920_v45 }
 0x768   : > { %v1005_v5 = vpop.f32.mrf.mxu0 }
 0x769   : > { %v1006_v6 = vadd.f32 %v3030_v4, %v1005_v5 }
 0x76b   : > { %v1041_v7 = vpack.c.bf16 %v1006_v6, %v1006_v6 }
 0x76d   : > { %v1048_v8 = vsel %vm593_vm6, %v1041_v7, 0  ;;  %v1123_v10 = vunpack.c.l.b16 %v1041_v7 }
 0x76e   : > { %1057 = vmatpush.bf16.xpose.msra.mxu2 %v1048_v8 }
 0x76f   : > { %v1124_v11 = vpack.c.b16 %v1123_v10, %v1123_v10 }
 0x770   : > { %v1007_v12 = vpop.f32.mrf.mxu0 }
 0x77d   : > { %1125 = vrot.lane.b32.xlu2 %v1124_v11, %s3228_s0 }
 0x7d8   : > { %v922_v50 = vpop.xlane.xlu2 %921 }
 0x7d9   : > { %v923_v51 = vmul.f32 %v922_v50, %v3400_v9 }
 0x7db   : > { %v924_v52 = vadd.f32 1e-05, %v923_v51 }
 0x7dd   : > { %3075 = vrsqrt.f32 %v924_v52  ;;  %vm931_vm10 = vweird.f32 %v924_v52 }
 0x7e0   : > { %v1126_v21 = vpop.permute.xlu2 %1125 }
 0x7e1   : > { %v1131_v22 = vsel %vm593_vm6, %v1126_v21, 0 }
 0x7e2   : > { %1140 = vmatpush.bf16.xpose.msrb.mxu1 %v1131_v22 }
 0x7e3   : > { %v3076_v53 = vpop.eup %3075 }
 0x7e4   : > { %v926_v54 = vmul.f32 %v3076_v53, %v924_v52  ;;  %vm932_vm9 = vweird.f32 %v3076_v53 }
 0x7e5   : > { %vm933_vm11 = vmor %vm931_vm10, %vm932_vm9 }
 0x7e6   : > { %v927_v55 = vmul.f32 %v3076_v53, %v926_v54 }
 0x7e8   : > { %v928_v56 = vmul.f32 0.5, %v927_v55 }
 0x7ea   : > { %v929_v57 = vsub.f32 1.5, %v928_v56 }
 0x7ec   : > { %v930_v58 = vmul.f32 %v3076_v53, %v929_v57 }
 0x7ee   : > { %v934_v60 = vsel %vm933_vm11, %v3076_v53, %v930_v58 }
 0x7ef   : > { %v3498_v61 = vmul.f32 %v934_v60, %v918_v43 }
 0x7f1   : > { %v937_v0 = vmul.f32 %v3026_v59, %v3498_v61 }
 0x7f3   : > { %v939_v2 = vadd.f32 %v3029_v62, %v937_v0 }
 0x7f5   : > { %v940_v3 = vpack.c.bf16 %v939_v2, %v939_v2 }
 0x7f7   : > { %2748 = vmatmul.msk.bf16.vlgmr.msrb.gmra.mxu3 %vm458_vm1, %v940_v3 }
 0x7f8   : > { %1197 = vmatpush.bf16.msrb.mxu3 %v1188_v48  ;;  %v1261_v48 = vld [vmem:[%s3389_s22 + $0x90] sm:$0xf] }
 0x87a   : > { %v971_v63 = vpop.f32.mrf.mxu3 }
 0x87b   : > { %v972_v15 = vadd.f32 %v3031_v14, %v971_v63 }
 0x87d   : > { %v1040_v16 = vpack.c.bf16 %v972_v15, %v972_v15 }
 0x87f   : > { %v1118_v17 = vunpack.c.l.b16 %v1040_v16  ;;  %2767 = vmatmul.msk.bf16.vlgmr.msra.gmra.mxu2 %vm593_vm6, %v1040_v16 }
 0x881   : > { %v3509_v18 = vpack.c.b16 %v1118_v17, %v1118_v17 }
 0x882   : > { %v973_v19 = vpop.f32.mrf.mxu3 }
 0x883   : > { %1120 = vrot.lane.b32.xlu0 %v3509_v18, %s3228_s0 }
 0x8f5   : > { %v1121_v23 = vpop.permute.xlu0 %1120 }
 0x8f6   : > { %2770 = vmatmul.msk.bf16.vlgmr.msrb.gmra.mxu1 %vm593_vm6, %v1121_v23 }
 0x902   : > { %v1059_v24 = vpop.f32.mrf.mxu2 }
 0x903   : > { %v1063_v25 = vsel %vm593_vm6, %v1059_v24, -inf }
 0x904   : > { %1064 = vmax.xlane.f32.xlu0 %v1063_v25 }
 0x90a   : > { %v1061_v26 = vpop.f32.mrf.mxu2 }
 0x918   : > { %1206 = vrot.lane.b32.xlu0 %v1124_v11, %s3230_s8 }
 0x973   : > { %v1142_v35 = vpop.f32.mrf.mxu1 }
 0x974   : > { %v1146_v36 = vsel %vm593_vm6, %v1142_v35, -inf }
 0x975   : > { %1147 = vmax.xlane.f32.xlu2 %v1146_v36 }
 0x977   : > { %v1065_v37 = vpop.xlane.xlu0 %1064 }
 0x978   : > { %v1066_v39 = vsub.f32 %v1059_v24, %v1065_v37 }
 0x97a   : > { %v1067_v40 = vmul.f32 1.442695, %v1066_v39 }
 0x97b   : > { %v1144_v41 = vpop.f32.mrf.mxu1 }
 0x97c   : > { %3077 = vpow2.f32 %v1067_v40 }
 0x982   : > { %v3078_v42 = vpop.eup %3077 }
 0x983   : > { %v1069_v43 = vsel %vm593_vm6, %v3078_v42, 0.0 }
 0x984   : > { %1070 = vadd.xlane.f32.xlu1 %v1069_v43 }
 0x98a   : > { %v1207_v44 = vpop.permute.xlu0 %1206 }
 0x98b   : > { %v1212_v45 = vsel %vm593_vm6, %v1207_v44, 0 }
 0x98c   : > { %1221 = vmatpush.bf16.xpose.msra.mxu0 %v1212_v45  ;;  %v1404_v45 = vld [vmem:[%s3389_s22 + $0xb8] sm:$0xf] }
 0x98d   : > { %1284 = vrot.lane.b32.xlu2 %v1124_v11, %s3231_s28  ;;  %v1412_v46 = vunpack.c.l.b16 %v1404_v45 }
 0x995   : > { %1239 = vrot.lane.b32.xlu2 %v3527_v1, %s3230_s8 }
 0x99d   : > { %1161 = vrot.lane.b32.xlu1 %v3527_v1, %s3228_s0 }
 0x9e8   : > { %v1148_v49 = vpop.xlane.xlu2 %1147 }
 0x9e9   : > { %v1149_v50 = vsub.f32 %v1142_v35, %v1148_v49  ;;  %v2921_v49 = vld [vmem:[%s3389_s22 + $0xb0] sm:$0xff] }
 0x9eb   : > { %v1150_v51 = vmul.f32 1.442695, %v1149_v50  ;;  %v1266_v50 = vsel %vm628_vm7, %v1261_v48, 0 }
 0x9ed   : > { %3079 = vpow2.f32 %v1150_v51  ;;  %v3570_v51 = vld [vmem:[%s413_s11] sm:$0xf] }
 0x9f0   : > { %v1285_v52 = vpop.permute.xlu2 %1284 }
 0x9f1   : > { %v1290_v62 = vsel %vm593_vm6, %v1285_v52, 0  ;;  %v2920_v52 = vld [vmem:[%s3389_s22 + $0xa8] sm:$0xff] }
 0x9f3   : > { %v3080_v53 = vpop.eup %3079 }
 0x9f4   : > { %v1152_v54 = vsel %vm593_vm6, %v3080_v53, 0.0 }
 0x9f5   : > { %1153 = vadd.xlane.f32.xlu1 %v1152_v54 }
 0x9f7   : > { %v1071_v55 = vpop.xlane.xlu1 %1070 }
 0x9f8   : > { %3081 = vrcp.f32 %v1071_v55  ;;  %v1240_v56 = vpop.permute.xlu2 %1239 }
 0x9f9   : > { %v1245_v57 = vsel %vm628_vm7, %v1240_v56, 0 }
 0x9fa   : > { %1254 = vmatpush.bf16.msra.mxu1 %v1245_v57 }
 0x9fe   : > { %v3082_v58 = vpop.eup %3081 }
 0x9ff   : > { %v1073_v59 = vmul.f32 %v3082_v58, %v3078_v42 }
 0xa01   : > { %v1074_v60 = vpack.c.bf16 %v1073_v59, %v1073_v59 }
 0xa03   : > { %2768 = vmatmul.msk.bf16.vlgmr.msra.gmra.mxu3 %vm593_vm6, %v1074_v60  ;;  %v3027_v60 = vld [vmem:[%s3379_s15 + $0xc] ss:$0 sm:$0xff] }
 0xa04   : > { %1299 = vmatpush.bf16.xpose.msra.mxu3 %v1290_v62 }
 0xa0e   : > { %1204 = vrot.lane.b32.xlu1 %v3509_v18, %s3230_s8 }
 0xa0f   : > { %v1162_v0 = vpop.permute.xlu1 %1161 }
 0xa10   : > { %v1167_v2 = vsel %vm628_vm7, %v1162_v0, 0  ;;  %v1364_v0 = vmul.f32 %v3027_v60, %v3498_v61 }
 0xa11   : > { %1176 = vmatpush.bf16.msrb.mxu2 %v1167_v2  ;;  %v3034_v2 = vld [vmem:[%s3379_s15 + $0xd] ss:$0 sm:$0xff] }
 0xa15   : > { %1275 = vmatpush.bf16.msra.mxu2 %v1266_v50 }
 0xa16   : > { %1282 = vrot.lane.b32.xlu1 %v3509_v18, %s3231_s28 }
 0xa68   : > { %v1154_v3 = vpop.xlane.xlu1 %1153 }
 0xa69   : > { %3083 = vrcp.f32 %v1154_v3  ;;  %v1366_v3 = vadd.f32 %v3034_v2, %v1364_v0 }
 0xa6f   : > { %v3084_v4 = vpop.eup %3083 }
 0xa70   : > { %v1156_v5 = vmul.f32 %v3084_v4, %v3080_v53  ;;  %v2919_v53 = vld [vmem:[%s3389_s22 + $0xa0] sm:$0xff]  ;;  %v1367_v4 = vpack.c.bf16 %v1366_v3, %v1366_v3 }
 0xa72   : > { %v1157_v6 = vpack.c.bf16 %v1156_v5, %v1156_v5  ;;  %v1339_v5 = vld [vmem:[%s3389_s22 + $0x98] sm:$0xf] }
 0xa74   : > { %2771 = vmatmul.msk.bf16.vlgmr.msrb.gmra.mxu2 %vm593_vm6, %v1157_v6  ;;  %v1344_v6 = vsel %vm628_vm7, %v1339_v5, 0 }
 0xa75   : > { %1395 = vmatpush.bf16.msrb.mxu2 %v2920_v52  ;;  %1353 = vmatpush.bf16.msrb.mxu1 %v1344_v6 }
 0xa79   : > { %1396 = vmatpush.bf16.msrb.mxu2 %v2919_v53  ;;  %v3037_v53 = vld [vmem:[%s3379_s15 + $0x10] ss:$0 sm:$0xff] }
 0xa80   : > { %v1205_v11 = vpop.permute.xlu1 %1204 }
 0xa86   : > { %v1090_v7 = vpop.f32.mrf.mxu3 }
 0xa87   : > { %v1094_v8 = vpack.c.bf16 %v1090_v7, %v1090_v7  ;;  %v3035_v7 = vld [vmem:[%s3379_s15 + $0xf] ss:$0 sm:$0xff] }
 0xa88   : > { %v1283_v15 = vpop.permute.xlu1 %1282 }
 0xa89   : > { %2769 = vmatmul.msk.bf16.vlgmr.msrb.gmra.mxu0 %vm593_vm6, %v1094_v8 }
 0xa8e   : > { %v1092_v10 = vpop.f32.mrf.mxu3 }
 0xa99   : > { %2773 = vmatmul.msk.bf16.vlgmr.msra.gmra.mxu0 %vm593_vm6, %v1205_v11 }
 0xaf7   : > { %v1178_v12 = vpop.f32.mrf.mxu2 }
 0xaf8   : > { %v1182_v13 = vpack.c.bf16 %v1178_v12, %v1178_v12 }
 0xafa   : > { %2772 = vmatmul.msk.bf16.vlgmr.msrb.gmra.mxu3 %vm593_vm6, %v1182_v13 }
 0xaff   : > { %v1180_v14 = vpop.f32.mrf.mxu2 }
 0xb06   : > { %v1111_v63 = vpop.f32.mrf.mxu0 }
 0xb07   : > { %v1116_v21 = vadd.f32 %v3033_v20, %v1111_v63 }
 0xb0a   : > { %2776 = vmatmul.msk.bf16.vlgmr.msra.gmra.mxu3 %vm593_vm6, %v1283_v15 }
 0xb0e   : > { %v1113_v16 = vpop.f32.mrf.mxu0 }
 0xb16   : > { %v1223_v17 = vpop.f32.mrf.mxu0 }
 0xb17   : > { %v1227_v18 = vsel %vm593_vm6, %v1223_v17, -inf }
 0xb18   : > { %1228 = vmax.xlane.f32.xlu0 %v1227_v18 }
 0xb1e   : > { %v1225_v19 = vpop.f32.mrf.mxu0 }
 0xb1f   : > { %v3036_v19 = vld [vmem:[%s3379_s15 + $0xe] ss:$0 sm:$0xff] }
 0xb7d   : > { %v1199_v22 = vpop.f32.mrf.mxu3 }
 0xb7e   : > { %v3551_v23 = vadd.f32 %v1199_v22, %v1116_v21 }
 0xb85   : > { %v1201_v24 = vpop.f32.mrf.mxu3 }
 0xb8b   : > { %v1229_v25 = vpop.xlane.xlu0 %1228 }
 0xb8c   : > { %v1230_v26 = vsub.f32 %v1223_v17, %v1229_v25 }
 0xb8d   : > { %v1301_v27 = vpop.f32.mrf.mxu3 }
 0xb8e   : > { %v1231_v28 = vmul.f32 1.442695, %v1230_v26  ;;  %v1305_v29 = vsel %vm593_vm6, %v1301_v27, -inf }
 0xb8f   : > { %1306 = vmax.xlane.f32.xlu2 %v1305_v29 }
 0xb90   : > { %3085 = vpow2.f32 %v1231_v28 }
 0xb95   : > { %v1303_v30 = vpop.f32.mrf.mxu3 }
 0xb96   : > { %v3086_v31 = vpop.eup %3085 }
 0xb97   : > { %v1233_v32 = vsel %vm593_vm6, %v3086_v31, 0.0 }
 0xb98   : > { %1234 = vadd.xlane.f32.xlu1 %v1233_v32 }
 0xbb1   : > { %1317 = vrot.lane.b32.xlu1 %v3527_v1, %s3231_s28  ;;  %v1414_v1 = vpack.c.b16 %v1412_v46, %v1412_v46 }
 0xbb3   : > { %v1421_v47 = vsel %vm628_vm7, %v1414_v1, 0 }
 0xbb4   : > { %1429 = vmatpush.bf16.msrb.mxu3 %v1421_v47 }
 0xbb8   : > { %1430 = vmatpush.bf16.msrb.mxu3 %v2921_v49 }
 0xbbb   : > { %2792 = vmatmul.msk.bf16.vlgmr.msrb.gmra.mxu3 %vm1416_vm12, %v3570_v51 }
 0xc02   : > { %v1307_v33 = vpop.xlane.xlu2 %1306 }
 0xc03   : > { %v1308_v34 = vsub.f32 %v1301_v27, %v1307_v33 }
 0xc05   : > { %v1309_v35 = vmul.f32 1.442695, %v1308_v34 }
 0xc07   : > { %3087 = vpow2.f32 %v1309_v35 }
 0xc0b   : > { %v1235_v36 = vpop.xlane.xlu1 %1234 }
 0xc0c   : > { %3089 = vrcp.f32 %v1235_v36  ;;  %v1438_v36 = vld [vmem:[%s3389_s22 + $0xc8] sm:$0xf] }
 0xc0d   : > { %v3088_v37 = vpop.eup %3087 }
 0xc0e   : > { %v1311_v39 = vsel %vm593_vm6, %v3088_v37, 0.0 }
 0xc0f   : > { %1312 = vadd.xlane.f32.xlu0 %v1311_v39 }
 0xc12   : > { %v3090_v40 = vpop.eup %3089 }
 0xc13   : > { %v1237_v41 = vmul.f32 %v3090_v40, %v3086_v31 }
 0xc15   : > { %v1238_v42 = vpack.c.bf16 %v1237_v41, %v1237_v41 }
 0xc17   : > { %2774 = vmatmul.msk.bf16.vlgmr.msra.gmra.mxu1 %vm593_vm6, %v1238_v42 }
 0xc23   : > { %v1318_v43 = vpop.permute.xlu1 %1317 }
 0xc24   : > { %v1323_v44 = vsel %vm628_vm7, %v1318_v43, 0 }
 0xc25   : > { %1332 = vmatpush.bf16.msrb.mxu0 %v1323_v44  ;;  %v2922_v44 = vld [vmem:[%s3389_s22 + $0xc0] sm:$0xff] }
 0xc3e   : > { %v1432_v8 = vpop.f32.mrf.mxu3 }
 0xc3f   : > { %v1433_v10 = vadd.f32 %v3035_v7, %v1432_v8  ;;  %v1609_v7 = vld [vmem:[%s3389_s22 + $0xd8] sm:$0xf] }
 0xc40   : > { %v1614_v8 = vsel %vm628_vm7, %v1609_v7, 0 }
 0xc41   : > { %v1467_v11 = vpack.c.bf16 %v1433_v10, %v1433_v10 }
 0xc43   : > { %v1474_v12 = vsel %vm593_vm6, %v1467_v11, 0  ;;  %v1549_v27 = vunpack.c.l.b16 %v1467_v11 }
 0xc44   : > { %1483 = vmatpush.bf16.xpose.msra.mxu1 %v1474_v12 }
 0xc45   : > { %v1550_v28 = vpack.c.b16 %v1549_v27, %v1549_v27 }
 0xc46   : > { %v1434_v13 = vpop.f32.mrf.mxu3 }
 0xc82   : > { %v1313_v54 = vpop.xlane.xlu0 %1312 }
 0xc83   : > { %3091 = vrcp.f32 %v1313_v54 }
 0xc89   : > { %v3092_v55 = vpop.eup %3091 }
 0xc8a   : > { %v1315_v56 = vmul.f32 %v3092_v55, %v3088_v37  ;;  %v1446_v37 = vunpack.c.l.b16 %v1438_v36 }
 0xc8c   : > { %v1316_v57 = vpack.c.bf16 %v1315_v56, %v1315_v56  ;;  %v1448_v39 = vpack.c.b16 %v1446_v37, %v1446_v37 }
 0xc8e   : > { %2777 = vmatmul.msk.bf16.vlgmr.msrb.gmra.mxu0 %vm593_vm6, %v1316_v57  ;;  %v1451_v40 = vsel %vm628_vm7, %v1448_v39, 0 }
 0xc8f   : > { %1459 = vmatpush.bf16.msra.mxu0 %v1451_v40 }
 0xc93   : > { %1460 = vmatpush.bf16.msra.mxu0 %v2922_v44 }
 0xc94   : > { %v1256_v58 = vpop.f32.mrf.mxu1 }
 0xc95   : > { %v1260_v59 = vpack.c.bf16 %v1256_v58, %v1256_v58 }
 0xc97   : > { %2775 = vmatmul.msk.bf16.vlgmr.msra.gmra.mxu2 %vm593_vm6, %v1260_v59 }
 0xc9c   : > { %v1258_v62 = vpop.f32.mrf.mxu1 }
 0xc9e   : > { %2797 = vmatmul.msk.bf16.vlgmr.msra.gmra.mxu0 %vm1416_vm12, %v3570_v51 }
 0xca7   : > { %2787 = vmatmul.msk.bf16.vlgmr.msrb.gmra.mxu2 %vm458_vm1, %v1367_v4 }
 0xd0b   : > { %v1334_v14 = vpop.f32.mrf.mxu0 }
 0xd0c   : > { %v1338_v63 = vpack.c.bf16 %v1334_v14, %v1334_v14 }
 0xd0e   : > { %2778 = vmatmul.msk.bf16.vlgmr.msrb.gmra.mxu1 %vm593_vm6, %v1338_v63 }
 0xd13   : > { %v1336_v15 = vpop.f32.mrf.mxu0 }
 0xd1a   : > { %v1277_v16 = vpop.f32.mrf.mxu2 }
 0xd1b   : > { %v1281_v17 = vadd.f32 %v1277_v16, %v3551_v23  ;;  %v1521_v23 = vld [vmem:[%s3389_s22 + $0xd0] sm:$0xf]  ;;  %v1462_v52 = vpop.f32.mrf.mxu0 }
 0xd1c   : > { %v1526_v29 = vsel %vm628_vm7, %v1521_v23, 0  ;;  %v1463_v54 = vadd.f32 %v3037_v53, %v1462_v52 }
 0xd1d   : > { %1535 = vmatpush.bf16.msra.mxu3 %v1526_v29 }
 0xd1e   : > { %v1468_v55 = vpack.c.bf16 %v1463_v54, %v1463_v54 }
 0xd20   : > { %v1505_v51 = vsel %vm628_vm7, %v1468_v55, 0  ;;  %v1585_v56 = vunpack.c.l.b16 %v1468_v55 }
 0xd21   : > { %1514 = vmatpush.bf16.msra.mxu2 %v1505_v51 }
 0xd22   : > { %v1279_v18 = vpop.f32.mrf.mxu2  ;;  %v3610_v58 = vpack.c.b16 %v1585_v56, %v1585_v56 }
 0xd23   : > { %v1464_v57 = vpop.f32.mrf.mxu0 }
 0xd25   : > { %1623 = vmatpush.bf16.msrb.mxu2 %v1614_v8 }
 0xd2a   : > { %v1398_v20 = vpop.f32.mrf.mxu2 }
 0xd2b   : > { %v1399_v21 = vadd.f32 %v3036_v19, %v1398_v20 }
 0xd2d   : > { %v1466_v22 = vpack.c.bf16 %v1399_v21, %v1399_v21 }
 0xd2f   : > { %v1544_v24 = vunpack.c.l.b16 %v1466_v22  ;;  %2798 = vmatmul.msk.bf16.vlgmr.msra.gmra.mxu1 %vm593_vm6, %v1466_v22 }
 0xd31   : > { %v1545_v25 = vpack.c.b16 %v1544_v24, %v1544_v24 }
 0xd32   : > { %v1400_v26 = vpop.f32.mrf.mxu2 }
 0xd33   : > { %1546 = vrot.lane.b32.xlu2 %v1545_v25, %s3228_s0 }
 0xd3b   : > { %1632 = vrot.lane.b32.xlu2 %v1550_v28, %s3230_s8 }
 0xd43   : > { %1630 = vrot.lane.b32.xlu2 %v1545_v25, %s3230_s8 }
 0xd8b   : > { %v1355_v30 = vpop.f32.mrf.mxu1 }
 0xd8c   : > { %v3595_v31 = vadd.f32 %v1355_v30, %v1281_v17 }
 0xd8d   : > { %v1547_v32 = vpop.permute.xlu2 %1546 }
 0xd93   : > { %v1357_v33 = vpop.f32.mrf.mxu1 }
 0xd95   : > { %v1633_v34 = vpop.permute.xlu2 %1632 }
 0xd96   : > { %v1638_v35 = vsel %vm593_vm6, %v1633_v34, 0 }
 0xd97   : > { %1647 = vmatpush.bf16.xpose.msrb.mxu3 %v1638_v35 }
 0xd9d   : > { %v1631_v17 = vpop.permute.xlu2 %1630 }
 0xdac   : > { %v1485_v41 = vpop.f32.mrf.mxu1 }
 0xdad   : > { %v1489_v42 = vsel %vm593_vm6, %v1485_v41, -inf }
 0xdae   : > { %1490 = vmax.xlane.f32.xlu0 %v1489_v42  ;;  %v2825_v42 = vld [vmem:[%s3389_s22 + $0x108] sm:$0xf] }
 0xdb4   : > { %v1487_v43 = vpop.f32.mrf.mxu1 }
 0xdb5   : > { %v2926_v43 = vld [vmem:[%s3389_s22 + $0x108] sm:$0x30] }
 0xdb6   : > { %v2826_v44 = vor.u32 %v2926_v43, %v2825_v42 }
 0xdc2   : > { %1551 = vrot.lane.b32.xlu0 %v1550_v28, %s3228_s0 }
 0xe21   : > { %v1491_v45 = vpop.xlane.xlu0 %1490 }
 0xe22   : > { %v1492_v46 = vsub.f32 %v1485_v41, %v1491_v45  ;;  %v3038_v45 = vld [vmem:[%s3379_s15 + $0x11] ss:$0 sm:$0xff] }
 0xe24   : > { %v1493_v1 = vmul.f32 1.442695, %v1492_v46  ;;  %v1851_v46 = vsel %vm1849_vm13, %v2826_v44, 0 }
 0xe26   : > { %3093 = vpow2.f32 %v1493_v1 }
 0xe2c   : > { %v3094_v47 = vpop.eup %3093 }
 0xe2d   : > { %v1495_v48 = vsel %vm593_vm6, %v3094_v47, 0.0 }
 0xe2e   : > { %1496 = vadd.xlane.f32.xlu1 %v1495_v48 }
 0xe34   : > { %v1552_v49 = vpop.permute.xlu0 %1551 }
 0xe35   : > { %v1557_v50 = vsel %vm593_vm6, %v1552_v49, 0 }
 0xe36   : > { %1566 = vmatpush.bf16.xpose.msrb.mxu0 %v1557_v50 }
 0xe3d   : > { %2801 = vmatmul.msk.bf16.vlgmr.msrb.gmra.mxu0 %vm593_vm6, %v1547_v32 }
 0xe47   : > { %1587 = vrot.lane.b32.xlu1 %v3610_v58, %s3228_s0 }
 0xea1   : > { %v1497_v59 = vpop.xlane.xlu1 %1496 }
 0xea2   : > { %3095 = vrcp.f32 %v1497_v59  ;;  %v1687_v59 = vld [vmem:[%s3389_s22 + $0xe0] sm:$0xf] }
 0xea8   : > { %v3096_v60 = vpop.eup %3095 }
 0xea9   : > { %v1499_v62 = vmul.f32 %v3096_v60, %v3094_v47  ;;  %v1692_v60 = vsel %vm628_vm7, %v1687_v59, 0 }
 0xeab   : > { %v1500_v0 = vpack.c.bf16 %v1499_v62, %v1499_v62  ;;  %v2925_v62 = vld [vmem:[%s3389_s22 + $0x100] sm:$0xff] }
 0xead   : > { %2799 = vmatmul.msk.bf16.vlgmr.msra.gmra.mxu2 %vm593_vm6, %v1500_v0  ;;  %v451_v0 = vld [vmem:[%s3863_s26] sm:$0xf] }
 0xeb9   : > { %v1588_v5 = vpop.permute.xlu1 %1587 }
 0xeba   : > { %v1568_v2 = vpop.f32.mrf.mxu0  ;;  %v1593_v6 = vsel %vm628_vm7, %v1588_v5, 0 }
 0xebb   : > { %v1572_v3 = vsel %vm593_vm6, %v1568_v2, -inf  ;;  %1602 = vmatpush.bf16.msrb.mxu1 %v1593_v6 }
 0xebc   : > { %1573 = vmax.xlane.f32.xlu0 %v1572_v3  ;;  %v2923_v3 = vld [vmem:[%s3389_s22 + $0xf0] sm:$0xff] }
 0xebf   : > { %1701 = vmatpush.bf16.msra.mxu1 %v1692_v60 }
 0xec2   : > { %v1570_v4 = vpop.f32.mrf.mxu0 }
 0xed0   : > { %1710 = vrot.lane.b32.xlu0 %v1550_v28, %s3231_s28 }
 0xed8   : > { %1708 = vrot.lane.b32.xlu0 %v1545_v25, %s3231_s28 }
 0xf2f   : > { %v1574_v10 = vpop.xlane.xlu0 %1573 }
 0xf30   : > { %v1575_v11 = vsub.f32 %v1568_v2, %v1574_v10  ;;  %v1516_v12 = vpop.f32.mrf.mxu2  ;;  %v2924_v2 = vld [vmem:[%s3389_s22 + $0xf8] sm:$0xff]  ;;  %v3028_v10 = vld [vmem:[%s3379_s15 + $0x12] ss:$0 sm:$0xff] }
 0xf31   : > { %v1520_v13 = vpack.c.bf16 %v1516_v12, %v1516_v12  ;;  %v1790_v12 = vmul.f32 %v3028_v10, %v3498_v61 }
 0xf32   : > { %v1576_v14 = vmul.f32 1.442695, %v1575_v11 }
 0xf33   : > { %2800 = vmatmul.msk.bf16.vlgmr.msra.gmra.mxu3 %vm593_vm6, %v1520_v13  ;;  %v3039_v13 = vld [vmem:[%s3379_s15 + $0x13] ss:$0 sm:$0xff] }
 0xf34   : > { %3097 = vpow2.f32 %v1576_v14 }
 0xf38   : > { %v1518_v63 = vpop.f32.mrf.mxu2 }
 0xf3a   : > { %v3098_v15 = vpop.eup %3097 }
 0xf3b   : > { %v1578_v16 = vsel %vm593_vm6, %v3098_v15, 0.0 }
 0xf3c   : > { %1579 = vadd.xlane.f32.xlu2 %v1578_v16 }
 0xf42   : > { %v1711_v18 = vpop.permute.xlu0 %1710 }
 0xf43   : > { %v1716_v19 = vsel %vm593_vm6, %v1711_v18, 0  ;;  %2804 = vmatmul.msk.bf16.vlgmr.msrb.gmra.mxu3 %vm593_vm6, %v1631_v17  ;;  %v3040_v17 = vld [vmem:[%s3379_s15 + $0x15] ss:$0 sm:$0xff] }
 0xf44   : > { %1725 = vmatpush.bf16.xpose.msra.mxu2 %v1716_v19 }
 0xf4a   : > { %v1709_v41 = vpop.permute.xlu0 %1708 }
 0xf54   : > { %1665 = vrot.lane.b32.xlu2 %v3610_v58, %s3230_s8 }
 0xfaf   : > { %v1580_v20 = vpop.xlane.xlu2 %1579 }
 0xfb0   : > { %3099 = vrcp.f32 %v1580_v20 }
 0xfb6   : > { %v3100_v21 = vpop.eup %3099  ;;  %v1537_v22 = vpop.f32.mrf.mxu3 }
 0xfb7   : > { %v1582_v24 = vmul.f32 %v3100_v21, %v3098_v15  ;;  %v1666_v25 = vpop.permute.xlu2 %1665  ;;  %v1542_v47 = vadd.f32 %v3038_v45, %v1537_v22  ;;  %v1792_v15 = vadd.f32 %v3039_v13, %v1790_v12 }
 0xfb8   : > { %v1671_v26 = vsel %vm628_vm7, %v1666_v25, 0  ;;  %v1765_v25 = vld [vmem:[%s3389_s22 + $0xe8] sm:$0xf] }
 0xfb9   : > { %v1583_v27 = vpack.c.bf16 %v1582_v24, %v1582_v24  ;;  %1680 = vmatpush.bf16.msra.mxu0 %v1671_v26  ;;  %v1793_v16 = vpack.c.bf16 %v1792_v15, %v1792_v15  ;;  %v2834_v26 = vld [vmem:[%s3389_s22 + $0x118] sm:$0xf] }
 0xfbb   : > { %2802 = vmatmul.msk.bf16.vlgmr.msrb.gmra.mxu1 %vm593_vm6, %v1583_v27  ;;  %v2928_v27 = vld [vmem:[%s3389_s22 + $0x118] sm:$0x30] }
 0xfbc   : > { %1821 = vmatpush.bf16.msrb.mxu1 %v2924_v2 }
 0xfbe   : > { %v1539_v28 = vpop.f32.mrf.mxu3 }
 0xfbf   : > { %v1770_v28 = vsel %vm628_vm7, %v1765_v25, 0 }
 0xfc0   : > { %1822 = vmatpush.bf16.msrb.mxu1 %v2923_v3  ;;  %1779 = vmatpush.bf16.msrb.mxu0 %v1770_v28 }
 0xfc6   : > { %v1649_v23 = vpop.f32.mrf.mxu3 }
 0xfc7   : > { %v1653_v29 = vsel %vm593_vm6, %v1649_v23, -inf }
 0xfc8   : > { %1654 = vmax.xlane.f32.xlu1 %v1653_v29 }
 0xfce   : > { %v1651_v30 = vpop.f32.mrf.mxu3 }
 0xfcf   : > { %v2927_v30 = vld [vmem:[%s3389_s22 + $0x110] sm:$0xff] }
0x1038   : > { %v1604_v32 = vpop.f32.mrf.mxu1 }
0x1039   : > { %v1608_v33 = vpack.c.bf16 %v1604_v32, %v1604_v32 }
0x103b   : > { %v1655_v34 = vpop.xlane.xlu1 %1654  ;;  %2803 = vmatmul.msk.bf16.vlgmr.msrb.gmra.mxu2 %vm593_vm6, %v1608_v33 }
0x103c   : > { %v1656_v35 = vsub.f32 %v1649_v23, %v1655_v34  ;;  %1859 = vmatpush.bf16.msrb.mxu2 %v1851_v46  ;;  %v2835_v23 = vor.u32 %v2928_v27, %v2834_v26 }
0x103e   : > { %v1657_v36 = vmul.f32 1.442695, %v1656_v35  ;;  %v1884_v29 = vsel %vm1849_vm13, %v2835_v23, 0 }
0x1040   : > { %3101 = vpow2.f32 %v1657_v36  ;;  %v1606_v37 = vpop.f32.mrf.mxu1  ;;  %1860 = vmatpush.bf16.msrb.mxu2 %v2925_v62 }
0x1046   : > { %v3102_v39 = vpop.eup %3101 }
0x1047   : > { %v1659_v40 = vsel %vm593_vm6, %v3102_v39, 0.0 }
0x1048   : > { %1660 = vadd.xlane.f32.xlu0 %v1659_v40  ;;  %v3041_v40 = vld [vmem:[%s3379_s15 + $0x14] ss:$0 sm:$0xff] }
0x104b   : > { %2807 = vmatmul.msk.bf16.vlgmr.msra.gmra.mxu2 %vm593_vm6, %v1709_v41 }
0x105b   : > { %2827 = vmatmul.msk.bf16.vlgmr.msrb.gmra.mxu2 %vm1845_vm14, %v451_v0 }
0x105c   : > { %1743 = vrot.lane.b32.xlu0 %v3610_v58, %s3231_s28 }
0x10bb   : > { %v1661_v1 = vpop.xlane.xlu0 %1660 }
0x10bc   : > { %3103 = vrcp.f32 %v1661_v1 }
0x10be   : > { %v1625_v48 = vpop.f32.mrf.mxu2 }
0x10bf   : > { %v3639_v49 = vadd.f32 %v1625_v48, %v1542_v47 }
0x10c2   : > { %v3104_v50 = vpop.eup %3103 }
0x10c3   : > { %v1663_v52 = vmul.f32 %v3104_v50, %v3102_v39 }
0x10c5   : > { %v1664_v53 = vpack.c.bf16 %v1663_v52, %v1663_v52 }
0x10c6   : > { %v1627_v54 = vpop.f32.mrf.mxu2 }
0x10c7   : > { %2805 = vmatmul.msk.bf16.vlgmr.msra.gmra.mxu0 %vm593_vm6, %v1664_v53  ;;  %v3042_v53 = vld [vmem:[%s3379_s15 + $0x16] ss:$0 sm:$0xff] }
0x10ce   : > { %v1744_v55 = vpop.permute.xlu0 %1743  ;;  %v1727_v51 = vpop.f32.mrf.mxu2 }
0x10cf   : > { %v1749_v56 = vsel %vm628_vm7, %v1744_v55, 0  ;;  %v1731_v57 = vsel %vm593_vm6, %v1727_v51, -inf }
0x10d0   : > { %1758 = vmatpush.bf16.msra.mxu3 %v1749_v56  ;;  %1732 = vmax.xlane.f32.xlu2 %v1731_v57 }
0x10d4   : > { %1892 = vmatpush.bf16.msrb.mxu3 %v1884_v29 }
0x10d6   : > { %v1729_v58 = vpop.f32.mrf.mxu2 }
0x10d8   : > { %1893 = vmatpush.bf16.msrb.mxu3 %v2927_v30 }
0x10de   : > { %v1862_v18 = vpop.f32.mrf.mxu2 }
0x10df   : > { %v1863_v19 = vadd.f32 %v3040_v17, %v1862_v18  ;;  %v1954_v18 = vld [vmem:[%s3389_s22 + $0x120] sm:$0xf] }
0x10e1   : > { %v1900_v20 = vpack.c.bf16 %v1863_v19, %v1863_v19  ;;  %v1959_v19 = vsel %vm628_vm7, %v1954_v18, 0 }
0x10e2   : > { %1968 = vmatpush.bf16.msra.mxu2 %v1959_v19 }
0x10e3   : > { %v1982_v21 = vunpack.c.l.b16 %v1900_v20  ;;  %v1907_v24 = vsel %vm593_vm6, %v1900_v20, 0  ;;  %v2042_v20 = vld [vmem:[%s3389_s22 + $0x128] sm:$0xf] }
0x10e4   : > { %1916 = vmatpush.bf16.xpose.msra.mxu0 %v1907_v24 }
0x10e5   : > { %v3662_v22 = vpack.c.b16 %v1982_v21, %v1982_v21  ;;  %v2047_v21 = vsel %vm628_vm7, %v2042_v20, 0 }
0x10e6   : > { %v1864_v61 = vpop.f32.mrf.mxu2 }
0x1143   : > { %v1733_v4 = vpop.xlane.xlu2 %1732 }
0x1144   : > { %v1734_v5 = vsub.f32 %v1727_v51, %v1733_v4  ;;  %v1682_v6 = vpop.f32.mrf.mxu0 }
0x1145   : > { %v1686_v7 = vpack.c.bf16 %v1682_v6, %v1682_v6 }
0x1146   : > { %v1735_v8 = vmul.f32 1.442695, %v1734_v5 }
0x1147   : > { %2806 = vmatmul.msk.bf16.vlgmr.msra.gmra.mxu1 %vm593_vm6, %v1686_v7 }
0x1148   : > { %3105 = vpow2.f32 %v1735_v8 }
0x114c   : > { %v1684_v11 = vpop.f32.mrf.mxu0 }
0x114e   : > { %v3106_v14 = vpop.eup %3105 }
0x114f   : > { %v1737_v63 = vsel %vm593_vm6, %v3106_v14, 0.0 }
0x1150   : > { %1738 = vadd.xlane.f32.xlu1 %v1737_v63 }
0x1157   : > { %2818 = vmatmul.msk.bf16.vlgmr.msrb.gmra.mxu1 %vm458_vm1, %v1793_v16 }
0x1169   : > { %1984 = vrot.lane.b32.xlu1 %v3662_v22, %s3228_s0 }
0x11c3   : > { %v1739_v32 = vpop.xlane.xlu1 %1738 }
0x11c4   : > { %3107 = vrcp.f32 %v1739_v32  ;;  %v1703_v33 = vpop.f32.mrf.mxu1 }
0x11c5   : > { %v1707_v34 = vadd.f32 %v1703_v33, %v3639_v49 }
0x11ca   : > { %v3108_v35 = vpop.eup %3107 }
0x11cb   : > { %v1741_v36 = vmul.f32 %v3108_v35, %v3106_v14 }
0x11cc   : > { %v1705_v37 = vpop.f32.mrf.mxu1 }
0x11cd   : > { %v1742_v39 = vpack.c.bf16 %v1741_v36, %v1741_v36 }
0x11cf   : > { %2808 = vmatmul.msk.bf16.vlgmr.msra.gmra.mxu3 %vm593_vm6, %v1742_v39 }
0x11d4   : > { %v1824_v41 = vpop.f32.mrf.mxu1 }
0x11d5   : > { %v1825_v42 = vadd.f32 %v3041_v40, %v1824_v41 }
0x11d7   : > { %v1899_v43 = vpack.c.bf16 %v1825_v42, %v1825_v42 }
0x11d9   : > { %v1977_v44 = vunpack.c.l.b16 %v1899_v43 }
0x11db   : > { %v1978_v45 = vpack.c.b16 %v1977_v44, %v1977_v44  ;;  %v1985_v1 = vpop.permute.xlu1 %1984 }
0x11dc   : > { %v1826_v46 = vpop.f32.mrf.mxu1  ;;  %v1990_v47 = vsel %vm593_vm6, %v1985_v1, 0 }
0x11dd   : > { %1979 = vrot.lane.b32.xlu0 %v1978_v45, %s3228_s0  ;;  %1999 = vmatpush.bf16.xpose.msra.mxu3 %v1990_v47 }
0x11df   : > { %2836 = vmatmul.msk.bf16.vlgmr.msrb.gmra.mxu3 %vm1845_vm14, %v451_v0 }
0x124f   : > { %v1980_v48 = vpop.permute.xlu0 %1979 }
0x1250   : > { %2840 = vmatmul.msk.bf16.vlgmr.msra.gmra.mxu3 %vm593_vm6, %v1980_v48  ;;  %v3043_v48 = vld [vmem:[%s3379_s15 + $0x17] ss:$0 sm:$0xff] }
0x1252   : > { %v1760_v49 = vpop.f32.mrf.mxu3 }
0x1253   : > { %v1764_v50 = vpack.c.bf16 %v1760_v49, %v1760_v49 }
0x1255   : > { %2809 = vmatmul.msk.bf16.vlgmr.msrb.gmra.mxu0 %vm593_vm6, %v1764_v50 }
0x125a   : > { %v1762_v52 = vpop.f32.mrf.mxu3 }
0x1262   : > { %v1895_v54 = vpop.f32.mrf.mxu3 }
0x1263   : > { %v1896_v55 = vadd.f32 %v3042_v53, %v1895_v54 }
0x1265   : > { %2837 = vmatmul.msk.bf16.vlgmr.msra.gmra.mxu0 %vm593_vm6, %v1899_v43  ;;  %v1901_v51 = vpack.c.bf16 %v1896_v55, %v1896_v55 }
0x1267   : > { %v1938_v56 = vsel %vm628_vm7, %v1901_v51, 0  ;;  %v2018_v16 = vunpack.c.l.b16 %v1901_v51 }
0x1268   : > { %1947 = vmatpush.bf16.msra.mxu1 %v1938_v56 }
0x1269   : > { %v3692_v17 = vpack.c.b16 %v2018_v16, %v2018_v16 }
0x126a   : > { %v1897_v57 = vpop.f32.mrf.mxu3 }
0x126c   : > { %2056 = vmatpush.bf16.msrb.mxu1 %v2047_v21 }
0x12d2   : > { %v1781_v58 = vpop.f32.mrf.mxu0 }
0x12d3   : > { %v3684_v59 = vadd.f32 %v1781_v58, %v1707_v34  ;;  %v2001_v60 = vpop.f32.mrf.mxu3 }
0x12d4   : > { %v2005_v62 = vsel %vm593_vm6, %v2001_v60, -inf }
0x12d5   : > { %2006 = vmax.xlane.f32.xlu1 %v2005_v62 }
0x12da   : > { %v1783_v0 = vpop.f32.mrf.mxu0 }
0x12db   : > { %v2003_v2 = vpop.f32.mrf.mxu3 }
0x12dc   : > { %v3721_v2 = vadd.f32 %v3595_v31, %v3479_v38 }
0x12e2   : > { %v1918_v3 = vpop.f32.mrf.mxu0 }
0x12e3   : > { %v1922_v4 = vsel %vm593_vm6, %v1918_v3, -inf }
0x12e4   : > { %1923 = vmax.xlane.f32.xlu2 %v1922_v4  ;;  %v2224_v4 = vsel %vm458_vm1, %v3721_v2, 0.0 }
0x12ea   : > { %v1920_v5 = vpop.f32.mrf.mxu0 }
0x12ee   : > { %2143 = vrot.lane.b32.xlu1 %v3662_v22, %s3231_s28 }
0x1348   : > { %v2007_v6 = vpop.xlane.xlu1 %2006 }
0x1349   : > { %v2008_v7 = vsub.f32 %v2001_v60, %v2007_v6 }
0x134b   : > { %v2009_v8 = vmul.f32 1.442695, %v2008_v7 }
0x134d   : > { %3109 = vpow2.f32 %v2009_v8 }
0x1353   : > { %v3110_v10 = vpop.eup %3109 }
0x1354   : > { %v2011_v11 = vsel %vm593_vm6, %v3110_v10, 0.0 }
0x1355   : > { %2012 = vadd.xlane.f32.xlu2 %v2011_v11 }
0x1357   : > { %v1924_v12 = vpop.xlane.xlu2 %1923 }
0x1358   : > { %v1925_v13 = vsub.f32 %v1918_v3, %v1924_v12 }
0x135a   : > { %v1926_v14 = vmul.f32 1.442695, %v1925_v13 }
0x135c   : > { %3111 = vpow2.f32 %v1926_v14 }
0x1360   : > { %v2144_v33 = vpop.permute.xlu1 %2143 }
0x1361   : > { %v2149_v35 = vsel %vm593_vm6, %v2144_v33, 0 }
0x1362   : > { %v3112_v63 = vpop.eup %3111 }
0x1363   : > { %v1928_v15 = vsel %vm593_vm6, %v3112_v63, 0.0 }
0x1364   : > { %1929 = vadd.xlane.f32.xlu0 %v1928_v15 }
0x136d   : > { %2020 = vrot.lane.b32.xlu2 %v3692_v17, %s3228_s0 }
0x1375   : > { %2065 = vrot.lane.b32.xlu2 %v3662_v22, %s3230_s8 }
0x1378   : > { %2063 = vrot.lane.b32.xlu0 %v1978_v45, %s3230_s8 }
0x137d   : > { %2141 = vrot.lane.b32.xlu2 %v1978_v45, %s3231_s28 }
0x13c8   : > { %v2013_v61 = vpop.xlane.xlu2 %2012 }
0x13c9   : > { %3113 = vrcp.f32 %v2013_v61  ;;  %v2198_v61 = vld [vmem:[%s3389_s22 + $0x138] sm:$0xf] }
0x13cf   : > { %v3114_v24 = vpop.eup %3113 }
0x13d0   : > { %v2015_v25 = vmul.f32 %v3114_v24, %v3110_v10  ;;  %v2021_v26 = vpop.permute.xlu2 %2020  ;;  %v2203_v24 = vsel %vm628_vm7, %v2198_v61, 0 }
0x13d1   : > { %v2026_v27 = vsel %vm628_vm7, %v2021_v26, 0 }
0x13d2   : > { %v2016_v22 = vpack.c.bf16 %v2015_v25, %v2015_v25  ;;  %2035 = vmatpush.bf16.msrb.mxu0 %v2026_v27 }
0x13d5   : > { %2841 = vmatmul.msk.bf16.vlgmr.msrb.gmra.mxu0 %vm593_vm6, %v2016_v22 }
0x13d7   : > { %v1930_v28 = vpop.xlane.xlu0 %1929 }
0x13d8   : > { %3115 = vrcp.f32 %v1930_v28  ;;  %v2066_v23 = vpop.permute.xlu2 %2065 }
0x13d9   : > { %v2071_v29 = vsel %vm593_vm6, %v2066_v23, 0 }
0x13da   : > { %2080 = vmatpush.bf16.xpose.msrb.mxu2 %v2071_v29 }
0x13de   : > { %v3116_v30 = vpop.eup %3115 }
0x13df   : > { %v1932_v32 = vmul.f32 %v3116_v30, %v3112_v63 }
0x13e0   : > { %v2142_v42 = vpop.permute.xlu2 %2141 }
0x13e1   : > { %v1933_v34 = vpack.c.bf16 %v1932_v32, %v1932_v32 }
0x13e3   : > { %2838 = vmatmul.msk.bf16.vlgmr.msra.gmra.mxu1 %vm593_vm6, %v1933_v34 }
0x13e4   : > { %2158 = vmatpush.bf16.xpose.msra.mxu1 %v2149_v35 }
0x13ea   : > { %v2064_v44 = vpop.permute.xlu0 %2063 }
0x1452   : > { %v2037_v36 = vpop.f32.mrf.mxu0 }
0x1453   : > { %v2041_v37 = vpack.c.bf16 %v2037_v36, %v2037_v36 }
0x1455   : > { %2842 = vmatmul.msk.bf16.vlgmr.msrb.gmra.mxu1 %vm593_vm6, %v2041_v37 }
0x145a   : > { %v2039_v39 = vpop.f32.mrf.mxu0 }
0x145b   : > { %v1786_v39 = vadd.f32 %v3684_v59, %v3479_v38 }
0x1460   : > { %v1949_v40 = vpop.f32.mrf.mxu1 }
0x1461   : > { %v1953_v41 = vpack.c.bf16 %v1949_v40, %v1949_v40  ;;  %v2228_v40 = vsel %vm458_vm1, %v1786_v39, 0.0 }
0x1463   : > { %2839 = vmatmul.msk.bf16.vlgmr.msra.gmra.mxu2 %vm593_vm6, %v1953_v41  ;;  %v3232_v41 = vmov 96.0  }
0x1465   : > { %2846 = vmatmul.msk.bf16.vlgmr.msra.gmra.mxu1 %vm593_vm6, %v2142_v42 }
0x1468   : > { %v1951_v43 = vpop.f32.mrf.mxu1 }
0x1473   : > { %2843 = vmatmul.msk.bf16.vlgmr.msrb.gmra.mxu2 %vm593_vm6, %v2064_v44 }
0x14d2   : > { %v2058_v45 = vpop.f32.mrf.mxu1 }
0x14da   : > { %v2060_v46 = vpop.f32.mrf.mxu1 }
0x14e2   : > { %v2160_v1 = vpop.f32.mrf.mxu1 }
0x14e3   : > { %v2164_v47 = vsel %vm593_vm6, %v2160_v1, -inf }
0x14e4   : > { %2165 = vmax.xlane.f32.xlu2 %v2164_v47 }
0x14e6   : > { %v1970_v49 = vpop.f32.mrf.mxu2 }
0x14e7   : > { %v1975_v50 = vadd.f32 %v3043_v48, %v1970_v49 }
0x14e9   : > { %v2062_v52 = vadd.f32 %v2058_v45, %v1975_v50 }
0x14ea   : > { %v2162_v53 = vpop.f32.mrf.mxu1 }
0x14ee   : > { %v1972_v54 = vpop.f32.mrf.mxu2 }
0x14f6   : > { %v2082_v55 = vpop.f32.mrf.mxu2 }
0x14f7   : > { %v2086_v51 = vsel %vm593_vm6, %v2082_v55, -inf }
0x14f8   : > { %2087 = vmax.xlane.f32.xlu0 %v2086_v51 }
0x14fe   : > { %v2084_v56 = vpop.f32.mrf.mxu2 }
0x150c   : > { %2098 = vrot.lane.b32.xlu0 %v3692_v17, %s3230_s8 }
0x1557   : > { %v2166_v57 = vpop.xlane.xlu2 %2165 }
0x1558   : > { %v2167_v58 = vsub.f32 %v2160_v1, %v2166_v57 }
0x155a   : > { %v2168_v60 = vmul.f32 1.442695, %v2167_v58 }
0x155c   : > { %3117 = vpow2.f32 %v2168_v60 }
0x1562   : > { %v3118_v62 = vpop.eup %3117 }
0x1563   : > { %v2170_v0 = vsel %vm593_vm6, %v3118_v62, 0.0 }
0x1564   : > { %2171 = vadd.xlane.f32.xlu1 %v2170_v0  ;;  %v2932_v0 = vld [vmem:[%s3389_s22 + $0x158] sm:$0xff] }
0x1565   : > { %2346 = vmatpush.bf16.msrb.mxu1 %v2932_v0 }
0x156b   : > { %v2088_v3 = vpop.xlane.xlu0 %2087 }
0x156c   : > { %v2089_v5 = vsub.f32 %v2082_v55, %v2088_v3  ;;  %2225 = vadd.xlane.f32.xlu1 %v2224_v4  ;;  %v2934_v3 = vld [vmem:[%s3389_s22 + $0x168] sm:$0xff]  ;;  %v2931_v4 = vld [vmem:[%s3389_s22 + $0x150] sm:$0xff] }
0x156d   : > { %2347 = vmatpush.bf16.msrb.mxu1 %v2931_v4 }
0x156e   : > { %v2090_v6 = vmul.f32 1.442695, %v2089_v5  ;;  %v2933_v5 = vld [vmem:[%s3389_s22 + $0x160] sm:$0xff] }
0x1570   : > { %3119 = vpow2.f32 %v2090_v6 }
0x1576   : > { %v3120_v7 = vpop.eup %3119 }
0x1577   : > { %v2092_v8 = vsel %vm593_vm6, %v3120_v7, 0.0 }
0x1578   : > { %2093 = vadd.xlane.f32.xlu2 %v2092_v8 }
0x157e   : > { %v2099_v10 = vpop.permute.xlu0 %2098 }
0x157f   : > { %v2104_v11 = vsel %vm628_vm7, %v2099_v10, 0 }
0x1580   : > { %2113 = vmatpush.bf16.msrb.mxu3 %v2104_v11 }
0x1584   : > { %2212 = vmatpush.bf16.msra.mxu3 %v2203_v24 }
0x1590   : > { %2176 = vrot.lane.b32.xlu2 %v3692_v17, %s3231_s28  ;;  %v2120_v17 = vld [vmem:[%s3389_s22 + $0x130] sm:$0xf]  ;;  %s3151_s28 = scalar_lea.hbm %s3865_s19, 16 }
0x1591   : > { %v2125_v21 = vsel %vm628_vm7, %v2120_v17, 0  ;;  %v3046_v17 = vld [vmem:[%s3379_s15 + $0x1c] ss:$0 sm:$0xff] }
0x1592   : > { %2134 = vmatpush.bf16.msra.mxu0 %v2125_v21 }
0x15d7   : > { %v2172_v31 = vpop.xlane.xlu1 %2171 }
0x15d8   : > { %3121 = vrcp.f32 %v2172_v31 }
0x15de   : > { %v3122_v13 = vpop.eup %3121 }
0x15df   : > { %v2174_v63 = vmul.f32 %v3122_v13, %v3118_v62  ;;  %v2226_v43 = vpop.xlane.xlu1 %2225  ;;  %v2930_v62 = vld [vmem:[%s3389_s22 + $0x148] sm:$0xff] }
0x15e0   : > { %2304 = vmatpush.bf16.msrb.mxu0 %v2930_v62 }
0x15e1   : > { %v2175_v20 = vpack.c.bf16 %v2174_v63, %v2174_v63 }
0x15eb   : > { %v2094_v12 = vpop.xlane.xlu2 %2093 }
0x15ec   : > { %3123 = vrcp.f32 %v2094_v12 }
0x15ed   : > { %3125 = vrcp.f32 %v3232_v41 }
0x15f2   : > { %v3124_v14 = vpop.eup %3123 }
0x15f3   : > { %v2096_v15 = vmul.f32 %v3124_v14, %v3120_v7  ;;  %v2177_v16 = vpop.permute.xlu2 %2176  ;;  %v3126_v42 = vpop.eup %3125 }
0x15f4   : > { %v2182_v18 = vsel %vm628_vm7, %v2177_v16, 0  ;;  %v2233_v44 = vmul.f32 96.0, %v3126_v42  ;;  %vm2237_vm15 = vweird.f32 %v3126_v42  ;;  %vm2493_vm7 = vcmask 523264  }
0x15f5   : > { %v2097_v19 = vpack.c.bf16 %v2096_v15, %v2096_v15  ;;  %2191 = vmatpush.bf16.msra.mxu2 %v2182_v18  ;;  %v3044_v18 = vld [vmem:[%s3379_s15 + $0x18] ss:$0 sm:$0xff] }
0x15f6   : > { %v2234_v45 = vsub.f32 1.0, %v2233_v44 }
0x15f7   : > { %2844 = vmatmul.msk.bf16.vlgmr.msrb.gmra.mxu3 %vm593_vm6, %v2097_v19 }
0x15f8   : > { %2847 = vmatmul.msk.bf16.vlgmr.msra.gmra.mxu2 %vm593_vm6, %v2175_v20  ;;  %v2235_v1 = vmul.f32 %v3126_v42, %v2234_v45  ;;  %v3045_v20 = vld [vmem:[%s3379_s15 + $0x1a] ss:$0 sm:$0xff] }
0x15f9   : > { %2387 = vmatpush.bf16.msrb.mxu2 %v2934_v3 }
0x15fa   : > { %v2236_v47 = vadd.f32 %v3126_v42, %v2235_v1 }
0x15fc   : > { %v2238_v49 = vsel %vm2237_vm15, %v3126_v42, %v2236_v47 }
0x15fd   : > { %2388 = vmatpush.bf16.msrb.mxu2 %v2933_v5  ;;  %v3051_v5 = vld [vmem:[%s3379_s15 + $0x1f] ss:$0 sm:$0xff] }
0x167a   : > { %v2115_v25 = vpop.f32.mrf.mxu3 }
0x167b   : > { %v2119_v26 = vpack.c.bf16 %v2115_v25, %v2115_v25  ;;  %v2193_v27 = vpop.f32.mrf.mxu2 }
0x167c   : > { %v2197_v22 = vpack.c.bf16 %v2193_v27, %v2193_v27  ;;  %v3048_v27 = vld [vmem:[%s3379_s15 + $0x1b] ss:$0 sm:$0xff] }
0x167d   : > { %2845 = vmatmul.msk.bf16.vlgmr.msra.gmra.mxu0 %vm593_vm6, %v2119_v26  ;;  %v3047_v26 = vld [vmem:[%s3379_s15 + $0x19] ss:$0 sm:$0xff] }
0x167e   : > { %2848 = vmatmul.msk.bf16.vlgmr.msra.gmra.mxu3 %vm593_vm6, %v2197_v22  ;;  %v3049_v22 = vld [vmem:[%s3379_s15 + $0x1d] ss:$0 sm:$0xff] }
0x1682   : > { %v2117_v28 = vpop.f32.mrf.mxu3 }
0x1683   : > { %v2195_v23 = vpop.f32.mrf.mxu2 }
0x16fa   : > { %v2136_v29 = vpop.f32.mrf.mxu0 }
0x16fb   : > { %v2140_v30 = vadd.f32 %v2136_v29, %v2062_v52 }
0x1701   : > { %v2214_v32 = vpop.f32.mrf.mxu3 }
0x1702   : > { %v2218_v33 = vadd.f32 %v2214_v32, %v2140_v30  ;;  %v2138_v34 = vpop.f32.mrf.mxu0 }
0x1704   : > { %v2219_v35 = vadd.f32 %v2218_v33, %v3479_v38 }
0x1706   : > { %v2220_v36 = vsel %vm458_vm1, %v2219_v35, 0.0 }
0x1707   : > { %2221 = vadd.xlane.f32.xlu1 %v2220_v36 }
0x1709   : > { %v2216_v37 = vpop.f32.mrf.mxu3 }
0x170a   : > { %v3050_v37 = vld [vmem:[%s3379_s15 + $0x1e] ss:$0 sm:$0xff] }
0x170f   : > { %2229 = vadd.xlane.f32.xlu1 %v2228_v40 }
0x177a   : > { %v2222_v46 = vpop.xlane.xlu1 %2221 }
0x177b   : > { %v2227_v48 = vadd.f32 %v2226_v43, %v2222_v46 }
0x1782   : > { %v2230_v50 = vpop.xlane.xlu1 %2229 }
0x1783   : > { %v2231_v52 = vadd.f32 %v2230_v50, %v2227_v48 }
0x1785   : > { %v2239_v38 = vmul.f32 %v2238_v49, %v2231_v52 }
0x1787   : > { %v2252_v59 = vsub.f32 %v1786_v39, %v2239_v38  ;;  %v2246_v53 = vsub.f32 %v3721_v2, %v2239_v38  ;;  %v2240_v54 = vsub.f32 %v2219_v35, %v2239_v38  ;;  %v2929_v2 = vld [vmem:[%s3389_s22 + $0x140] sm:$0xff] }
0x1788   : > { %2305 = vmatpush.bf16.msrb.mxu0 %v2929_v2 }
0x1789   : > { %v2253_v55 = vmul.f32 %v2252_v59, %v2252_v59  ;;  %v2247_v51 = vmul.f32 %v2246_v53, %v2246_v53  ;;  %v2241_v56 = vmul.f32 %v2240_v54, %v2240_v54 }
0x178b   : > { %v2254_v57 = vsel %vm458_vm1, %v2253_v55, 0.0  ;;  %v2248_v58 = vsel %vm458_vm1, %v2247_v51, 0.0  ;;  %v2242_v60 = vsel %vm458_vm1, %v2241_v56, 0.0  ;;  %v2940_v55 = vld [vmem:[%s3389_s22 + $0x188] sm:$0xff] }
0x178c   : > { %2255 = vadd.xlane.f32.xlu1 %v2254_v57  ;;  %2249 = vadd.xlane.f32.xlu2 %v2248_v58  ;;  %v2939_v57 = vld [vmem:[%s3389_s22 + $0x180] sm:$0xff] }
0x178d   : > { %2243 = vadd.xlane.f32.xlu0 %v2242_v60  ;;  %2501 = vmatpush.bf16.msra.mxu0 %v2940_v55 }
0x1791   : > { %2502 = vmatpush.bf16.msra.mxu0 %v2939_v57 }
0x17ff   : > { %v2250_v6 = vpop.xlane.xlu2 %2249  ;;  %v2256_v10 = vpop.xlane.xlu1 %2255 }
0x1800   : > { %v2244_v7 = vpop.xlane.xlu0 %2243 }
0x1801   : > { %v2251_v8 = vadd.f32 %v2250_v6, %v2244_v7  ;;  %v3052_v6 = vld [vmem:[%s3379_s15 + $0x20] ss:$0 sm:$0xff] }
0x1803   : > { %v2257_v11 = vadd.f32 %v2256_v10, %v2251_v8 }
0x1805   : > { %v2258_v31 = vmul.f32 %v2257_v11, %v2238_v49 }
0x1807   : > { %v2259_v12 = vadd.f32 1e-05, %v2258_v31  ;;  %v2938_v31 = vld [vmem:[%s3389_s22 + $0x178] sm:$0xff] }
0x1808   : > { %2503 = vmatpush.bf16.msra.mxu0 %v2938_v31 }
0x1809   : > { %3127 = vrsqrt.f32 %v2259_v12  ;;  %vm2266_vm2 = vweird.f32 %v2259_v12 }
0x180f   : > { %v3128_v13 = vpop.eup %3127 }
0x1810   : > { %v2261_v14 = vmul.f32 %v3128_v13, %v2259_v12  ;;  %vm2267_vm0 = vweird.f32 %v3128_v13  ;;  %v2937_v12 = vld [vmem:[%s3389_s22 + $0x170] sm:$0xff]  ;;  %s2528_s22 = sshll.u32 %s3391_s27, 4  ;;  %s2529_s22 = int_to_ptr.vmem [resolvable:$true] %s2528_s22 }
0x1811   : > { %vm2268_vm3 = vmor %vm2266_vm2, %vm2267_vm0  ;;  %2504 = vmatpush.bf16.msra.mxu0 %v2937_v12 }
0x1812   : > { %v2262_v63 = vmul.f32 %v3128_v13, %v2261_v14 }
0x1814   : > { %v2263_v15 = vmul.f32 0.5, %v2262_v63 }
0x1816   : > { %v2264_v16 = vsub.f32 1.5, %v2263_v15 }
0x1818   : > { %v2265_v19 = vmul.f32 %v3128_v13, %v2264_v16 }
0x181a   : > { %v2269_v21 = vsel %vm2268_vm3, %v3128_v13, %v2265_v19  ;;  %v3053_v13 = vld [vmem:[%s3379_s15 + $0x21] ss:$0 sm:$0xff]  ;;  %v3054_v19 = vld [vmem:[%s3379_s15 + $0x22] ss:$0 sm:$0xff] }
0x181b   : > { %v2271_v61 = vmul.f32 %v2269_v21, %v2240_v54  ;;  %v2313_v24 = vmul.f32 %v2269_v21, %v2246_v53  ;;  %v2354_v25 = vmul.f32 %v2269_v21, %v2252_v59  ;;  %v2936_v53 = vld [vmem:[%s3384_s21 + $0x8] sm:$0xff]  ;;  %v2935_v54 = vld [vmem:[%s3384_s21] sm:$0xff]  ;;  %s2530_s21 = sshll.u32 %s2526_s10, 4  ;;  %s2531_s21 = int_to_ptr.hbm [resolvable:$true] %s2530_s21 }
0x181c   : > { %2452 = vmatpush.bf16.msrb.mxu3 %v2936_v53  ;;  %s3145_s0 = sshra.s32 %s2531_s21, 4  ;;  %s3146_s0 = int_to_ptr.hbm [resolvable:$true] %s3145_s0 }
0x181d   : > { %v2274_v28 = vmul.f32 %v3044_v18, %v2271_v61  ;;  %v2316_v23 = vmul.f32 %v3045_v20, %v2313_v24  ;;  %v2357_v29 = vmul.f32 %v3046_v17, %v2354_v25  ;;  %s3147_s9 = scalar_lea.hbm %s3146_s0, 8  ;;  %p3152_p5 = scmp.lt.s32.totalorder %s3146_s0, %s3865_s19 }
0x181e   : > { %p3148_p1 = scmp.ne.s32.totalorder %s3146_s0, %s3147_s9  ;;  %p3153_p6 = scmp.lt.s32.totalorder %s3151_s28, %s3147_s9 }
0x181f   : > { %v2277_v30 = vadd.f32 %v3047_v26, %v2274_v28  ;;  %v2319_v32 = vadd.f32 %v3048_v27, %v2316_v23  ;;  %v2360_v33 = vadd.f32 %v3049_v22, %v2357_v29 }
0x1820   : > { %2453 = vmatpush.bf16.msrb.mxu3 %v2935_v54  ;;  %p3149_p2 = pnand %p3148_p1, %p3327_p3  ;;  %p3154_p7 = por %p3153_p6, %p3152_p5 }
0x1821   : > { %v2278_v34 = vpack.c.bf16 %v2277_v30, %v2277_v30  ;;  %v2320_v35 = vpack.c.bf16 %v2319_v32, %v2319_v32  ;;  %v2361_v36 = vpack.c.bf16 %v2360_v33, %v2360_v33 }
0x1822   : > { %p3150_p4 = pneg %p3149_p2 }
0x1823   : > { %2857 = vmatmul.msk.bf16.vlgmr.msrb.gmra.mxu0 %vm458_vm1, %v2278_v34  ;;  %2866 = vmatmul.msk.bf16.vlgmr.msrb.gmra.mxu1 %vm458_vm1, %v2320_v35 }
0x1824   : > { %2875 = vmatmul.msk.bf16.vlgmr.msrb.gmra.mxu2 %vm458_vm1, %v2361_v36  ;;  %p3155_p8 = pnand %p3154_p7, %p3150_p4 }
0x18a0   : > { %v2307_v39 = vpop.f32.mrf.mxu0  ;;  %v2349_v40 = vpop.f32.mrf.mxu1 }
0x18a1   : > { %v2312_v41 = vadd.f32 %v3050_v37, %v2307_v39 }
0x18a3   : > { %v2353_v42 = vadd.f32 %v2349_v40, %v2312_v41 }
0x18a7   : > { %v2390_v43 = vpop.f32.mrf.mxu2 }
0x18a8   : > { %v2394_v44 = vadd.f32 %v2390_v43, %v2353_v42  ;;  %v2309_v45 = vpop.f32.mrf.mxu0  ;;  %v2351_v46 = vpop.f32.mrf.mxu1 }
0x18aa   : > { %v2395_v1 = vmax.f32 %v2394_v44, 0.0 }
0x18ac   : > { %v2398_v47 = vsel %vm458_vm1, %v2395_v1, 0.0 }
0x18ad   : > { %2399 = vadd.xlane.f32.xlu1 %v2398_v47 }
0x18af   : > { %v2392_v48 = vpop.f32.mrf.mxu2 }
0x1920   : > { %v2400_v49 = vpop.xlane.xlu1 %2399 }
0x1921   : > { %v2401_v50 = vmul.f32 %v2400_v49, %v3400_v9 }
0x1923   : > { %v2402_v52 = vsub.f32 %v2395_v1, %v2401_v50 }
0x1925   : > { %v2403_v38 = vmul.f32 %v2402_v52, %v2402_v52 }
0x1927   : > { %v2404_v59 = vsel %vm458_vm1, %v2403_v38, 0.0 }
0x1928   : > { %2405 = vadd.xlane.f32.xlu1 %v2404_v59 }
0x199b   : > { %v2406_v51 = vpop.xlane.xlu1 %2405 }
0x199c   : > { %v2407_v56 = vmul.f32 %v2406_v51, %v3400_v9 }
0x199e   : > { %v2408_v58 = vadd.f32 1e-05, %v2407_v56 }
0x19a0   : > { %3129 = vrsqrt.f32 %v2408_v58  ;;  %vm2415_vm5 = vweird.f32 %v2408_v58 }
0x19a6   : > { %v3130_v60 = vpop.eup %3129 }
0x19a7   : > { %v2410_v62 = vmul.f32 %v3130_v60, %v2408_v58  ;;  %vm2416_vm4 = vweird.f32 %v3130_v60 }
0x19a8   : > { %vm2417_vm6 = vmor %vm2415_vm5, %vm2416_vm4 }
0x19a9   : > { %v2411_v0 = vmul.f32 %v3130_v60, %v2410_v62 }
0x19ab   : > { %v2412_v3 = vmul.f32 0.5, %v2411_v0 }
0x19ad   : > { %v2413_v2 = vsub.f32 1.5, %v2412_v3 }
0x19af   : > { %v2414_v4 = vmul.f32 %v3130_v60, %v2413_v2 }
0x19b1   : > { %v2418_v9 = vsel %vm2417_vm6, %v3130_v60, %v2414_v4 }
0x19b2   : > { %v2419_v7 = vmul.f32 %v2418_v9, %v2402_v52 }
0x19b4   : > { %v2421_v8 = vmul.f32 %v3051_v5, %v2419_v7 }
0x19b6   : > { %v2423_v10 = vadd.f32 %v3052_v6, %v2421_v8 }
0x19b8   : > { %v2424_v11 = vpack.c.bf16 %v2423_v10, %v2423_v10 }
0x19ba   : > { %2884 = vmatmul.msk.bf16.vlgmr.msrb.gmra.mxu3 %vm458_vm1, %v2424_v11 }
0x1a3d   : > { %v2455_v14 = vpop.f32.mrf.mxu3 }
0x1a3e   : > { %v2456_v63 = vadd.f32 %v3053_v13, %v2455_v14 }
0x1a40   : > { %v2459_v15 = vmax.f32 %v2456_v63, 0.0 }
0x1a42   : > { %v2460_v16 = vpack.c.bf16 %v2459_v15, %v2459_v15 }
0x1a44   : > { %2901 = vmatmul.msk.bf16.vlgmr.msra.gmra.mxu0 %vm2493_vm7, %v2460_v16 }
0x1a45   : > { %v2457_v18 = vpop.f32.mrf.mxu3 }
0x1ac1   : > { %v2506_v20 = vpop.f32.mrf.mxu0 }
0x1ac2   : > { %v2510_v17 = vadd.f32 %v2506_v20, %v2395_v1 }
0x1ac4   : > { %v2513_v21 = vadd.f32 %v3054_v19, %v2510_v17 }
0x1ac6   : > { %2514 = vst.msk [vmem:[%s3391_s27] sm:$0xff] %vm458_vm1, %v2513_v21 }
0x1ac7   : > { %3158 = shalt.err (!%p3155_p8)
}
0x1ac8   : > { %2943 = dma.vmem_to_hbm [thread:$0]  (%p3327_p3), %s2529_s22, 128, %s2531_s21, %s2516_s18  }
0x1ac9   : > { %v2508_v61 = vpop.f32.mrf.mxu0 }
0x1aca PF: > { %s3868_s27 = sld [smem:[#allocation10_spill]] }
0x1acb   : > { %s3869_s17 = sld [smem:[#allocation5_spill]] }
0x1ad0   : > { %p2949_p10 = scmp.ge.s32.totalorder %s3868_s27, 2 }
0x1ad1   : > { %s2542_s11 = sand.u32 1, %s3869_s17  }
0x1ad2   : > { %p2946_p11 = pnand %p2949_p10, %p3337_p9  ;;  %s2543_s25 = scalar_lea.sflag [#allocation3], %s2542_s11 }
0x1ad4   : > { %p2947_p12 = pneg %p2946_p11 }
0x1ad6   : > { %3192 = dma.done.wait (%p2947_p12), %s2543_s25, 128  }
0x1ad7   : > { %3194 = vsyncadd (%p2947_p12), %s2543_s25, 4294967168  ;;  %s21_s12 = sadd.s32 1, %s3868_s27   ;;  %s3871_s27 = sld [smem:[#allocation6_spill]] }
0x1ad8   : > { %p18_p13 = scmp.ge.s32.totalorder %s21_s12, 6   ;;  %s3872_s28 = sld [smem:[#allocation7_spill]] }
0x1ad9   : > { %s3873_s29 = sld [smem:[#allocation15_spill]] }
0x1ada   : > { %s3874_s30 = sld [smem:[#allocation8_spill]]  ;;  %20 = sbr.rel (!%p18_p13) target bundleno = 8 (0x8), region = 112 }
0x1adb   : > { %s3875_s9 = sld [smem:[#allocation9_spill]] }
0x1adc   : > { %s3876_s10 = sld [smem:[#allocation11_spill]] }
0x1add   : > { %s3877_s11 = sld [smem:[#allocation13_spill]] }
0x1adf   :  { %2549 = vsyncpa [#allocation3], 1 }
0x1ae0   :  { %2551 = vsyncpa [#allocation3 + $0x1], 1 }

</bundles_post_ra>
